<compile_context>
chip_gen: v7x
topology: tpu7x:2x2x1
jax: 0.10.0
libtpu: 0.0.40
codegen_flags: <defaults>
</compile_context>

<pallas_src>
import jax
import jax.numpy as jnp
from jax.experimental import pallas as pl
from jax.experimental.pallas import tpu as pltpu


def _round_up(x, m):
    return ((x + m - 1) // m) * m


def _pick_tile(n, unit, t_max, min_steps=2):
    """Tile size (multiple of `unit`, <= t_max) giving >= min_steps grid steps
    when possible, so v7x's two TensorCores both get work and streamed inputs
    are double-buffered across steps."""
    steps = max(min_steps, pl.cdiv(n, t_max))
    t = _round_up(pl.cdiv(n, steps), unit)
    return max(unit, min(t, _round_up(max(n, unit), unit), t_max))


# ----------------------------------------------------------------------------
# Pallas kernel 1: conv-as-matmul (swapped orientation), fused bias + ReLU.
#   o[co, n] = relu( sum_k W[co, k] * P[k, n] + b[co] )
# ----------------------------------------------------------------------------
def _conv_mm_kernel(w_ref, p_ref, b_ref, o_ref):
    acc = jnp.dot(w_ref[...], p_ref[...], preferred_element_type=jnp.float32)
    acc = acc + b_ref[...]                      # (Cout, 1) broadcast over lanes
    o_ref[...] = jnp.maximum(acc, 0.0).astype(o_ref.dtype)


def conv_matmul_relu(w_mat, b_col, patches, *, tn_max=4096):
    """w_mat: (Cout_pad, K)  b_col: (Cout_pad, 1)  patches: (K, Npos)
    Returns (Cout_pad, Npos) float32 with bias + ReLU applied."""
    cout_pad, k = w_mat.shape
    k2, npos = patches.shape
    assert k == k2, (k, k2)

    tn = _pick_tile(npos, 128, tn_max)
    grid = (pl.cdiv(npos, tn),)

    cost = pl.CostEstimate(
        flops=2 * cout_pad * k * npos,
        transcendentals=0,
        bytes_accessed=4 * (cout_pad * k + k * npos + cout_pad * npos + cout_pad),
    )
    return pl.pallas_call(
        _conv_mm_kernel,
        out_shape=jax.ShapeDtypeStruct((cout_pad, npos), jnp.float32),
        grid=grid,
        in_specs=[
            pl.BlockSpec((cout_pad, k), lambda i: (0, 0)),   # resident weight
            pl.BlockSpec((k, tn), lambda i: (0, i)),         # streamed patches
            pl.BlockSpec((cout_pad, 1), lambda i: (0, 0)),   # resident bias
        ],
        out_specs=pl.BlockSpec((cout_pad, tn), lambda i: (0, i)),
        compiler_params=pltpu.CompilerParams(
            dimension_semantics=("parallel",),
            vmem_limit_bytes=32 * 1024 * 1024,
        ),
        cost_estimate=cost,
    )(w_mat, patches.astype(jnp.float32), b_col)


# ----------------------------------------------------------------------------
# Pallas kernel 2: fused fc1 (+ReLU) -> fc2, tiled over batch rows.
# ----------------------------------------------------------------------------
def _fused_fc_kernel(x_ref, w1_ref, b1_ref, w2_ref, b2_ref, o_ref):
    h = jnp.dot(x_ref[...], w1_ref[...], preferred_element_type=jnp.float32)
    h = jnp.maximum(h + b1_ref[...], 0.0)
    acc = jnp.dot(h, w2_ref[...], preferred_element_type=jnp.float32)
    o_ref[...] = (acc + b2_ref[...]).astype(o_ref.dtype)


def fused_fc(x, w1, b1, w2, b2, *, tm_max=256):
    """x: (B, K1)  w1: (K1, H)  b1: (1, H)  w2: (H, N_pad)  b2: (1, N_pad)
    Returns (B, N_pad) = fc2(relu(fc1(x)))."""
    b_rows, k1 = x.shape
    k1w, hdim = w1.shape
    assert k1 == k1w, (k1, k1w)
    _, n_pad = w2.shape

    xp = x.astype(jnp.float32)
    b_use = b_rows
    if b_rows % 8:                               # tiny one-off pad (< 7 rows)
        b_use = _round_up(b_rows, 8)
        xp = jnp.pad(xp, ((0, b_use - b_rows), (0, 0)))

    tm = _pick_tile(b_use, 8, tm_max)
    grid = (pl.cdiv(b_use, tm),)

    cost = pl.CostEstimate(
        flops=2 * b_use * (k1 * hdim + hdim * n_pad),
        transcendentals=0,
        bytes_accessed=4 * (b_use * k1 + k1 * hdim + hdim * n_pad + b_use * n_pad),
    )
    out = pl.pallas_call(
        _fused_fc_kernel,
        out_shape=jax.ShapeDtypeStruct((b_use, n_pad), jnp.float32),
        grid=grid,
        in_specs=[
            pl.BlockSpec((tm, k1), lambda i: (i, 0)),        # streamed rows
            pl.BlockSpec((k1, hdim), lambda i: (0, 0)),      # resident fc1 W
            pl.BlockSpec((1, hdim), lambda i: (0, 0)),
            pl.BlockSpec((hdim, n_pad), lambda i: (0, 0)),   # resident fc2 W
            pl.BlockSpec((1, n_pad), lambda i: (0, 0)),
        ],
        out_specs=pl.BlockSpec((tm, n_pad), lambda i: (i, 0)),
        compiler_params=pltpu.CompilerParams(
            dimension_semantics=("parallel",),
            vmem_limit_bytes=32 * 1024 * 1024,
        ),
        cost_estimate=cost,
    )(xp, w1, b1, w2, b2)
    return out[:b_rows]


# ----------------------------------------------------------------------------
# im2col glue via strided slices (no XLA gather).  Produces the
# (Cin*K*K, B*OH*OW) patch matrix with rows ordered (c, kh, kw) -- matching a
# reshaped PyTorch OIHW weight -- and columns ordered (b, oh, ow).
# ----------------------------------------------------------------------------
def _im2col_patches(x, k, s, *, channel_axis):
    """channel_axis=1 -> x is (B, C, H, W); channel_axis=0 -> x is (C, B, H, W)."""
    H, W = x.shape[2], x.shape[3]
    OH = (H - k) // s + 1
    OW = (W - k) // s + 1
    crops = []
    for kh in range(k):
        for kw in range(k):
            crops.append(x[:, :, kh:kh + (OH - 1) * s + 1:s,
                               kw:kw + (OW - 1) * s + 1:s])      # (a0, a1, OH, OW)
    p = jnp.stack(crops, axis=2)                                 # (a0, a1, k*k, OH, OW)
    if channel_axis == 0:
        C, B = x.shape[0], x.shape[1]
        p = p.transpose(0, 2, 1, 3, 4)                           # (C, k*k, B, OH, OW)
    else:
        B, C = x.shape[0], x.shape[1]
        p = p.transpose(1, 2, 0, 3, 4)                           # (C, k*k, B, OH, OW)
    return p.reshape(C * k * k, B * OH * OW), OH, OW


# ----------------------------------------------------------------------------
# Parameters: PyTorch-layout init + one-time prep (hoisted out of forward).
# ----------------------------------------------------------------------------
def init_cnn_params(key, in_channels, out_channels):
    n_features = 32 * 9 * 9
    ks = jax.random.split(key, 8)

    def uni(k, shape, fan_in):
        bound = 1.0 / jnp.sqrt(fan_in)
        return jax.random.uniform(k, shape, jnp.float32, -bound, bound)

    return {
        "conv1_w": uni(ks[0], (16, in_channels, 8, 8), in_channels * 8 * 8),
        "conv1_b": uni(ks[1], (16,), in_channels * 8 * 8),
        "conv2_w": uni(ks[2], (32, 16, 4, 4), 16 * 4 * 4),
        "conv2_b": uni(ks[3], (32,), 16 * 4 * 4),
        "fc1_w": uni(ks[4], (256, n_features), n_features),   # PyTorch (out, in)
        "fc1_b": uni(ks[5], (256,), n_features),
        "fc2_w": uni(ks[6], (out_channels, 256), 256),
        "fc2_b": uni(ks[7], (out_channels,), 256),
    }


def prepare_params(params):
    """One-time reshape/transpose/pad of all weights into kernel-ready layouts."""

    def prep_conv(w, b):
        cout, cin, k, _ = w.shape
        kk = cin * k * k
        cout_pad = _round_up(cout, 8)            # 16/32 -> no-op
        wm = w.astype(jnp.float32).reshape(cout, kk)             # (Cout, Cin*K*K)
        wm = jnp.pad(wm, ((0, cout_pad - cout), (0, 0)))
        bc = jnp.pad(b.astype(jnp.float32).reshape(-1, 1),
                     ((0, cout_pad - cout), (0, 0)))             # (Cout_pad, 1)
        return wm, bc

    c1_w, c1_b = prep_conv(params["conv1_w"], params["conv1_b"])
    c2_w, c2_b = prep_conv(params["conv2_w"], params["conv2_b"])

    fc1_w = params["fc1_w"].astype(jnp.float32)                  # (256, 2592)
    fc2_w = params["fc2_w"].astype(jnp.float32)                  # (out_ch, 256)
    n_out = fc2_w.shape[0]
    n_pad = _round_up(max(n_out, 128), 128)
    fc1_wm = fc1_w.T                                             # (2592, 256) no pad
    fc1_bm = params["fc1_b"].astype(jnp.float32).reshape(1, -1)  # (1, 256)
    fc2_wm = jnp.pad(fc2_w.T, ((0, 0), (0, n_pad - n_out)))      # (256, N_pad)
    fc2_bm = jnp.pad(params["fc2_b"].astype(jnp.float32).reshape(1, -1),
                     ((0, 0), (0, n_pad - n_out)))
    return {
        "c1_w": c1_w, "c1_b": c1_b,
        "c2_w": c2_w, "c2_b": c2_b,
        "fc1_w": fc1_wm, "fc1_b": fc1_bm,
        "fc2_w": fc2_wm, "fc2_b": fc2_bm,
    }


# ----------------------------------------------------------------------------
# Forward
# ----------------------------------------------------------------------------
def cnn_forward(prep, x, *, out_channels):
    """x: (B, in_channels, 84, 84) NCHW float32 -> (B, out_channels)."""
    B = x.shape[0]
    x = x.astype(jnp.float32)

    # conv1: 8x8 / stride 4 + ReLU.  Output kept in (C, B, H, W) layout so the
    # next im2col consumes it with no full-activation transpose.
    p1, oh1, ow1 = _im2col_patches(x, 8, 4, channel_axis=1)
    h1 = conv_matmul_relu(prep["c1_w"], prep["c1_b"], p1)        # (16, B*20*20)
    h1 = h1[:16].reshape(16, B, oh1, ow1)                        # (C, B, H, W)

    # conv2: 4x4 / stride 2 + ReLU
    p2, oh2, ow2 = _im2col_patches(h1, 4, 2, channel_axis=0)
    h2 = conv_matmul_relu(prep["c2_w"], prep["c2_b"], p2)        # (32, B*9*9)

    # PyTorch's x.view(-1, 32*9*9) flattens NCHW as (c, h, w) per row; this tiny
    # (32, B, 81) -> (B, 32*81) transpose reproduces that order exactly.
    flat = h2[:32].reshape(32, B, oh2 * ow2).transpose(1, 0, 2).reshape(
        B, 32 * oh2 * ow2)

    # fc1(+ReLU) -> fc2, fused in a single Pallas call.
    out = fused_fc(flat, prep["fc1_w"], prep["fc1_b"],
                   prep["fc2_w"], prep["fc2_b"])
    return out[:, :out_channels]


# ----------------------------------------------------------------------------
# Pure-JAX reference for the correctness check
# ----------------------------------------------------------------------------
def cnn_forward_ref(params, x):
    def conv(x, w, b, s):
        y = jax.lax.conv_general_dilated(
            x, w, window_strides=(s, s), padding="VALID",
            dimension_numbers=("NCHW", "OIHW", "NCHW"))
        return jnp.maximum(y + b[None, :, None, None], 0.0)

    h = conv(x, params["conv1_w"], params["conv1_b"], 4)
    h = conv(h, params["conv2_w"], params["conv2_b"], 2)
    h = h.reshape(-1, 32 * 9 * 9)
    h = jnp.maximum(h @ params["fc1_w"].T + params["fc1_b"], 0.0)
    return h @ params["fc2_w"].T + params["fc2_b"]


if __name__ == "__main__":
    # The module's flatten to 32*9*9 forces 84x84 spatial input.
    batch, in_channels, out_channels = 2, 4, 6
    key = jax.random.PRNGKey(0)
    kx, kp = jax.random.split(key)

    x = jax.random.normal(kx, (batch, in_channels, 84, 84), jnp.float32)
    params = init_cnn_params(kp, in_channels, out_channels)
    prep = prepare_params(params)                 # one-time weight prep

    fwd = jax.jit(cnn_forward, static_argnames=("out_channels",))
    out = jax.block_until_ready(fwd(prep, x, out_channels=out_channels))
    assert out.shape == (batch, out_channels), out.shape

    ref = jax.block_until_ready(cnn_forward_ref(params, x))
    assert jnp.allclose(out, ref, atol=1e-3, rtol=1e-3), \
        float(jnp.abs(out - ref).max())

    print("KERNEL_OK")
</pallas_src>

<mosaic_0001>
module attributes {stable_mosaic.version = 11 : i64} {
  func.func @_conv_mm_kernel(%arg0: i32, %arg1: memref<16x256xf32, #tpu.memory_space<vmem>>, %arg2: memref<256x512xf32, #tpu.memory_space<vmem>>, %arg3: memref<16x1xf32, #tpu.memory_space<vmem>>, %arg4: memref<16x512xf32, #tpu.memory_space<vmem>>) attributes {dimension_semantics = [#tpu.dimension_semantics<parallel>], iteration_bounds = array<i64: 2>, scalar_prefetch = 0 : i64, scratch_operands = 0 : i64, tpu.core_type = #tpu.core_type<tc>, window_params = [{pipeline_mode = #tpu.pipeline_mode<synchronous>, transform_indices = @transform_0, window_bounds = array<i64: 16, 256>}, {transform_indices = @transform_1, window_bounds = array<i64: 256, 512>}, {pipeline_mode = #tpu.pipeline_mode<synchronous>, transform_indices = @transform_2, window_bounds = array<i64: 16, 1>}, {transform_indices = @transform_3, window_bounds = array<i64: 16, 512>}]} {
    %c0 = arith.constant 0 : index
    %c0_0 = arith.constant 0 : index
    %0 = vector.load %arg1[%c0, %c0_0] : memref<16x256xf32, #tpu.memory_space<vmem>>, vector<16x256xf32>
    %c0_1 = arith.constant 0 : index
    %c0_2 = arith.constant 0 : index
    %1 = vector.load %arg2[%c0_1, %c0_2] : memref<256x512xf32, #tpu.memory_space<vmem>>, vector<256x512xf32>
    %cst = arith.constant dense<0.000000e+00> : vector<16x512xf32>
    %2 = tpu.matmul %0, %1, %cst {dimension_numbers = #tpu.dot_dimension_numbers<[1], [0], [0], [1], [0, 0, 1, 1], [], []>} : vector<16x256xf32>, vector<256x512xf32>, vector<16x512xf32> -> vector<16x512xf32>
    %c0_3 = arith.constant 0 : index
    %c0_4 = arith.constant 0 : index
    %3 = vector.load %arg3[%c0_3, %c0_4] : memref<16x1xf32, #tpu.memory_space<vmem>>, vector<16x1xf32>
    %4 = vector.broadcast %3 : vector<16x1xf32> to vector<16x512xf32>
    %5 = arith.addf %2, %4 : vector<16x512xf32>
    %cst_5 = arith.constant 0.000000e+00 : f32
    %6 = vector.broadcast %cst_5 : f32 to vector<16x512xf32>
    %7 = arith.maximumf %5, %6 : vector<16x512xf32>
    %c0_6 = arith.constant 0 : index
    %c0_7 = arith.constant 0 : index
    %8 = vector.load %arg4[%c0_6, %c0_7] : memref<16x512xf32, #tpu.memory_space<vmem>>, vector<16x512xf32>
    tpu.vector_store %arg4[%c0_6, %c0_7], %7 {strides = array<i32>} : memref<16x512xf32, #tpu.memory_space<vmem>>, vector<16x512xf32>,
    return
  }
  func.func @transform_0(%arg0: i32) -> (i32, i32) {
    %c0_i32 = arith.constant 0 : i32
    %c0_i32_0 = arith.constant 0 : i32
    %c0_i32_1 = arith.constant 0 : i32
    return %c0_i32, %c0_i32_0 : i32, i32
  }
  func.func @transform_1(%arg0: i32) -> (i32, i32) {
    %c0_i32 = arith.constant 0 : i32
    %c0_i32_0 = arith.constant 0 : i32
    return %c0_i32, %arg0 : i32, i32
  }
  func.func @transform_2(%arg0: i32) -> (i32, i32) {
    %c0_i32 = arith.constant 0 : i32
    %c0_i32_0 = arith.constant 0 : i32
    %c0_i32_1 = arith.constant 0 : i32
    return %c0_i32, %c0_i32_0 : i32, i32
  }
  func.func @transform_3(%arg0: i32) -> (i32, i32) {
    %c0_i32 = arith.constant 0 : i32
    %c0_i32_0 = arith.constant 0 : i32
    return %c0_i32, %arg0 : i32, i32
  }
}

module attributes {stable_mosaic.version = 11 : i64} {
  func.func @_conv_mm_kernel(%arg0: i32, %arg1: memref<32x256xf32, #tpu.memory_space<vmem>>, %arg2: memref<256x128xf32, #tpu.memory_space<vmem>>, %arg3: memref<32x1xf32, #tpu.memory_space<vmem>>, %arg4: memref<32x128xf32, #tpu.memory_space<vmem>>) attributes {dimension_semantics = [#tpu.dimension_semantics<parallel>], iteration_bounds = array<i64: 2>, scalar_prefetch = 0 : i64, scratch_operands = 0 : i64, tpu.core_type = #tpu.core_type<tc>, window_params = [{pipeline_mode = #tpu.pipeline_mode<synchronous>, transform_indices = @transform_0, window_bounds = array<i64: 32, 256>}, {transform_indices = @transform_1, window_bounds = array<i64: 256, 128>}, {pipeline_mode = #tpu.pipeline_mode<synchronous>, transform_indices = @transform_2, window_bounds = array<i64: 32, 1>}, {transform_indices = @transform_3, window_bounds = array<i64: 32, 128>}]} {
    %c0 = arith.constant 0 : index
    %c0_0 = arith.constant 0 : index
    %0 = vector.load %arg1[%c0, %c0_0] : memref<32x256xf32, #tpu.memory_space<vmem>>, vector<32x256xf32>
    %c0_1 = arith.constant 0 : index
    %c0_2 = arith.constant 0 : index
    %1 = vector.load %arg2[%c0_1, %c0_2] : memref<256x128xf32, #tpu.memory_space<vmem>>, vector<256x128xf32>
    %cst = arith.constant dense<0.000000e+00> : vector<32x128xf32>
    %2 = tpu.matmul %0, %1, %cst {dimension_numbers = #tpu.dot_dimension_numbers<[1], [0], [0], [1], [0, 0, 1, 1], [], []>} : vector<32x256xf32>, vector<256x128xf32>, vector<32x128xf32> -> vector<32x128xf32>
    %c0_3 = arith.constant 0 : index
    %c0_4 = arith.constant 0 : index
    %3 = vector.load %arg3[%c0_3, %c0_4] : memref<32x1xf32, #tpu.memory_space<vmem>>, vector<32x1xf32>
    %4 = vector.broadcast %3 : vector<32x1xf32> to vector<32x128xf32>
    %5 = arith.addf %2, %4 : vector<32x128xf32>
    %cst_5 = arith.constant 0.000000e+00 : f32
    %6 = vector.broadcast %cst_5 : f32 to vector<32x128xf32>
    %7 = arith.maximumf %5, %6 : vector<32x128xf32>
    %c0_6 = arith.constant 0 : index
    %c0_7 = arith.constant 0 : index
    %8 = vector.load %arg4[%c0_6, %c0_7] : memref<32x128xf32, #tpu.memory_space<vmem>>, vector<32x128xf32>
    tpu.vector_store %arg4[%c0_6, %c0_7], %7 {strides = array<i32>} : memref<32x128xf32, #tpu.memory_space<vmem>>, vector<32x128xf32>,
    return
  }
  func.func @transform_0(%arg0: i32) -> (i32, i32) {
    %c0_i32 = arith.constant 0 : i32
    %c0_i32_0 = arith.constant 0 : i32
    %c0_i32_1 = arith.constant 0 : i32
    return %c0_i32, %c0_i32_0 : i32, i32
  }
  func.func @transform_1(%arg0: i32) -> (i32, i32) {
    %c0_i32 = arith.constant 0 : i32
    %c0_i32_0 = arith.constant 0 : i32
    return %c0_i32, %arg0 : i32, i32
  }
  func.func @transform_2(%arg0: i32) -> (i32, i32) {
    %c0_i32 = arith.constant 0 : i32
    %c0_i32_0 = arith.constant 0 : i32
    %c0_i32_1 = arith.constant 0 : i32
    return %c0_i32, %c0_i32_0 : i32, i32
  }
  func.func @transform_3(%arg0: i32) -> (i32, i32) {
    %c0_i32 = arith.constant 0 : i32
    %c0_i32_0 = arith.constant 0 : i32
    return %c0_i32, %arg0 : i32, i32
  }
}

module attributes {stable_mosaic.version = 11 : i64} {
  func.func @_fused_fc_kernel(%arg0: i32, %arg1: memref<8x2592xf32, #tpu.memory_space<vmem>>, %arg2: memref<2592x256xf32, #tpu.memory_space<vmem>>, %arg3: memref<1x256xf32, #tpu.memory_space<vmem>>, %arg4: memref<256x128xf32, #tpu.memory_space<vmem>>, %arg5: memref<1x128xf32, #tpu.memory_space<vmem>>, %arg6: memref<8x128xf32, #tpu.memory_space<vmem>>) attributes {dimension_semantics = [#tpu.dimension_semantics<parallel>], iteration_bounds = array<i64: 1>, scalar_prefetch = 0 : i64, scratch_operands = 0 : i64, tpu.core_type = #tpu.core_type<tc>, window_params = [{transform_indices = @transform_0, window_bounds = array<i64: 8, 2592>}, {pipeline_mode = #tpu.pipeline_mode<synchronous>, transform_indices = @transform_1, window_bounds = array<i64: 2592, 256>}, {pipeline_mode = #tpu.pipeline_mode<synchronous>, transform_indices = @transform_2, window_bounds = array<i64: 1, 256>}, {pipeline_mode = #tpu.pipeline_mode<synchronous>, transform_indices = @transform_3, window_bounds = array<i64: 256, 128>}, {pipeline_mode = #tpu.pipeline_mode<synchronous>, transform_indices = @transform_4, window_bounds = array<i64: 1, 128>}, {transform_indices = @transform_5, window_bounds = array<i64: 8, 128>}]} {
    %c0 = arith.constant 0 : index
    %c0_0 = arith.constant 0 : index
    %0 = vector.load %arg1[%c0, %c0_0] : memref<8x2592xf32, #tpu.memory_space<vmem>>, vector<8x2592xf32>
    %c0_1 = arith.constant 0 : index
    %c0_2 = arith.constant 0 : index
    %1 = vector.load %arg2[%c0_1, %c0_2] : memref<2592x256xf32, #tpu.memory_space<vmem>>, vector<2592x256xf32>
    %cst = arith.constant dense<0.000000e+00> : vector<8x256xf32>
    %2 = tpu.matmul %0, %1, %cst {dimension_numbers = #tpu.dot_dimension_numbers<[1], [0], [0], [1], [0, 0, 1, 1], [], []>} : vector<8x2592xf32>, vector<2592x256xf32>, vector<8x256xf32> -> vector<8x256xf32>
    %c0_3 = arith.constant 0 : index
    %c0_4 = arith.constant 0 : index
    %3 = vector.load %arg3[%c0_3, %c0_4] : memref<1x256xf32, #tpu.memory_space<vmem>>, vector<1x256xf32>
    %4 = vector.broadcast %3 : vector<1x256xf32> to vector<8x256xf32>
    %5 = arith.addf %2, %4 : vector<8x256xf32>
    %cst_5 = arith.constant 0.000000e+00 : f32
    %6 = vector.broadcast %cst_5 : f32 to vector<8x256xf32>
    %7 = arith.maximumf %5, %6 : vector<8x256xf32>
    %c0_6 = arith.constant 0 : index
    %c0_7 = arith.constant 0 : index
    %8 = vector.load %arg4[%c0_6, %c0_7] : memref<256x128xf32, #tpu.memory_space<vmem>>, vector<256x128xf32>
    %cst_8 = arith.constant dense<0.000000e+00> : vector<8x128xf32>
    %9 = tpu.matmul %7, %8, %cst_8 {dimension_numbers = #tpu.dot_dimension_numbers<[1], [0], [0], [1], [0, 0, 1, 1], [], []>} : vector<8x256xf32>, vector<256x128xf32>, vector<8x128xf32> -> vector<8x128xf32>
    %c0_9 = arith.constant 0 : index
    %c0_10 = arith.constant 0 : index
    %10 = vector.load %arg5[%c0_9, %c0_10] : memref<1x128xf32, #tpu.memory_space<vmem>>, vector<1x128xf32>
    %11 = vector.broadcast %10 : vector<1x128xf32> to vector<8x128xf32>
    %12 = arith.addf %9, %11 : vector<8x128xf32>
    %c0_11 = arith.constant 0 : index
    %c0_12 = arith.constant 0 : index
    %13 = vector.load %arg6[%c0_11, %c0_12] : memref<8x128xf32, #tpu.memory_space<vmem>>, vector<8x128xf32>
    tpu.vector_store %arg6[%c0_11, %c0_12], %12 {strides = array<i32>} : memref<8x128xf32, #tpu.memory_space<vmem>>, vector<8x128xf32>,
    return
  }
  func.func @transform_0(%arg0: i32) -> (i32, i32) {
    %c0_i32 = arith.constant 0 : i32
    %c0_i32_0 = arith.constant 0 : i32
    return %arg0, %c0_i32 : i32, i32
  }
  func.func @transform_1(%arg0: i32) -> (i32, i32) {
    %c0_i32 = arith.constant 0 : i32
    %c0_i32_0 = arith.constant 0 : i32
    %c0_i32_1 = arith.constant 0 : i32
    return %c0_i32, %c0_i32_0 : i32, i32
  }
  func.func @transform_2(%arg0: i32) -> (i32, i32) {
    %c0_i32 = arith.constant 0 : i32
    %c0_i32_0 = arith.constant 0 : i32
    %c0_i32_1 = arith.constant 0 : i32
    return %c0_i32, %c0_i32_0 : i32, i32
  }
  func.func @transform_3(%arg0: i32) -> (i32, i32) {
    %c0_i32 = arith.constant 0 : i32
    %c0_i32_0 = arith.constant 0 : i32
    %c0_i32_1 = arith.constant 0 : i32
    return %c0_i32, %c0_i32_0 : i32, i32
  }
  func.func @transform_4(%arg0: i32) -> (i32, i32) {
    %c0_i32 = arith.constant 0 : i32
    %c0_i32_0 = arith.constant 0 : i32
    %c0_i32_1 = arith.constant 0 : i32
    return %c0_i32, %c0_i32_0 : i32, i32
  }
  func.func @transform_5(%arg0: i32) -> (i32, i32) {
    %c0_i32 = arith.constant 0 : i32
    %c0_i32_0 = arith.constant 0 : i32
    return %arg0, %c0_i32 : i32, i32
  }
}

</mosaic_0001>

<bundles_post_ra>
// kernel: cnn_forward.3
= control target key start
LH: loop header
LB: loop body
LE: loop exit
PB: predicated region body
PF: predicated region fallthrough
CT: control target
= control target key end

     0   :  { %s2582_s12 = smov 0   ;;  %s2584_s13 = smov 0   ;;  %s3978_s0 = inlined_call_operand.vmem [shape: f32[16,256], index: 0, kind: input, shape index: {}]   ;;  %s3979_s1 = inlined_call_operand.vmem [shape: f32[256,800], index: 1, kind: input, shape index: {}]   ;;  %s3980_s2 = inlined_call_operand.vmem [shape: f32[16,1], index: 2, kind: input, shape index: {}]   ;;  %s3981_s3 = inlined_call_operand.vmem [shape: f32[16,800], index: 3, kind: output, shape index: {}]  }
   0x1   :  { %s2586_s14 = smov 0  }
   0x2 LB: > { %s2598_s15 = sadd.s32 4294967295, %s2427_s14   ;;  %s2601_s16 = sadd.s32 1, %s2427_s14   ;;  %s2427_s14 = sphi %s2586_s14, %s4015_s14   ;;  %s2423_s13 = sphi %s2584_s13, %s4014_s13   ;;  %s2419_s12 = sphi %s2582_s12, %s4013_s12  }
   0x3   : > { %s38_s17 = ssub.s32 %s2427_s14, %s2601_s16  ;;  %s41_s18 = sadd.s32 1, %s2423_s13 }
   0x4   : > { %p39_p0 = scmp.eq.s32.totalorder %s38_s17, 0  ;;  %p48_p1 = scmp.ne.s32.totalorder %s2423_s13, %s2419_s12 }
   0x5   : > { %p49_p2 = scmp.eq.s32.totalorder %s2427_s14, 0  ;;  %p99_p3 = scmp.eq.s32.totalorder %s2598_s15, 1 }
   0x6   : > { %s2611_s19 = scalar_select %p39_p0, %s2423_s13, %s41_s18  }
   0x7   : > { %p50_p4 = por %p49_p2, %p48_p1  ;;  %p2613_p5 = por %p99_p3, %p48_p1 }
   0x8   : > { %p1793_p6 = scmp.ge.s32.totalorder %s2427_s14, 2 }
   0xa   : > { %127 = sbr.rel (%p1793_p6) target bundleno = 259 (0x103), region = 24 }
  0x11   : > { %130 = sbr.rel (!%p50_p4) target bundleno = 259 (0x103), region = 28  ;;  %s132_s21 = sand.u32 (%p50_p4), 1, %s2423_s13  }
  0x12   : > { %s1795_s22 = sshll.u32 (%p50_p4), %s2427_s14, 2  ;;  %s1794_s23 = sshll.u32 (%p50_p4), %s132_s21, 10 }
  0x13   : > { %s136_s24 = ssub.s32 (%p50_p4), 7, %s1795_s22  ;;  %s1853_s25 = sshll.u32 (%p50_p4), %s2427_s14, 5 }
  0x14   : > { %p137_p7 = scmp.lt.s32.totalorder (%p50_p4), %s136_s24, 4  ;;  %s2624_s28 = scalar_lea.vmem (%p50_p4), %s3979_s1, %s1853_s25  }
  0x15   : > { %s2628_s4 = scalar_lea.vmem (%p50_p4), [#allocation2], %s1794_s23  }
  0x18   : > { %s4017_s24 = smov (!%p137_p7, %s136_s24), 4 }
  0x19   : > { %s1796_s29 = sshll.u32 %s4017_s24, 12  ;;  %s2626_s30 = sshll.u32 %s4017_s24, 3 }
  0x1a   : > { %p1800_p8 = scmp.eq.s32.totalorder %s1796_s29, 0 }
  0x1b   : > { %p147_p9 = scmp.lt.u32.totalorder (!%p1800_p8), %s2626_s30, 8 }
  0x1c   : > { %146 = sbr.rel (%p1800_p8) target bundleno = 259 (0x103), region = 32 }
  0x23   : > { %150 = sbr.rel (%p147_p9) target bundleno = 224 (0xe0), region = 36  ;;  %s2632_s5 = sand.u32 (!%p147_p9), 7, %s2626_s30  }
  0x24   : > { %p228_p10 = scmp.eq.s32.totalorder (!%p147_p9), %s2632_s5, 0  ;;  %p1801_p11 = scmp.ne.s32.totalorder (!%p147_p9), %s2632_s5, 0 }
  0x2a   : > { %231 = sbr.rel (%p1801_p11) target bundleno = 116 (0x74), region = 51  ;;  %s232_s6 = sshrl.u32 (!%p1801_p11), %s2626_s30, 3 }
  0x2b   : > { %s2639_s7 = sshrl.u32 (!%p1801_p11), %s232_s6, 1 }
  0x2c   : > { %p1802_p12 = scmp.le.s32.totalorder (!%p1801_p11), %s2639_s7, 0 }
  0x31   : > { %1663 = sbr.rel (%p1802_p12) target bundleno = 89 (0x59), region = 229  ;;  %s3983_s8 = smov (!%p1802_p12), %s2628_s4 }
  0x32   : > { %s3984_s9 = smov (!%p1802_p12), %s2624_s28  ;;  %s2648_s10 = smov (!%p1802_p12), 0  }
  0x33   : > { %s2650_s11 = smov (!%p1802_p12), 0  }
  0x38 LB: >> { %v245_v0 = vld [vmem:[%s2435_s9] sm:$0xff]  ;;  %v247_v1 = vld [vmem:[%s2435_s9 + $0x8] sm:$0xff]  ;;  %v249_v2 = vld [vmem:[%s2435_s9 + $0x38] sm:$0xff]  ;;  %s373_s17 = sadd.s32 1, %s2439_s10  ;;  %s239_s11 = sadd.s32 1, %s2443_s11   ;;  %s2443_s11 = sphi %s2650_s11, %s239_s11   ;;  %s2439_s10 = sphi %s2648_s10, %s3987_s10   ;;  %s2435_s9 = sphi %s3984_s9, %s3986_s9   ;;  %s2431_s8 = sphi %s3983_s8, %s3985_s8  }
  0x39   : >> { %246 = vst [vmem:[%s2431_s8] sm:$0xff] %v245_v0  ;;  %248 = vst [vmem:[%s2431_s8 + $0x8] sm:$0xff] %v247_v1  ;;  %v251_v3 = vld [vmem:[%s2435_s9 + $0x40] sm:$0xff]  ;;  %v253_v4 = vld [vmem:[%s2435_s9 + $0x70] sm:$0xff]  ;;  %p374_p13 = scmp.ge.s32.totalorder %s373_s17, %s2639_s7  ;;  %p238_p0 = scmp.ge.s32.totalorder %s239_s11, %s2639_s7 }
  0x3a   : >> { %250 = vst [vmem:[%s2431_s8 + $0x20] sm:$0xff] %v249_v2  ;;  %v255_v5 = vld [vmem:[%s2435_s9 + $0x78] sm:$0xff]  ;;  %252 = vst [vmem:[%s2431_s8 + $0x28] sm:$0xff] %v251_v3  ;;  %v257_v6 = vld [vmem:[%s2435_s9 + $0xa8] sm:$0xff] }
  0x3b   : >> { %254 = vst [vmem:[%s2431_s8 + $0x40] sm:$0xff] %v253_v4  ;;  %256 = vst [vmem:[%s2431_s8 + $0x48] sm:$0xff] %v255_v5  ;;  %v259_v7 = vld [vmem:[%s2435_s9 + $0xb0] sm:$0xff]  ;;  %v261_v8 = vld [vmem:[%s2435_s9 + $0xe0] sm:$0xff]  ;;  %s4019_s17 = smov (%p374_p13, %s373_s17), 0 }
  0x3c   : >> { %258 = vst [vmem:[%s2431_s8 + $0x60] sm:$0xff] %v257_v6  ;;  %260 = vst [vmem:[%s2431_s8 + $0x68] sm:$0xff] %v259_v7  ;;  %v263_v9 = vld [vmem:[%s2435_s9 + $0xe8] sm:$0xff]  ;;  %v265_v10 = vld [vmem:[%s2435_s9 + $0x118] sm:$0xff]  ;;  %s1803_s18 = sshll.u32 %s4019_s17, 4  ;;  %s3987_s10 = smov %s4019_s17 }
  0x3d   : >> { %262 = vst [vmem:[%s2431_s8 + $0x80] sm:$0xff] %v261_v8  ;;  %v267_v11 = vld [vmem:[%s2435_s9 + $0x120] sm:$0xff]  ;;  %264 = vst [vmem:[%s2431_s8 + $0x88] sm:$0xff] %v263_v9  ;;  %v269_v12 = vld [vmem:[%s2435_s9 + $0x150] sm:$0xff]  ;;  %s2706_s21 = scalar_lea.vmem %s2624_s28, %s1803_s18   ;;  %s2709_s22 = scalar_lea.vmem %s2628_s4, %s1803_s18 [#allocation2]  }
  0x3e   : >> { %266 = vst [vmem:[%s2431_s8 + $0xa0] sm:$0xff] %v265_v10  ;;  %268 = vst [vmem:[%s2431_s8 + $0xa8] sm:$0xff] %v267_v11  ;;  %v271_v13 = vld [vmem:[%s2435_s9 + $0x158] sm:$0xff]  ;;  %v273_v14 = vld [vmem:[%s2435_s9 + $0x188] sm:$0xff] }
  0x3f   : >> { %270 = vst [vmem:[%s2431_s8 + $0xc0] sm:$0xff] %v269_v12  ;;  %272 = vst [vmem:[%s2431_s8 + $0xc8] sm:$0xff] %v271_v13  ;;  %v275_v15 = vld [vmem:[%s2435_s9 + $0x190] sm:$0xff]  ;;  %v277_v16 = vld [vmem:[%s2435_s9 + $0x1c0] sm:$0xff] }
  0x40   : >> { %274 = vst [vmem:[%s2431_s8 + $0xe0] sm:$0xff] %v273_v14  ;;  %v279_v17 = vld [vmem:[%s2435_s9 + $0x1c8] sm:$0xff]  ;;  %276 = vst [vmem:[%s2431_s8 + $0xe8] sm:$0xff] %v275_v15  ;;  %v281_v18 = vld [vmem:[%s2435_s9 + $0x1f8] sm:$0xff] }
  0x41   : >> { %278 = vst [vmem:[%s2431_s8 + $0x100] sm:$0xff] %v277_v16  ;;  %280 = vst [vmem:[%s2431_s8 + $0x108] sm:$0xff] %v279_v17  ;;  %v283_v19 = vld [vmem:[%s2435_s9 + $0x200] sm:$0xff]  ;;  %v285_v20 = vld [vmem:[%s2435_s9 + $0x230] sm:$0xff] }
  0x42   : >> { %282 = vst [vmem:[%s2431_s8 + $0x120] sm:$0xff] %v281_v18  ;;  %284 = vst [vmem:[%s2431_s8 + $0x128] sm:$0xff] %v283_v19  ;;  %v287_v21 = vld [vmem:[%s2435_s9 + $0x238] sm:$0xff]  ;;  %v289_v22 = vld [vmem:[%s2435_s9 + $0x268] sm:$0xff] }
  0x43   : >> { %286 = vst [vmem:[%s2431_s8 + $0x140] sm:$0xff] %v285_v20  ;;  %v291_v23 = vld [vmem:[%s2435_s9 + $0x270] sm:$0xff]  ;;  %288 = vst [vmem:[%s2431_s8 + $0x148] sm:$0xff] %v287_v21  ;;  %v293_v24 = vld [vmem:[%s2435_s9 + $0x2a0] sm:$0xff] }
  0x44   : >> { %290 = vst [vmem:[%s2431_s8 + $0x160] sm:$0xff] %v289_v22  ;;  %292 = vst [vmem:[%s2431_s8 + $0x168] sm:$0xff] %v291_v23  ;;  %v295_v25 = vld [vmem:[%s2435_s9 + $0x2a8] sm:$0xff]  ;;  %v297_v26 = vld [vmem:[%s2435_s9 + $0x2d8] sm:$0xff] }
  0x45   : >> { %294 = vst [vmem:[%s2431_s8 + $0x180] sm:$0xff] %v293_v24  ;;  %296 = vst [vmem:[%s2431_s8 + $0x188] sm:$0xff] %v295_v25  ;;  %v299_v27 = vld [vmem:[%s2435_s9 + $0x2e0] sm:$0xff]  ;;  %v301_v28 = vld [vmem:[%s2435_s9 + $0x310] sm:$0xff] }
  0x46   : >> { %298 = vst [vmem:[%s2431_s8 + $0x1a0] sm:$0xff] %v297_v26  ;;  %v303_v29 = vld [vmem:[%s2435_s9 + $0x318] sm:$0xff]  ;;  %300 = vst [vmem:[%s2431_s8 + $0x1a8] sm:$0xff] %v299_v27  ;;  %v305_v30 = vld [vmem:[%s2435_s9 + $0x348] sm:$0xff] }
  0x47   : >> { %302 = vst [vmem:[%s2431_s8 + $0x1c0] sm:$0xff] %v301_v28  ;;  %304 = vst [vmem:[%s2431_s8 + $0x1c8] sm:$0xff] %v303_v29  ;;  %v307_v31 = vld [vmem:[%s2435_s9 + $0x350] sm:$0xff]  ;;  %v309_v32 = vld [vmem:[%s2435_s9 + $0x380] sm:$0xff] }
  0x48   : >> { %306 = vst [vmem:[%s2431_s8 + $0x1e0] sm:$0xff] %v305_v30  ;;  %308 = vst [vmem:[%s2431_s8 + $0x1e8] sm:$0xff] %v307_v31  ;;  %v311_v33 = vld [vmem:[%s2435_s9 + $0x388] sm:$0xff]  ;;  %v313_v34 = vld [vmem:[%s2435_s9 + $0x3b8] sm:$0xff] }
  0x49   : >> { %310 = vst [vmem:[%s2431_s8 + $0x200] sm:$0xff] %v309_v32  ;;  %v315_v35 = vld [vmem:[%s2435_s9 + $0x3c0] sm:$0xff]  ;;  %312 = vst [vmem:[%s2431_s8 + $0x208] sm:$0xff] %v311_v33  ;;  %v317_v36 = vld [vmem:[%s2435_s9 + $0x3f0] sm:$0xff] }
  0x4a   : >> { %314 = vst [vmem:[%s2431_s8 + $0x220] sm:$0xff] %v313_v34  ;;  %316 = vst [vmem:[%s2431_s8 + $0x228] sm:$0xff] %v315_v35  ;;  %v319_v37 = vld [vmem:[%s2435_s9 + $0x3f8] sm:$0xff]  ;;  %v321_v38 = vld [vmem:[%s2435_s9 + $0x428] sm:$0xff] }
  0x4b   : >> { %318 = vst [vmem:[%s2431_s8 + $0x240] sm:$0xff] %v317_v36  ;;  %320 = vst [vmem:[%s2431_s8 + $0x248] sm:$0xff] %v319_v37  ;;  %v323_v39 = vld [vmem:[%s2435_s9 + $0x430] sm:$0xff]  ;;  %v325_v40 = vld [vmem:[%s2435_s9 + $0x460] sm:$0xff] }
  0x4c   : >> { %322 = vst [vmem:[%s2431_s8 + $0x260] sm:$0xff] %v321_v38  ;;  %v327_v41 = vld [vmem:[%s2435_s9 + $0x468] sm:$0xff]  ;;  %324 = vst [vmem:[%s2431_s8 + $0x268] sm:$0xff] %v323_v39  ;;  %v329_v42 = vld [vmem:[%s2435_s9 + $0x498] sm:$0xff] }
  0x4d   : >> { %326 = vst [vmem:[%s2431_s8 + $0x280] sm:$0xff] %v325_v40  ;;  %328 = vst [vmem:[%s2431_s8 + $0x288] sm:$0xff] %v327_v41  ;;  %v331_v43 = vld [vmem:[%s2435_s9 + $0x4a0] sm:$0xff]  ;;  %v333_v44 = vld [vmem:[%s2435_s9 + $0x4d0] sm:$0xff] }
  0x4e   : >> { %330 = vst [vmem:[%s2431_s8 + $0x2a0] sm:$0xff] %v329_v42  ;;  %332 = vst [vmem:[%s2431_s8 + $0x2a8] sm:$0xff] %v331_v43  ;;  %v335_v45 = vld [vmem:[%s2435_s9 + $0x4d8] sm:$0xff]  ;;  %v337_v46 = vld [vmem:[%s2435_s9 + $0x508] sm:$0xff] }
  0x4f   : >> { %334 = vst [vmem:[%s2431_s8 + $0x2c0] sm:$0xff] %v333_v44  ;;  %v339_v47 = vld [vmem:[%s2435_s9 + $0x510] sm:$0xff]  ;;  %336 = vst [vmem:[%s2431_s8 + $0x2c8] sm:$0xff] %v335_v45  ;;  %v341_v48 = vld [vmem:[%s2435_s9 + $0x540] sm:$0xff] }
  0x50   : >> { %338 = vst [vmem:[%s2431_s8 + $0x2e0] sm:$0xff] %v337_v46  ;;  %340 = vst [vmem:[%s2431_s8 + $0x2e8] sm:$0xff] %v339_v47  ;;  %v343_v49 = vld [vmem:[%s2435_s9 + $0x548] sm:$0xff]  ;;  %v345_v50 = vld [vmem:[%s2435_s9 + $0x578] sm:$0xff] }
  0x51   : >> { %342 = vst [vmem:[%s2431_s8 + $0x300] sm:$0xff] %v341_v48  ;;  %344 = vst [vmem:[%s2431_s8 + $0x308] sm:$0xff] %v343_v49  ;;  %v347_v51 = vld [vmem:[%s2435_s9 + $0x580] sm:$0xff]  ;;  %v349_v52 = vld [vmem:[%s2435_s9 + $0x5b0] sm:$0xff] }
  0x52   : >> { %346 = vst [vmem:[%s2431_s8 + $0x320] sm:$0xff] %v345_v50  ;;  %v351_v53 = vld [vmem:[%s2435_s9 + $0x5b8] sm:$0xff]  ;;  %348 = vst [vmem:[%s2431_s8 + $0x328] sm:$0xff] %v347_v51  ;;  %v353_v54 = vld [vmem:[%s2435_s9 + $0x5e8] sm:$0xff]  ;;  %241 = sbr.rel (!%p238_p0) target bundleno = 56 (0x38), region = 235 }
  0x53   : >> { %350 = vst [vmem:[%s2431_s8 + $0x340] sm:$0xff] %v349_v52  ;;  %352 = vst [vmem:[%s2431_s8 + $0x348] sm:$0xff] %v351_v53  ;;  %v355_v55 = vld [vmem:[%s2435_s9 + $0x5f0] sm:$0xff]  ;;  %v357_v56 = vld [vmem:[%s2435_s9 + $0x620] sm:$0xff] }
  0x54   : >> { %354 = vst [vmem:[%s2431_s8 + $0x360] sm:$0xff] %v353_v54  ;;  %356 = vst [vmem:[%s2431_s8 + $0x368] sm:$0xff] %v355_v55  ;;  %v359_v57 = vld [vmem:[%s2435_s9 + $0x628] sm:$0xff]  ;;  %v361_v58 = vld [vmem:[%s2435_s9 + $0x658] sm:$0xff] }
  0x55   : >> { %358 = vst [vmem:[%s2431_s8 + $0x380] sm:$0xff] %v357_v56  ;;  %v363_v59 = vld [vmem:[%s2435_s9 + $0x660] sm:$0xff]  ;;  %360 = vst [vmem:[%s2431_s8 + $0x388] sm:$0xff] %v359_v57  ;;  %v365_v60 = vld [vmem:[%s2435_s9 + $0x690] sm:$0xff] }
  0x56   : >> { %362 = vst [vmem:[%s2431_s8 + $0x3a0] sm:$0xff] %v361_v58  ;;  %364 = vst [vmem:[%s2431_s8 + $0x3a8] sm:$0xff] %v363_v59  ;;  %v367_v61 = vld [vmem:[%s2435_s9 + $0x698] sm:$0xff]  ;;  %v369_v62 = vld [vmem:[%s2435_s9 + $0x6c8] sm:$0xff] }
  0x57   : >> { %366 = vst [vmem:[%s2431_s8 + $0x3c0] sm:$0xff] %v365_v60  ;;  %368 = vst [vmem:[%s2431_s8 + $0x3c8] sm:$0xff] %v367_v61  ;;  %v371_v63 = vld [vmem:[%s2435_s9 + $0x6d0] sm:$0xff]  ;;  %s3986_s9 = smov %s2706_s21 }
  0x58   : >> { %370 = vst [vmem:[%s2431_s8 + $0x3e0] sm:$0xff] %v369_v62  ;;  %372 = vst [vmem:[%s2431_s8 + $0x3e8] sm:$0xff] %v371_v63  ;;  %s3985_s8 = smov %s2709_s22 }
  0x59 PF: > { %s2815_s23 = sand.u32 1, %s232_s6   ;;  %s1854_s24 = sshll.u32 %s2639_s7, 8 }
  0x5a   : > { %s384_s25 = sshra.s32 %s1854_s24, 4  ;;  %p1808_p1 = scmp.le.s32.totalorder %s2815_s23, 0 }
  0x5b   : > { %s2819_s26 = scalar_lea.vmem %s2624_s28, %s384_s25   ;;  %s2822_s27 = scalar_lea.vmem %s2628_s4, %s384_s25 [#allocation2]  }
  0x5c   : > { %1677 = sbr.rel (%p1808_p1) target bundleno = 116 (0x74), region = 240  ;;  %s3988_s29 = smov (!%p1808_p1), %s2822_s27 }
  0x5d   : > { %s3989_s8 = smov (!%p1808_p1), %s2819_s26  ;;  %s2831_s9 = smov (!%p1808_p1), 0  }
  0x5e   : > { %s2833_s10 = smov (!%p1808_p1), 0  }
  0x63 LB: >> { %v400_v0 = vld [vmem:[%s2451_s8] sm:$0xff]  ;;  %v402_v1 = vld [vmem:[%s2451_s8 + $0x38] sm:$0xff]  ;;  %v404_v2 = vld [vmem:[%s2451_s8 + $0x70] sm:$0xff]  ;;  %s464_s6 = sadd.s32 1, %s2455_s9  ;;  %s394_s10 = sadd.s32 1, %s2459_s10   ;;  %s2459_s10 = sphi %s2833_s10, %s394_s10   ;;  %s2455_s9 = sphi %s2831_s9, %s3992_s9   ;;  %s2451_s8 = sphi %s3989_s8, %s3991_s8   ;;  %s2447_s29 = sphi %s3988_s29, %s3990_s29  }
  0x64   : >> { %401 = vst [vmem:[%s2447_s29] sm:$0xff] %v400_v0  ;;  %403 = vst [vmem:[%s2447_s29 + $0x20] sm:$0xff] %v402_v1  ;;  %v406_v3 = vld [vmem:[%s2451_s8 + $0xa8] sm:$0xff]  ;;  %v408_v4 = vld [vmem:[%s2451_s8 + $0xe0] sm:$0xff]  ;;  %p465_p2 = scmp.ge.s32.totalorder %s464_s6, %s2815_s23  ;;  %p393_p3 = scmp.ge.s32.totalorder %s394_s10, %s2815_s23 }
  0x65   : >> { %405 = vst [vmem:[%s2447_s29 + $0x40] sm:$0xff] %v404_v2  ;;  %v410_v5 = vld [vmem:[%s2451_s8 + $0x118] sm:$0xff]  ;;  %407 = vst [vmem:[%s2447_s29 + $0x60] sm:$0xff] %v406_v3  ;;  %v412_v6 = vld [vmem:[%s2451_s8 + $0x150] sm:$0xff] }
  0x66   : >> { %409 = vst [vmem:[%s2447_s29 + $0x80] sm:$0xff] %v408_v4  ;;  %411 = vst [vmem:[%s2447_s29 + $0xa0] sm:$0xff] %v410_v5  ;;  %v414_v7 = vld [vmem:[%s2451_s8 + $0x188] sm:$0xff]  ;;  %v416_v8 = vld [vmem:[%s2451_s8 + $0x1c0] sm:$0xff]  ;;  %s4021_s6 = smov (%p465_p2, %s464_s6), 0 }
  0x67   : >> { %413 = vst [vmem:[%s2447_s29 + $0xc0] sm:$0xff] %v412_v6  ;;  %415 = vst [vmem:[%s2447_s29 + $0xe0] sm:$0xff] %v414_v7  ;;  %v418_v9 = vld [vmem:[%s2451_s8 + $0x1f8] sm:$0xff]  ;;  %v420_v10 = vld [vmem:[%s2451_s8 + $0x230] sm:$0xff]  ;;  %s1809_s7 = sshll.u32 %s4021_s6, 3  ;;  %s3992_s9 = smov %s4021_s6 }
  0x68   : >> { %417 = vst [vmem:[%s2447_s29 + $0x100] sm:$0xff] %v416_v8  ;;  %v422_v11 = vld [vmem:[%s2451_s8 + $0x268] sm:$0xff]  ;;  %419 = vst [vmem:[%s2447_s29 + $0x120] sm:$0xff] %v418_v9  ;;  %v424_v12 = vld [vmem:[%s2451_s8 + $0x2a0] sm:$0xff]  ;;  %s2889_s11 = scalar_lea.vmem %s2819_s26, %s1809_s7   ;;  %s470_s17 = scalar_lea.vmem %s2822_s27, %s1809_s7 [#allocation2]  }
  0x69   : >> { %421 = vst [vmem:[%s2447_s29 + $0x140] sm:$0xff] %v420_v10  ;;  %423 = vst [vmem:[%s2447_s29 + $0x160] sm:$0xff] %v422_v11  ;;  %v426_v13 = vld [vmem:[%s2451_s8 + $0x2d8] sm:$0xff]  ;;  %v428_v14 = vld [vmem:[%s2451_s8 + $0x310] sm:$0xff] }
  0x6a   : >> { %425 = vst [vmem:[%s2447_s29 + $0x180] sm:$0xff] %v424_v12  ;;  %427 = vst [vmem:[%s2447_s29 + $0x1a0] sm:$0xff] %v426_v13  ;;  %v430_v15 = vld [vmem:[%s2451_s8 + $0x348] sm:$0xff]  ;;  %v432_v16 = vld [vmem:[%s2451_s8 + $0x380] sm:$0xff] }
  0x6b   : >> { %429 = vst [vmem:[%s2447_s29 + $0x1c0] sm:$0xff] %v428_v14  ;;  %v434_v17 = vld [vmem:[%s2451_s8 + $0x3b8] sm:$0xff]  ;;  %431 = vst [vmem:[%s2447_s29 + $0x1e0] sm:$0xff] %v430_v15  ;;  %v436_v18 = vld [vmem:[%s2451_s8 + $0x3f0] sm:$0xff] }
  0x6c   : >> { %433 = vst [vmem:[%s2447_s29 + $0x200] sm:$0xff] %v432_v16  ;;  %435 = vst [vmem:[%s2447_s29 + $0x220] sm:$0xff] %v434_v17  ;;  %v438_v19 = vld [vmem:[%s2451_s8 + $0x428] sm:$0xff]  ;;  %v440_v20 = vld [vmem:[%s2451_s8 + $0x460] sm:$0xff] }
  0x6d   : >> { %437 = vst [vmem:[%s2447_s29 + $0x240] sm:$0xff] %v436_v18  ;;  %439 = vst [vmem:[%s2447_s29 + $0x260] sm:$0xff] %v438_v19  ;;  %v442_v21 = vld [vmem:[%s2451_s8 + $0x498] sm:$0xff]  ;;  %v444_v22 = vld [vmem:[%s2451_s8 + $0x4d0] sm:$0xff]  ;;  %396 = sbr.rel (!%p393_p3) target bundleno = 99 (0x63), region = 246 }
  0x6e   : >> { %441 = vst [vmem:[%s2447_s29 + $0x280] sm:$0xff] %v440_v20  ;;  %v446_v23 = vld [vmem:[%s2451_s8 + $0x508] sm:$0xff]  ;;  %443 = vst [vmem:[%s2447_s29 + $0x2a0] sm:$0xff] %v442_v21  ;;  %v448_v24 = vld [vmem:[%s2451_s8 + $0x540] sm:$0xff] }
  0x6f   : >> { %445 = vst [vmem:[%s2447_s29 + $0x2c0] sm:$0xff] %v444_v22  ;;  %447 = vst [vmem:[%s2447_s29 + $0x2e0] sm:$0xff] %v446_v23  ;;  %v450_v25 = vld [vmem:[%s2451_s8 + $0x578] sm:$0xff]  ;;  %v452_v26 = vld [vmem:[%s2451_s8 + $0x5b0] sm:$0xff] }
  0x70   : >> { %449 = vst [vmem:[%s2447_s29 + $0x300] sm:$0xff] %v448_v24  ;;  %451 = vst [vmem:[%s2447_s29 + $0x320] sm:$0xff] %v450_v25  ;;  %v454_v27 = vld [vmem:[%s2451_s8 + $0x5e8] sm:$0xff]  ;;  %v456_v28 = vld [vmem:[%s2451_s8 + $0x620] sm:$0xff] }
  0x71   : >> { %453 = vst [vmem:[%s2447_s29 + $0x340] sm:$0xff] %v452_v26  ;;  %v458_v29 = vld [vmem:[%s2451_s8 + $0x658] sm:$0xff]  ;;  %455 = vst [vmem:[%s2447_s29 + $0x360] sm:$0xff] %v454_v27  ;;  %v460_v30 = vld [vmem:[%s2451_s8 + $0x690] sm:$0xff] }
  0x72   : >> { %457 = vst [vmem:[%s2447_s29 + $0x380] sm:$0xff] %v456_v28  ;;  %459 = vst [vmem:[%s2447_s29 + $0x3a0] sm:$0xff] %v458_v29  ;;  %v462_v31 = vld [vmem:[%s2451_s8 + $0x6c8] sm:$0xff]  ;;  %s3991_s8 = smov %s2889_s11 }
  0x73   : >> { %461 = vst [vmem:[%s2447_s29 + $0x3c0] sm:$0xff] %v460_v30  ;;  %463 = vst [vmem:[%s2447_s29 + $0x3e0] sm:$0xff] %v462_v31  ;;  %s3990_s29 = smov %s470_s17 }
  0x74 PF: > { %473 = sbr.rel (%p228_p10) target bundleno = 224 (0xe0), region = 69  ;;  %s475_s18 = ssub.s32 (!%p228_p10), %s2626_s30, %s2632_s5 }
  0x75   : > { %s479_s21 = sshrl.u32 (!%p228_p10), %s2626_s30, 3  ;;  %s2935_s22 = scalar_lea.vmem (!%p228_p10), %s2624_s28, %s475_s18 }
  0x76   : > { %s2938_s24 = scalar_lea.vmem (!%p228_p10), %s2628_s4, %s475_s18 [#allocation2]  ;;  %s2942_s25 = sshrl.u32 (!%p228_p10), %s479_s21, 1 }
  0x77   : > { %p1811_p4 = scmp.le.s32.totalorder (!%p228_p10), %s2942_s25, 0 }
  0x7b   : > { %1691 = sbr.rel (%p1811_p4) target bundleno = 163 (0xa3), region = 251  ;;  %s3993_s23 = smov (!%p1811_p4), %s2628_s4 }
  0x7c   : > { %s3994_s26 = smov (!%p1811_p4), %s2624_s28  ;;  %s2951_s27 = smov (!%p1811_p4), 0  }
  0x7d   : > { %s2953_s29 = smov (!%p1811_p4), 0  }
  0x82 LB: >> { %v492_v32 = vld [vmem:[%s2467_s26] sm:$0xff]  ;;  %v494_v33 = vld [vmem:[%s2467_s26 + $0x8] sm:$0xff]  ;;  %v496_v34 = vld [vmem:[%s2467_s26 + $0x38] sm:$0xff]  ;;  %s620_s8 = sadd.s32 1, %s2471_s27  ;;  %s486_s29 = sadd.s32 1, %s2475_s29   ;;  %s2475_s29 = sphi %s2953_s29, %s486_s29   ;;  %s2471_s27 = sphi %s2951_s27, %s3997_s27   ;;  %s2467_s26 = sphi %s3994_s26, %s3996_s26   ;;  %s2463_s23 = sphi %s3993_s23, %s3995_s23  }
  0x83   : >> { %493 = vst [vmem:[%s2463_s23] sm:$0xff] %v492_v32  ;;  %495 = vst [vmem:[%s2463_s23 + $0x8] sm:$0xff] %v494_v33  ;;  %v498_v35 = vld [vmem:[%s2467_s26 + $0x40] sm:$0xff]  ;;  %v500_v36 = vld [vmem:[%s2467_s26 + $0x70] sm:$0xff]  ;;  %p621_p6 = scmp.ge.s32.totalorder %s620_s8, %s2942_s25  ;;  %p485_p7 = scmp.ge.s32.totalorder %s486_s29, %s2942_s25 }
  0x84   : >> { %497 = vst [vmem:[%s2463_s23 + $0x20] sm:$0xff] %v496_v34  ;;  %v502_v37 = vld [vmem:[%s2467_s26 + $0x78] sm:$0xff]  ;;  %499 = vst [vmem:[%s2463_s23 + $0x28] sm:$0xff] %v498_v35  ;;  %v504_v38 = vld [vmem:[%s2467_s26 + $0xa8] sm:$0xff] }
  0x85   : >> { %501 = vst [vmem:[%s2463_s23 + $0x40] sm:$0xff] %v500_v36  ;;  %503 = vst [vmem:[%s2463_s23 + $0x48] sm:$0xff] %v502_v37  ;;  %v506_v39 = vld [vmem:[%s2467_s26 + $0xb0] sm:$0xff]  ;;  %v508_v40 = vld [vmem:[%s2467_s26 + $0xe0] sm:$0xff]  ;;  %s4023_s8 = smov (%p621_p6, %s620_s8), 0 }
  0x86   : >> { %505 = vst [vmem:[%s2463_s23 + $0x60] sm:$0xff] %v504_v38  ;;  %507 = vst [vmem:[%s2463_s23 + $0x68] sm:$0xff] %v506_v39  ;;  %v510_v41 = vld [vmem:[%s2467_s26 + $0xe8] sm:$0xff]  ;;  %v512_v42 = vld [vmem:[%s2467_s26 + $0x118] sm:$0xff]  ;;  %s1812_s9 = sshll.u32 %s4023_s8, 4  ;;  %s3997_s27 = smov %s4023_s8 }
  0x87   : >> { %509 = vst [vmem:[%s2463_s23 + $0x80] sm:$0xff] %v508_v40  ;;  %v514_v43 = vld [vmem:[%s2467_s26 + $0x120] sm:$0xff]  ;;  %511 = vst [vmem:[%s2463_s23 + $0x88] sm:$0xff] %v510_v41  ;;  %v516_v44 = vld [vmem:[%s2467_s26 + $0x150] sm:$0xff]  ;;  %s3009_s10 = scalar_lea.vmem %s2624_s28, %s1812_s9   ;;  %s3012_s6 = scalar_lea.vmem %s2628_s4, %s1812_s9 [#allocation2]  }
  0x88   : >> { %513 = vst [vmem:[%s2463_s23 + $0xa0] sm:$0xff] %v512_v42  ;;  %515 = vst [vmem:[%s2463_s23 + $0xa8] sm:$0xff] %v514_v43  ;;  %v518_v45 = vld [vmem:[%s2467_s26 + $0x158] sm:$0xff]  ;;  %v520_v46 = vld [vmem:[%s2467_s26 + $0x188] sm:$0xff] }
  0x89   : >> { %517 = vst [vmem:[%s2463_s23 + $0xc0] sm:$0xff] %v516_v44  ;;  %519 = vst [vmem:[%s2463_s23 + $0xc8] sm:$0xff] %v518_v45  ;;  %v522_v47 = vld [vmem:[%s2467_s26 + $0x190] sm:$0xff]  ;;  %v524_v48 = vld [vmem:[%s2467_s26 + $0x1c0] sm:$0xff] }
  0x8a   : >> { %521 = vst [vmem:[%s2463_s23 + $0xe0] sm:$0xff] %v520_v46  ;;  %v526_v49 = vld [vmem:[%s2467_s26 + $0x1c8] sm:$0xff]  ;;  %523 = vst [vmem:[%s2463_s23 + $0xe8] sm:$0xff] %v522_v47  ;;  %v528_v50 = vld [vmem:[%s2467_s26 + $0x1f8] sm:$0xff] }
  0x8b   : >> { %525 = vst [vmem:[%s2463_s23 + $0x100] sm:$0xff] %v524_v48  ;;  %527 = vst [vmem:[%s2463_s23 + $0x108] sm:$0xff] %v526_v49  ;;  %v530_v51 = vld [vmem:[%s2467_s26 + $0x200] sm:$0xff]  ;;  %v532_v52 = vld [vmem:[%s2467_s26 + $0x230] sm:$0xff] }
  0x8c   : >> { %529 = vst [vmem:[%s2463_s23 + $0x120] sm:$0xff] %v528_v50  ;;  %531 = vst [vmem:[%s2463_s23 + $0x128] sm:$0xff] %v530_v51  ;;  %v534_v53 = vld [vmem:[%s2467_s26 + $0x238] sm:$0xff]  ;;  %v536_v54 = vld [vmem:[%s2467_s26 + $0x268] sm:$0xff] }
  0x8d   : >> { %533 = vst [vmem:[%s2463_s23 + $0x140] sm:$0xff] %v532_v52  ;;  %v538_v55 = vld [vmem:[%s2467_s26 + $0x270] sm:$0xff]  ;;  %535 = vst [vmem:[%s2463_s23 + $0x148] sm:$0xff] %v534_v53  ;;  %v540_v56 = vld [vmem:[%s2467_s26 + $0x2a0] sm:$0xff] }
  0x8e   : >> { %537 = vst [vmem:[%s2463_s23 + $0x160] sm:$0xff] %v536_v54  ;;  %539 = vst [vmem:[%s2463_s23 + $0x168] sm:$0xff] %v538_v55  ;;  %v542_v57 = vld [vmem:[%s2467_s26 + $0x2a8] sm:$0xff]  ;;  %v544_v58 = vld [vmem:[%s2467_s26 + $0x2d8] sm:$0xff] }
  0x8f   : >> { %541 = vst [vmem:[%s2463_s23 + $0x180] sm:$0xff] %v540_v56  ;;  %543 = vst [vmem:[%s2463_s23 + $0x188] sm:$0xff] %v542_v57  ;;  %v546_v59 = vld [vmem:[%s2467_s26 + $0x2e0] sm:$0xff]  ;;  %v548_v60 = vld [vmem:[%s2467_s26 + $0x310] sm:$0xff] }
  0x90   : >> { %545 = vst [vmem:[%s2463_s23 + $0x1a0] sm:$0xff] %v544_v58  ;;  %v550_v61 = vld [vmem:[%s2467_s26 + $0x318] sm:$0xff]  ;;  %547 = vst [vmem:[%s2463_s23 + $0x1a8] sm:$0xff] %v546_v59  ;;  %v552_v62 = vld [vmem:[%s2467_s26 + $0x348] sm:$0xff] }
  0x91   : >> { %549 = vst [vmem:[%s2463_s23 + $0x1c0] sm:$0xff] %v548_v60  ;;  %551 = vst [vmem:[%s2463_s23 + $0x1c8] sm:$0xff] %v550_v61  ;;  %v554_v63 = vld [vmem:[%s2467_s26 + $0x350] sm:$0xff]  ;;  %v556_v0 = vld [vmem:[%s2467_s26 + $0x380] sm:$0xff] }
  0x92   : >> { %553 = vst [vmem:[%s2463_s23 + $0x1e0] sm:$0xff] %v552_v62  ;;  %555 = vst [vmem:[%s2463_s23 + $0x1e8] sm:$0xff] %v554_v63  ;;  %v558_v1 = vld [vmem:[%s2467_s26 + $0x388] sm:$0xff]  ;;  %v560_v2 = vld [vmem:[%s2467_s26 + $0x3b8] sm:$0xff] }
  0x93   : >> { %557 = vst [vmem:[%s2463_s23 + $0x200] sm:$0xff] %v556_v0  ;;  %v562_v3 = vld [vmem:[%s2467_s26 + $0x3c0] sm:$0xff]  ;;  %559 = vst [vmem:[%s2463_s23 + $0x208] sm:$0xff] %v558_v1  ;;  %v564_v4 = vld [vmem:[%s2467_s26 + $0x3f0] sm:$0xff] }
  0x94   : >> { %561 = vst [vmem:[%s2463_s23 + $0x220] sm:$0xff] %v560_v2  ;;  %563 = vst [vmem:[%s2463_s23 + $0x228] sm:$0xff] %v562_v3  ;;  %v566_v5 = vld [vmem:[%s2467_s26 + $0x3f8] sm:$0xff]  ;;  %v568_v6 = vld [vmem:[%s2467_s26 + $0x428] sm:$0xff] }
  0x95   : >> { %565 = vst [vmem:[%s2463_s23 + $0x240] sm:$0xff] %v564_v4  ;;  %567 = vst [vmem:[%s2463_s23 + $0x248] sm:$0xff] %v566_v5  ;;  %v570_v7 = vld [vmem:[%s2467_s26 + $0x430] sm:$0xff]  ;;  %v572_v8 = vld [vmem:[%s2467_s26 + $0x460] sm:$0xff] }
  0x96   : >> { %569 = vst [vmem:[%s2463_s23 + $0x260] sm:$0xff] %v568_v6  ;;  %v574_v9 = vld [vmem:[%s2467_s26 + $0x468] sm:$0xff]  ;;  %571 = vst [vmem:[%s2463_s23 + $0x268] sm:$0xff] %v570_v7  ;;  %v576_v10 = vld [vmem:[%s2467_s26 + $0x498] sm:$0xff] }
  0x97   : >> { %573 = vst [vmem:[%s2463_s23 + $0x280] sm:$0xff] %v572_v8  ;;  %575 = vst [vmem:[%s2463_s23 + $0x288] sm:$0xff] %v574_v9  ;;  %v578_v11 = vld [vmem:[%s2467_s26 + $0x4a0] sm:$0xff]  ;;  %v580_v12 = vld [vmem:[%s2467_s26 + $0x4d0] sm:$0xff] }
  0x98   : >> { %577 = vst [vmem:[%s2463_s23 + $0x2a0] sm:$0xff] %v576_v10  ;;  %579 = vst [vmem:[%s2463_s23 + $0x2a8] sm:$0xff] %v578_v11  ;;  %v582_v13 = vld [vmem:[%s2467_s26 + $0x4d8] sm:$0xff]  ;;  %v584_v14 = vld [vmem:[%s2467_s26 + $0x508] sm:$0xff] }
  0x99   : >> { %581 = vst [vmem:[%s2463_s23 + $0x2c0] sm:$0xff] %v580_v12  ;;  %v586_v15 = vld [vmem:[%s2467_s26 + $0x510] sm:$0xff]  ;;  %583 = vst [vmem:[%s2463_s23 + $0x2c8] sm:$0xff] %v582_v13  ;;  %v588_v16 = vld [vmem:[%s2467_s26 + $0x540] sm:$0xff] }
  0x9a   : >> { %585 = vst [vmem:[%s2463_s23 + $0x2e0] sm:$0xff] %v584_v14  ;;  %587 = vst [vmem:[%s2463_s23 + $0x2e8] sm:$0xff] %v586_v15  ;;  %v590_v17 = vld [vmem:[%s2467_s26 + $0x548] sm:$0xff]  ;;  %v592_v18 = vld [vmem:[%s2467_s26 + $0x578] sm:$0xff] }
  0x9b   : >> { %589 = vst [vmem:[%s2463_s23 + $0x300] sm:$0xff] %v588_v16  ;;  %591 = vst [vmem:[%s2463_s23 + $0x308] sm:$0xff] %v590_v17  ;;  %v594_v19 = vld [vmem:[%s2467_s26 + $0x580] sm:$0xff]  ;;  %v596_v20 = vld [vmem:[%s2467_s26 + $0x5b0] sm:$0xff] }
  0x9c   : >> { %593 = vst [vmem:[%s2463_s23 + $0x320] sm:$0xff] %v592_v18  ;;  %v598_v21 = vld [vmem:[%s2467_s26 + $0x5b8] sm:$0xff]  ;;  %595 = vst [vmem:[%s2463_s23 + $0x328] sm:$0xff] %v594_v19  ;;  %v600_v22 = vld [vmem:[%s2467_s26 + $0x5e8] sm:$0xff]  ;;  %488 = sbr.rel (!%p485_p7) target bundleno = 130 (0x82), region = 257 }
  0x9d   : >> { %597 = vst [vmem:[%s2463_s23 + $0x340] sm:$0xff] %v596_v20  ;;  %599 = vst [vmem:[%s2463_s23 + $0x348] sm:$0xff] %v598_v21  ;;  %v602_v23 = vld [vmem:[%s2467_s26 + $0x5f0] sm:$0xff]  ;;  %v604_v24 = vld [vmem:[%s2467_s26 + $0x620] sm:$0xff] }
  0x9e   : >> { %601 = vst [vmem:[%s2463_s23 + $0x360] sm:$0xff] %v600_v22  ;;  %603 = vst [vmem:[%s2463_s23 + $0x368] sm:$0xff] %v602_v23  ;;  %v606_v25 = vld [vmem:[%s2467_s26 + $0x628] sm:$0xff]  ;;  %v608_v26 = vld [vmem:[%s2467_s26 + $0x658] sm:$0xff] }
  0x9f   : >> { %605 = vst [vmem:[%s2463_s23 + $0x380] sm:$0xff] %v604_v24  ;;  %v610_v27 = vld [vmem:[%s2467_s26 + $0x660] sm:$0xff]  ;;  %607 = vst [vmem:[%s2463_s23 + $0x388] sm:$0xff] %v606_v25  ;;  %v612_v28 = vld [vmem:[%s2467_s26 + $0x690] sm:$0xff] }
  0xa0   : >> { %609 = vst [vmem:[%s2463_s23 + $0x3a0] sm:$0xff] %v608_v26  ;;  %611 = vst [vmem:[%s2463_s23 + $0x3a8] sm:$0xff] %v610_v27  ;;  %v614_v29 = vld [vmem:[%s2467_s26 + $0x698] sm:$0xff]  ;;  %v616_v30 = vld [vmem:[%s2467_s26 + $0x6c8] sm:$0xff] }
  0xa1   : >> { %613 = vst [vmem:[%s2463_s23 + $0x3c0] sm:$0xff] %v612_v28  ;;  %615 = vst [vmem:[%s2463_s23 + $0x3c8] sm:$0xff] %v614_v29  ;;  %v618_v31 = vld [vmem:[%s2467_s26 + $0x6d0] sm:$0xff]  ;;  %s3996_s26 = smov %s3009_s10 }
  0xa2   : >> { %617 = vst [vmem:[%s2463_s23 + $0x3e0] sm:$0xff] %v616_v30  ;;  %619 = vst [vmem:[%s2463_s23 + $0x3e8] sm:$0xff] %v618_v31  ;;  %s3995_s23 = smov %s3012_s6 }
  0xa3 PF: > { %s3118_s7 = sand.u32 1, %s479_s21   ;;  %s1856_s11 = sshll.u32 %s2942_s25, 8 }
  0xa4   : > { %s631_s17 = sshra.s32 %s1856_s11, 4  ;;  %p1817_p8 = scmp.le.s32.totalorder %s3118_s7, 0 }
  0xa5   : > { %s3122_s18 = scalar_lea.vmem %s2624_s28, %s631_s17   ;;  %s3125_s9 = scalar_lea.vmem %s2628_s4, %s631_s17 [#allocation2]  }
  0xa6   : > { %1705 = sbr.rel (%p1817_p8) target bundleno = 190 (0xbe), region = 262  ;;  %s3998_s23 = smov (!%p1817_p8), %s3125_s9 }
  0xa7   : > { %s3999_s26 = smov (!%p1817_p8), %s3122_s18  ;;  %s3134_s27 = smov (!%p1817_p8), 0  }
  0xa8   : > { %s3136_s29 = smov (!%p1817_p8), 0  }
  0xad LB: >> { %v647_v32 = vld [vmem:[%s2483_s26] sm:$0xff]  ;;  %v649_v33 = vld [vmem:[%s2483_s26 + $0x38] sm:$0xff]  ;;  %v651_v34 = vld [vmem:[%s2483_s26 + $0x70] sm:$0xff]  ;;  %s711_s21 = sadd.s32 1, %s2487_s27  ;;  %s641_s29 = sadd.s32 1, %s2491_s29   ;;  %s2491_s29 = sphi %s3136_s29, %s641_s29   ;;  %s2487_s27 = sphi %s3134_s27, %s4002_s27   ;;  %s2483_s26 = sphi %s3999_s26, %s4001_s26   ;;  %s2479_s23 = sphi %s3998_s23, %s4000_s23  }
  0xae   : >> { %648 = vst [vmem:[%s2479_s23] sm:$0xff] %v647_v32  ;;  %650 = vst [vmem:[%s2479_s23 + $0x20] sm:$0xff] %v649_v33  ;;  %v653_v35 = vld [vmem:[%s2483_s26 + $0xa8] sm:$0xff]  ;;  %v655_v36 = vld [vmem:[%s2483_s26 + $0xe0] sm:$0xff]  ;;  %p712_p9 = scmp.ge.s32.totalorder %s711_s21, %s3118_s7  ;;  %p640_p10 = scmp.ge.s32.totalorder %s641_s29, %s3118_s7 }
  0xaf   : >> { %652 = vst [vmem:[%s2479_s23 + $0x40] sm:$0xff] %v651_v34  ;;  %v657_v37 = vld [vmem:[%s2483_s26 + $0x118] sm:$0xff]  ;;  %654 = vst [vmem:[%s2479_s23 + $0x60] sm:$0xff] %v653_v35  ;;  %v659_v38 = vld [vmem:[%s2483_s26 + $0x150] sm:$0xff] }
  0xb0   : >> { %656 = vst [vmem:[%s2479_s23 + $0x80] sm:$0xff] %v655_v36  ;;  %658 = vst [vmem:[%s2479_s23 + $0xa0] sm:$0xff] %v657_v37  ;;  %v661_v39 = vld [vmem:[%s2483_s26 + $0x188] sm:$0xff]  ;;  %v663_v40 = vld [vmem:[%s2483_s26 + $0x1c0] sm:$0xff]  ;;  %s4025_s21 = smov (%p712_p9, %s711_s21), 0 }
  0xb1   : >> { %660 = vst [vmem:[%s2479_s23 + $0xc0] sm:$0xff] %v659_v38  ;;  %662 = vst [vmem:[%s2479_s23 + $0xe0] sm:$0xff] %v661_v39  ;;  %v665_v41 = vld [vmem:[%s2483_s26 + $0x1f8] sm:$0xff]  ;;  %v667_v42 = vld [vmem:[%s2483_s26 + $0x230] sm:$0xff]  ;;  %s1818_s25 = sshll.u32 %s4025_s21, 3  ;;  %s4002_s27 = smov %s4025_s21 }
  0xb2   : >> { %664 = vst [vmem:[%s2479_s23 + $0x100] sm:$0xff] %v663_v40  ;;  %v669_v43 = vld [vmem:[%s2483_s26 + $0x268] sm:$0xff]  ;;  %666 = vst [vmem:[%s2479_s23 + $0x120] sm:$0xff] %v665_v41  ;;  %v671_v44 = vld [vmem:[%s2483_s26 + $0x2a0] sm:$0xff]  ;;  %s3192_s8 = scalar_lea.vmem %s3122_s18, %s1818_s25   ;;  %s717_s10 = scalar_lea.vmem %s3125_s9, %s1818_s25 [#allocation2]  }
  0xb3   : >> { %668 = vst [vmem:[%s2479_s23 + $0x140] sm:$0xff] %v667_v42  ;;  %670 = vst [vmem:[%s2479_s23 + $0x160] sm:$0xff] %v669_v43  ;;  %v673_v45 = vld [vmem:[%s2483_s26 + $0x2d8] sm:$0xff]  ;;  %v675_v46 = vld [vmem:[%s2483_s26 + $0x310] sm:$0xff] }
  0xb4   : >> { %672 = vst [vmem:[%s2479_s23 + $0x180] sm:$0xff] %v671_v44  ;;  %674 = vst [vmem:[%s2479_s23 + $0x1a0] sm:$0xff] %v673_v45  ;;  %v677_v47 = vld [vmem:[%s2483_s26 + $0x348] sm:$0xff]  ;;  %v679_v48 = vld [vmem:[%s2483_s26 + $0x380] sm:$0xff] }
  0xb5   : >> { %676 = vst [vmem:[%s2479_s23 + $0x1c0] sm:$0xff] %v675_v46  ;;  %v681_v49 = vld [vmem:[%s2483_s26 + $0x3b8] sm:$0xff]  ;;  %678 = vst [vmem:[%s2479_s23 + $0x1e0] sm:$0xff] %v677_v47  ;;  %v683_v50 = vld [vmem:[%s2483_s26 + $0x3f0] sm:$0xff] }
  0xb6   : >> { %680 = vst [vmem:[%s2479_s23 + $0x200] sm:$0xff] %v679_v48  ;;  %682 = vst [vmem:[%s2479_s23 + $0x220] sm:$0xff] %v681_v49  ;;  %v685_v51 = vld [vmem:[%s2483_s26 + $0x428] sm:$0xff]  ;;  %v687_v52 = vld [vmem:[%s2483_s26 + $0x460] sm:$0xff] }
  0xb7   : >> { %684 = vst [vmem:[%s2479_s23 + $0x240] sm:$0xff] %v683_v50  ;;  %686 = vst [vmem:[%s2479_s23 + $0x260] sm:$0xff] %v685_v51  ;;  %v689_v53 = vld [vmem:[%s2483_s26 + $0x498] sm:$0xff]  ;;  %v691_v54 = vld [vmem:[%s2483_s26 + $0x4d0] sm:$0xff]  ;;  %643 = sbr.rel (!%p640_p10) target bundleno = 173 (0xad), region = 268 }
  0xb8   : >> { %688 = vst [vmem:[%s2479_s23 + $0x280] sm:$0xff] %v687_v52  ;;  %v693_v55 = vld [vmem:[%s2483_s26 + $0x508] sm:$0xff]  ;;  %690 = vst [vmem:[%s2479_s23 + $0x2a0] sm:$0xff] %v689_v53  ;;  %v695_v56 = vld [vmem:[%s2483_s26 + $0x540] sm:$0xff] }
  0xb9   : >> { %692 = vst [vmem:[%s2479_s23 + $0x2c0] sm:$0xff] %v691_v54  ;;  %694 = vst [vmem:[%s2479_s23 + $0x2e0] sm:$0xff] %v693_v55  ;;  %v697_v57 = vld [vmem:[%s2483_s26 + $0x578] sm:$0xff]  ;;  %v699_v58 = vld [vmem:[%s2483_s26 + $0x5b0] sm:$0xff] }
  0xba   : >> { %696 = vst [vmem:[%s2479_s23 + $0x300] sm:$0xff] %v695_v56  ;;  %698 = vst [vmem:[%s2479_s23 + $0x320] sm:$0xff] %v697_v57  ;;  %v701_v59 = vld [vmem:[%s2483_s26 + $0x5e8] sm:$0xff]  ;;  %v703_v60 = vld [vmem:[%s2483_s26 + $0x620] sm:$0xff] }
  0xbb   : >> { %700 = vst [vmem:[%s2479_s23 + $0x340] sm:$0xff] %v699_v58  ;;  %v705_v61 = vld [vmem:[%s2483_s26 + $0x658] sm:$0xff]  ;;  %702 = vst [vmem:[%s2479_s23 + $0x360] sm:$0xff] %v701_v59  ;;  %v707_v62 = vld [vmem:[%s2483_s26 + $0x690] sm:$0xff] }
  0xbc   : >> { %704 = vst [vmem:[%s2479_s23 + $0x380] sm:$0xff] %v703_v60  ;;  %706 = vst [vmem:[%s2479_s23 + $0x3a0] sm:$0xff] %v705_v61  ;;  %v709_v63 = vld [vmem:[%s2483_s26 + $0x6c8] sm:$0xff]  ;;  %s4001_s26 = smov %s3192_s8 }
  0xbd   : >> { %708 = vst [vmem:[%s2479_s23 + $0x3c0] sm:$0xff] %v707_v62  ;;  %710 = vst [vmem:[%s2479_s23 + $0x3e0] sm:$0xff] %v709_v63  ;;  %s4000_s23 = smov %s717_s10 }
  0xbe PF: > { %s2557_s6 = smov 0  }
  0xbf   : > { %s3233_s11 = sshllo.u32 %s2557_s6, %s2632_s5 }
  0xc0   : > { %v727_v0 = vld [vmem:[%s2935_s22] sm:%s3233_s11]  ;;  %v729_v1 = vld [vmem:[%s2935_s22 + $0x38] sm:%s3233_s11] }
  0xc1   : > { %728 = vst [vmem:[%s2938_s24] sm:%s3233_s11] %v727_v0  ;;  %730 = vst [vmem:[%s2938_s24 + $0x20] sm:%s3233_s11] %v729_v1 }
  0xc2   : > { %v731_v2 = vld [vmem:[%s2935_s22 + $0x70] sm:%s3233_s11]  ;;  %v733_v3 = vld [vmem:[%s2935_s22 + $0xa8] sm:%s3233_s11] }
  0xc3   : > { %732 = vst [vmem:[%s2938_s24 + $0x40] sm:%s3233_s11] %v731_v2  ;;  %734 = vst [vmem:[%s2938_s24 + $0x60] sm:%s3233_s11] %v733_v3 }
  0xc4   : > { %v735_v4 = vld [vmem:[%s2935_s22 + $0xe0] sm:%s3233_s11]  ;;  %v737_v5 = vld [vmem:[%s2935_s22 + $0x118] sm:%s3233_s11] }
  0xc5   : > { %736 = vst [vmem:[%s2938_s24 + $0x80] sm:%s3233_s11] %v735_v4  ;;  %738 = vst [vmem:[%s2938_s24 + $0xa0] sm:%s3233_s11] %v737_v5 }
  0xc6   : > { %v739_v6 = vld [vmem:[%s2935_s22 + $0x150] sm:%s3233_s11]  ;;  %v741_v7 = vld [vmem:[%s2935_s22 + $0x188] sm:%s3233_s11] }
  0xc7   : > { %740 = vst [vmem:[%s2938_s24 + $0xc0] sm:%s3233_s11] %v739_v6  ;;  %742 = vst [vmem:[%s2938_s24 + $0xe0] sm:%s3233_s11] %v741_v7 }
  0xc8   : > { %v743_v8 = vld [vmem:[%s2935_s22 + $0x1c0] sm:%s3233_s11]  ;;  %v745_v9 = vld [vmem:[%s2935_s22 + $0x1f8] sm:%s3233_s11] }
  0xc9   : > { %744 = vst [vmem:[%s2938_s24 + $0x100] sm:%s3233_s11] %v743_v8  ;;  %746 = vst [vmem:[%s2938_s24 + $0x120] sm:%s3233_s11] %v745_v9 }
  0xca   : > { %v747_v10 = vld [vmem:[%s2935_s22 + $0x230] sm:%s3233_s11]  ;;  %v749_v11 = vld [vmem:[%s2935_s22 + $0x268] sm:%s3233_s11] }
  0xcb   : > { %748 = vst [vmem:[%s2938_s24 + $0x140] sm:%s3233_s11] %v747_v10  ;;  %750 = vst [vmem:[%s2938_s24 + $0x160] sm:%s3233_s11] %v749_v11 }
  0xcc   : > { %v751_v12 = vld [vmem:[%s2935_s22 + $0x2a0] sm:%s3233_s11]  ;;  %v753_v13 = vld [vmem:[%s2935_s22 + $0x2d8] sm:%s3233_s11] }
  0xcd   : > { %752 = vst [vmem:[%s2938_s24 + $0x180] sm:%s3233_s11] %v751_v12  ;;  %754 = vst [vmem:[%s2938_s24 + $0x1a0] sm:%s3233_s11] %v753_v13 }
  0xce   : > { %v755_v14 = vld [vmem:[%s2935_s22 + $0x310] sm:%s3233_s11]  ;;  %v757_v15 = vld [vmem:[%s2935_s22 + $0x348] sm:%s3233_s11] }
  0xcf   : > { %756 = vst [vmem:[%s2938_s24 + $0x1c0] sm:%s3233_s11] %v755_v14  ;;  %758 = vst [vmem:[%s2938_s24 + $0x1e0] sm:%s3233_s11] %v757_v15 }
  0xd0   : > { %v759_v16 = vld [vmem:[%s2935_s22 + $0x380] sm:%s3233_s11]  ;;  %v761_v17 = vld [vmem:[%s2935_s22 + $0x3b8] sm:%s3233_s11] }
  0xd1   : > { %760 = vst [vmem:[%s2938_s24 + $0x200] sm:%s3233_s11] %v759_v16  ;;  %762 = vst [vmem:[%s2938_s24 + $0x220] sm:%s3233_s11] %v761_v17 }
  0xd2   : > { %v763_v18 = vld [vmem:[%s2935_s22 + $0x3f0] sm:%s3233_s11]  ;;  %v765_v19 = vld [vmem:[%s2935_s22 + $0x428] sm:%s3233_s11] }
  0xd3   : > { %764 = vst [vmem:[%s2938_s24 + $0x240] sm:%s3233_s11] %v763_v18  ;;  %766 = vst [vmem:[%s2938_s24 + $0x260] sm:%s3233_s11] %v765_v19 }
  0xd4   : > { %v767_v20 = vld [vmem:[%s2935_s22 + $0x460] sm:%s3233_s11]  ;;  %v769_v21 = vld [vmem:[%s2935_s22 + $0x498] sm:%s3233_s11] }
  0xd5   : > { %768 = vst [vmem:[%s2938_s24 + $0x280] sm:%s3233_s11] %v767_v20  ;;  %770 = vst [vmem:[%s2938_s24 + $0x2a0] sm:%s3233_s11] %v769_v21 }
  0xd6   : > { %v771_v22 = vld [vmem:[%s2935_s22 + $0x4d0] sm:%s3233_s11]  ;;  %v773_v23 = vld [vmem:[%s2935_s22 + $0x508] sm:%s3233_s11] }
  0xd7   : > { %772 = vst [vmem:[%s2938_s24 + $0x2c0] sm:%s3233_s11] %v771_v22  ;;  %774 = vst [vmem:[%s2938_s24 + $0x2e0] sm:%s3233_s11] %v773_v23 }
  0xd8   : > { %v775_v24 = vld [vmem:[%s2935_s22 + $0x540] sm:%s3233_s11]  ;;  %v777_v25 = vld [vmem:[%s2935_s22 + $0x578] sm:%s3233_s11] }
  0xd9   : > { %776 = vst [vmem:[%s2938_s24 + $0x300] sm:%s3233_s11] %v775_v24  ;;  %778 = vst [vmem:[%s2938_s24 + $0x320] sm:%s3233_s11] %v777_v25 }
  0xda   : > { %v779_v26 = vld [vmem:[%s2935_s22 + $0x5b0] sm:%s3233_s11]  ;;  %v781_v27 = vld [vmem:[%s2935_s22 + $0x5e8] sm:%s3233_s11] }
  0xdb   : > { %780 = vst [vmem:[%s2938_s24 + $0x340] sm:%s3233_s11] %v779_v26  ;;  %782 = vst [vmem:[%s2938_s24 + $0x360] sm:%s3233_s11] %v781_v27 }
  0xdc   : > { %v783_v28 = vld [vmem:[%s2935_s22 + $0x620] sm:%s3233_s11]  ;;  %v785_v29 = vld [vmem:[%s2935_s22 + $0x658] sm:%s3233_s11] }
  0xdd   : > { %784 = vst [vmem:[%s2938_s24 + $0x380] sm:%s3233_s11] %v783_v28  ;;  %786 = vst [vmem:[%s2938_s24 + $0x3a0] sm:%s3233_s11] %v785_v29 }
  0xde   : > { %v787_v30 = vld [vmem:[%s2935_s22 + $0x690] sm:%s3233_s11]  ;;  %v789_v31 = vld [vmem:[%s2935_s22 + $0x6c8] sm:%s3233_s11] }
  0xdf   : > { %788 = vst [vmem:[%s2938_s24 + $0x3c0] sm:%s3233_s11] %v787_v30  ;;  %790 = vst [vmem:[%s2938_s24 + $0x3e0] sm:%s3233_s11] %v789_v31 }
  0xe0 PF: > { %p1820_p11 = scmp.ge.u32.totalorder %s2626_s30, 8 }
  0xe1   : > { %s2558_s5 = smov (!%p1820_p11), 0  }
  0xe2   : > { %153 = sbr.rel (%p1820_p11) target bundleno = 259 (0x103), region = 40  ;;  %s3365_s22 = sshllo.u32 (!%p1820_p11), %s2558_s5, %s2626_s30 }
  0xe3   : > { %v163_v32 = vld [vmem:[%s2624_s28] sm:%s3365_s22] (!%p1820_p11)  ;;  %v165_v33 = vld [vmem:[%s2624_s28 + $0x38] sm:%s3365_s22] (!%p1820_p11) }
  0xe4   : > { %164 = vst [vmem:[%s2628_s4] sm:%s3365_s22] (!%p1820_p11), %v163_v32  ;;  %166 = vst [vmem:[%s2628_s4 + $0x20] sm:%s3365_s22] (!%p1820_p11), %v165_v33 }
  0xe5   : > { %v167_v34 = vld [vmem:[%s2624_s28 + $0x70] sm:%s3365_s22] (!%p1820_p11)  ;;  %v169_v35 = vld [vmem:[%s2624_s28 + $0xa8] sm:%s3365_s22] (!%p1820_p11) }
  0xe6   : > { %168 = vst [vmem:[%s2628_s4 + $0x40] sm:%s3365_s22] (!%p1820_p11), %v167_v34  ;;  %170 = vst [vmem:[%s2628_s4 + $0x60] sm:%s3365_s22] (!%p1820_p11), %v169_v35 }
  0xe7   : > { %v171_v36 = vld [vmem:[%s2624_s28 + $0xe0] sm:%s3365_s22] (!%p1820_p11)  ;;  %v173_v37 = vld [vmem:[%s2624_s28 + $0x118] sm:%s3365_s22] (!%p1820_p11) }
  0xe8   : > { %172 = vst [vmem:[%s2628_s4 + $0x80] sm:%s3365_s22] (!%p1820_p11), %v171_v36  ;;  %174 = vst [vmem:[%s2628_s4 + $0xa0] sm:%s3365_s22] (!%p1820_p11), %v173_v37 }
  0xe9   : > { %v175_v38 = vld [vmem:[%s2624_s28 + $0x150] sm:%s3365_s22]  ;;  %v177_v39 = vld [vmem:[%s2624_s28 + $0x188] sm:%s3365_s22] }
  0xea   : > { %176 = vst [vmem:[%s2628_s4 + $0xc0] sm:%s3365_s22] %v175_v38  ;;  %178 = vst [vmem:[%s2628_s4 + $0xe0] sm:%s3365_s22] %v177_v39 }
  0xeb   : > { %v179_v40 = vld [vmem:[%s2624_s28 + $0x1c0] sm:%s3365_s22]  ;;  %v181_v41 = vld [vmem:[%s2624_s28 + $0x1f8] sm:%s3365_s22] }
  0xec   : > { %180 = vst [vmem:[%s2628_s4 + $0x100] sm:%s3365_s22] %v179_v40  ;;  %182 = vst [vmem:[%s2628_s4 + $0x120] sm:%s3365_s22] %v181_v41 }
  0xed   : > { %v183_v42 = vld [vmem:[%s2624_s28 + $0x230] sm:%s3365_s22]  ;;  %v185_v43 = vld [vmem:[%s2624_s28 + $0x268] sm:%s3365_s22] }
  0xee   : > { %184 = vst [vmem:[%s2628_s4 + $0x140] sm:%s3365_s22] %v183_v42  ;;  %186 = vst [vmem:[%s2628_s4 + $0x160] sm:%s3365_s22] %v185_v43 }
  0xef   : > { %v187_v44 = vld [vmem:[%s2624_s28 + $0x2a0] sm:%s3365_s22]  ;;  %v189_v45 = vld [vmem:[%s2624_s28 + $0x2d8] sm:%s3365_s22] }
  0xf0   : > { %188 = vst [vmem:[%s2628_s4 + $0x180] sm:%s3365_s22] %v187_v44  ;;  %190 = vst [vmem:[%s2628_s4 + $0x1a0] sm:%s3365_s22] %v189_v45 }
  0xf1   : > { %v191_v46 = vld [vmem:[%s2624_s28 + $0x310] sm:%s3365_s22]  ;;  %v193_v47 = vld [vmem:[%s2624_s28 + $0x348] sm:%s3365_s22] }
  0xf2   : > { %192 = vst [vmem:[%s2628_s4 + $0x1c0] sm:%s3365_s22] %v191_v46  ;;  %194 = vst [vmem:[%s2628_s4 + $0x1e0] sm:%s3365_s22] %v193_v47 }
  0xf3   : > { %v195_v48 = vld [vmem:[%s2624_s28 + $0x380] sm:%s3365_s22]  ;;  %v197_v49 = vld [vmem:[%s2624_s28 + $0x3b8] sm:%s3365_s22] }
  0xf4   : > { %196 = vst [vmem:[%s2628_s4 + $0x200] sm:%s3365_s22] %v195_v48  ;;  %198 = vst [vmem:[%s2628_s4 + $0x220] sm:%s3365_s22] %v197_v49 }
  0xf5   : > { %v199_v50 = vld [vmem:[%s2624_s28 + $0x3f0] sm:%s3365_s22]  ;;  %v201_v51 = vld [vmem:[%s2624_s28 + $0x428] sm:%s3365_s22] }
  0xf6   : > { %200 = vst [vmem:[%s2628_s4 + $0x240] sm:%s3365_s22] %v199_v50  ;;  %202 = vst [vmem:[%s2628_s4 + $0x260] sm:%s3365_s22] %v201_v51 }
  0xf7   : > { %v203_v52 = vld [vmem:[%s2624_s28 + $0x460] sm:%s3365_s22]  ;;  %v205_v53 = vld [vmem:[%s2624_s28 + $0x498] sm:%s3365_s22] }
  0xf8   : > { %204 = vst [vmem:[%s2628_s4 + $0x280] sm:%s3365_s22] %v203_v52  ;;  %206 = vst [vmem:[%s2628_s4 + $0x2a0] sm:%s3365_s22] %v205_v53 }
  0xf9   : > { %v207_v54 = vld [vmem:[%s2624_s28 + $0x4d0] sm:%s3365_s22]  ;;  %v209_v55 = vld [vmem:[%s2624_s28 + $0x508] sm:%s3365_s22] }
  0xfa   : > { %208 = vst [vmem:[%s2628_s4 + $0x2c0] sm:%s3365_s22] %v207_v54  ;;  %210 = vst [vmem:[%s2628_s4 + $0x2e0] sm:%s3365_s22] %v209_v55 }
  0xfb   : > { %v211_v56 = vld [vmem:[%s2624_s28 + $0x540] sm:%s3365_s22]  ;;  %v213_v57 = vld [vmem:[%s2624_s28 + $0x578] sm:%s3365_s22] }
  0xfc   : > { %212 = vst [vmem:[%s2628_s4 + $0x300] sm:%s3365_s22] %v211_v56  ;;  %214 = vst [vmem:[%s2628_s4 + $0x320] sm:%s3365_s22] %v213_v57 }
  0xfd   : > { %v215_v58 = vld [vmem:[%s2624_s28 + $0x5b0] sm:%s3365_s22]  ;;  %v217_v59 = vld [vmem:[%s2624_s28 + $0x5e8] sm:%s3365_s22] }
  0xfe   : > { %216 = vst [vmem:[%s2628_s4 + $0x340] sm:%s3365_s22] %v215_v58  ;;  %218 = vst [vmem:[%s2628_s4 + $0x360] sm:%s3365_s22] %v217_v59 }
  0xff   : > { %v219_v60 = vld [vmem:[%s2624_s28 + $0x620] sm:%s3365_s22]  ;;  %v221_v61 = vld [vmem:[%s2624_s28 + $0x658] sm:%s3365_s22] }
 0x100   : > { %220 = vst [vmem:[%s2628_s4 + $0x380] sm:%s3365_s22] %v219_v60  ;;  %222 = vst [vmem:[%s2628_s4 + $0x3a0] sm:%s3365_s22] %v221_v61 }
 0x101   : > { %v223_v62 = vld [vmem:[%s2624_s28 + $0x690] sm:%s3365_s22]  ;;  %v225_v63 = vld [vmem:[%s2624_s28 + $0x6c8] sm:%s3365_s22] }
 0x102   : > { %224 = vst [vmem:[%s2628_s4 + $0x3c0] sm:%s3365_s22] %v223_v62  ;;  %226 = vst [vmem:[%s2628_s4 + $0x3e0] sm:%s3365_s22] %v225_v63 }
 0x103 PF: > { %p1821_p12 = scmp.ge.s32.totalorder %s2427_s14, 1  ;;  %p793_p13 = scmp.lt.s32.totalorder %s2427_s14, 3 }
 0x105   : > { %p794_p0 = pnand %p1821_p12, %p793_p13 }
 0x106   : > { %s800_s30 = sand.u32 (!%p794_p0), 1, %s2419_s12   ;;  %v833_v0 = vld [vmem:[%s3978_s0 + $0x8] sm:$0xff] (!%p794_p0)  ;;  %v964_v1 = vld [vmem:[%s3980_s2] sm:$0xff] (!%p794_p0)  ;;  %v2559_v2 = vmov (!%p794_p0), 0  }
 0x107   : > { %797 = sbr.rel (%p794_p0) target bundleno = 698 (0x2ba), region = 94  ;;  %s1822_s28 = sshll.u32 (!%p794_p0), %s800_s30, 10  ;;  %1040 = vmatprep.mubr.f32.mxu0 (!%p794_p0), %v833_v0  ;;  %1117 = vmatprep.mubr.f32.mxu1 (!%p794_p0), %v833_v0  ;;  %v965_v6 = vld [vmem:[%s3980_s2 + $0x8] sm:$0xff] (!%p794_p0) }
 0x108   : > { %2276 = vset.pattern.permute.xlu0 (!%p794_p0), %v2559_v2  ;;  %s3506_s14 = scalar_lea.vmem (!%p794_p0), [#allocation2], %s1822_s28  ;;  %s1823_s8 = sshll.u32 (!%p794_p0), %s800_s30, 6 }
 0x109   : > { %v837_v3 = vld [vmem:[%s3506_s14 + $0x8] sm:$0xff] (!%p794_p0)  ;;  %v839_v5 = vld [vmem:[%s3506_s14 + $0x18] sm:$0xff] (!%p794_p0)  ;;  %968 = vperm.xlu0 (!%p794_p0), %2276, %v964_v1   ;;  %v836_v9 = vld [vmem:[%s3506_s14] sm:$0xff] (!%p794_p0)  ;;  %s3650_s10 = scalar_lea.vmem (!%p794_p0), [#allocation3], %s1823_s8  }
 0x10a   : > { %v841_v4 = vld [vmem:[%s3506_s14 + $0x28] sm:$0xff] (!%p794_p0)  ;;  %v843_v8 = vld [vmem:[%s3506_s14 + $0x38] sm:$0xff] (!%p794_p0)  ;;  %v840_v10 = vld [vmem:[%s3506_s14 + $0x20] sm:$0xff] (!%p794_p0) }
 0x10b   : > { %v1863_v7 = vpack.c.bf16 (!%p794_p0), %v841_v4, %v837_v3  ;;  %v1927_v11 = vpack.c.bf16 (!%p794_p0), %v843_v8, %v839_v5  ;;  %v1865_v12 = vpack.c.bf16 (!%p794_p0), %v840_v10, %v836_v9  ;;  %v838_v13 = vld [vmem:[%s3506_s14 + $0x10] sm:$0xff] (!%p794_p0)  ;;  %v845_v15 = vld [vmem:[%s3506_s14 + $0x48] sm:$0xff] (!%p794_p0)  ;;  %v847_v18 = vld [vmem:[%s3506_s14 + $0x58] sm:$0xff] (!%p794_p0) }
 0x10c   : > { %v842_v14 = vld [vmem:[%s3506_s14 + $0x30] sm:$0xff] (!%p794_p0)  ;;  %v849_v17 = vld [vmem:[%s3506_s14 + $0x68] sm:$0xff] (!%p794_p0)  ;;  %v851_v19 = vld [vmem:[%s3506_s14 + $0x78] sm:$0xff] (!%p794_p0) }
 0x10d   : > { %1864 = vmatprep.subr.bf16.mxu0 (!%p794_p0), %v1863_v7  ;;  %v1929_v16 = vpack.c.bf16 (!%p794_p0), %v842_v14, %v838_v13  ;;  %1928 = vmatprep.subr.bf16.mxu1 (!%p794_p0), %v1927_v11  ;;  %v1867_v20 = vpack.c.bf16 (!%p794_p0), %v849_v17, %v845_v15  ;;  %v1931_v21 = vpack.c.bf16 (!%p794_p0), %v851_v19, %v847_v18  ;;  %v844_v22 = vld [vmem:[%s3506_s14 + $0x40] sm:$0xff] (!%p794_p0)  ;;  %v846_v24 = vld [vmem:[%s3506_s14 + $0x50] sm:$0xff] (!%p794_p0)  ;;  %v853_v27 = vld [vmem:[%s3506_s14 + $0x88] sm:$0xff] (!%p794_p0) }
 0x10e   : > { %1866 = vmatpush1.bf16.msra.mxu0 %v1865_v12  ;;  %v848_v23 = vld [vmem:[%s3506_s14 + $0x60] sm:$0xff]  ;;  %v850_v26 = vld [vmem:[%s3506_s14 + $0x70] sm:$0xff]  ;;  %v857_v28 = vld [vmem:[%s3506_s14 + $0xa8] sm:$0xff]  ;;  %973 = vperm.xlu0 %2276, %v965_v6   ;;  %s1825_s12 = sshll.u32 (%p2613_p5), %s2598_s15, 2  ;;  %s1858_s6 = sshll.u32 (%p2613_p5), %s2598_s15, 5 }
 0x10f   : > { %1930 = vmatpush1.bf16.msra.mxu1 %v1929_v16  ;;  %v1869_v25 = vpack.c.bf16 %v848_v23, %v844_v22  ;;  %1868 = vmatprep.subr.bf16.mxu0 %v1867_v20  ;;  %v1933_v29 = vpack.c.bf16 %v850_v26, %v846_v24  ;;  %v1871_v30 = vpack.c.bf16 %v857_v28, %v853_v27  ;;  %v855_v31 = vld [vmem:[%s3506_s14 + $0x98] sm:$0xff]  ;;  %v852_v33 = vld [vmem:[%s3506_s14 + $0x80] sm:$0xff]  ;;  %v854_v36 = vld [vmem:[%s3506_s14 + $0x90] sm:$0xff]  ;;  %s1154_s11 = ssub.s32 (%p2613_p5), 7, %s1825_s12  ;;  %s3667_s30 = scalar_lea.vmem (%p2613_p5), %s3981_s3, %s1858_s6  }
 0x110   : > { %1932 = vmatprep.subr.bf16.mxu1 %v1931_v21  ;;  %v859_v32 = vld [vmem:[%s3506_s14 + $0xb8] sm:$0xff]  ;;  %v856_v35 = vld [vmem:[%s3506_s14 + $0xa0] sm:$0xff]  ;;  %v858_v37 = vld [vmem:[%s3506_s14 + $0xb0] sm:$0xff]  ;;  %p1155_p1 = scmp.lt.s32.totalorder (%p2613_p5), %s1154_s11, 4 }
 0x111   : > { %v1935_v34 = vpack.c.bf16 %v859_v32, %v855_v31  ;;  %v1873_v38 = vpack.c.bf16 %v856_v35, %v852_v33  ;;  %v861_v39 = vld [vmem:[%s3506_s14 + $0xc8] sm:$0xff]  ;;  %v863_v41 = vld [vmem:[%s3506_s14 + $0xd8] sm:$0xff]  ;;  %v1937_v42 = vpack.c.bf16 %v858_v37, %v854_v36  ;;  %v860_v45 = vld [vmem:[%s3506_s14 + $0xc0] sm:$0xff] }
 0x112   : > { %1870 = vmatpush1.bf16.msra.mxu0 %v1869_v25  ;;  %v865_v40 = vld [vmem:[%s3506_s14 + $0xe8] sm:$0xff]  ;;  %v867_v44 = vld [vmem:[%s3506_s14 + $0xf8] sm:$0xff]  ;;  %v864_v46 = vld [vmem:[%s3506_s14 + $0xe0] sm:$0xff] }
 0x113   : > { %1934 = vmatpush1.bf16.msra.mxu1 %v1933_v29  ;;  %1872 = vmatprep.subr.bf16.mxu0 %v1871_v30  ;;  %v1875_v43 = vpack.c.bf16 %v865_v40, %v861_v39  ;;  %v1939_v47 = vpack.c.bf16 %v867_v44, %v863_v41  ;;  %v862_v48 = vld [vmem:[%s3506_s14 + $0xd0] sm:$0xff]  ;;  %v869_v50 = vld [vmem:[%s3506_s14 + $0x108] sm:$0xff]  ;;  %v871_v52 = vld [vmem:[%s3506_s14 + $0x118] sm:$0xff]  ;;  %v1877_v54 = vpack.c.bf16 %v864_v46, %v860_v45 }
 0x114   : > { %1936 = vmatprep.subr.bf16.mxu1 %v1935_v34  ;;  %v866_v49 = vld [vmem:[%s3506_s14 + $0xf0] sm:$0xff]  ;;  %v873_v51 = vld [vmem:[%s3506_s14 + $0x128] sm:$0xff]  ;;  %v875_v53 = vld [vmem:[%s3506_s14 + $0x138] sm:$0xff] }
 0x115   : > { %v1941_v55 = vpack.c.bf16 %v866_v49, %v862_v48  ;;  %v1879_v56 = vpack.c.bf16 %v873_v51, %v869_v50  ;;  %v868_v57 = vld [vmem:[%s3506_s14 + $0x100] sm:$0xff]  ;;  %v870_v59 = vld [vmem:[%s3506_s14 + $0x110] sm:$0xff]  ;;  %v1943_v60 = vpack.c.bf16 %v875_v53, %v871_v52  ;;  %v877_v62 = vld [vmem:[%s3506_s14 + $0x148] sm:$0xff] }
 0x116   : > { %1874 = vmatpush1.bf16.msra.mxu0 %v1873_v38  ;;  %v872_v58 = vld [vmem:[%s3506_s14 + $0x120] sm:$0xff]  ;;  %v874_v61 = vld [vmem:[%s3506_s14 + $0x130] sm:$0xff]  ;;  %v881_v63 = vld [vmem:[%s3506_s14 + $0x168] sm:$0xff] }
 0x117   : > { %1938 = vmatpush1.bf16.msra.mxu1 %v1937_v42  ;;  %1876 = vmatprep.subr.bf16.mxu0 %v1875_v43  ;;  %v879_v0 = vld [vmem:[%s3506_s14 + $0x158] sm:$0xff]  ;;  %v1881_v2 = vpack.c.bf16 %v872_v58, %v868_v57  ;;  %v1945_v3 = vpack.c.bf16 %v874_v61, %v870_v59  ;;  %v1883_v4 = vpack.c.bf16 %v881_v63, %v877_v62  ;;  %v876_v5 = vld [vmem:[%s3506_s14 + $0x140] sm:$0xff]  ;;  %v878_v7 = vld [vmem:[%s3506_s14 + $0x150] sm:$0xff] }
 0x118   : > { %1940 = vmatprep.subr.bf16.mxu1 %v1939_v47  ;;  %v883_v1 = vld [vmem:[%s3506_s14 + $0x178] sm:$0xff]  ;;  %v880_v6 = vld [vmem:[%s3506_s14 + $0x160] sm:$0xff]  ;;  %v882_v9 = vld [vmem:[%s3506_s14 + $0x170] sm:$0xff] }
 0x119   : > { %v1947_v8 = vpack.c.bf16 %v883_v1, %v879_v0  ;;  %v885_v10 = vld [vmem:[%s3506_s14 + $0x188] sm:$0xff]  ;;  %v887_v12 = vld [vmem:[%s3506_s14 + $0x198] sm:$0xff]  ;;  %v1885_v14 = vpack.c.bf16 %v880_v6, %v876_v5  ;;  %v1949_v15 = vpack.c.bf16 %v882_v9, %v878_v7  ;;  %v884_v17 = vld [vmem:[%s3506_s14 + $0x180] sm:$0xff] }
 0x11a   : > { %1878 = vmatpush1.bf16.msra.mxu0 %v1877_v54  ;;  %v889_v11 = vld [vmem:[%s3506_s14 + $0x1a8] sm:$0xff]  ;;  %v891_v13 = vld [vmem:[%s3506_s14 + $0x1b8] sm:$0xff]  ;;  %v888_v18 = vld [vmem:[%s3506_s14 + $0x1a0] sm:$0xff] }
 0x11b   : > { %1942 = vmatpush1.bf16.msra.mxu1 %v1941_v55  ;;  %1880 = vmatprep.subr.bf16.mxu0 %v1879_v56  ;;  %v1887_v16 = vpack.c.bf16 %v889_v11, %v885_v10  ;;  %v886_v19 = vld [vmem:[%s3506_s14 + $0x190] sm:$0xff]  ;;  %v1951_v20 = vpack.c.bf16 %v891_v13, %v887_v12  ;;  %v893_v22 = vld [vmem:[%s3506_s14 + $0x1c8] sm:$0xff]  ;;  %v895_v24 = vld [vmem:[%s3506_s14 + $0x1d8] sm:$0xff]  ;;  %v1889_v26 = vpack.c.bf16 %v888_v18, %v884_v17 }
 0x11c   : > { %1944 = vmatprep.subr.bf16.mxu1 %v1943_v60  ;;  %v890_v21 = vld [vmem:[%s3506_s14 + $0x1b0] sm:$0xff]  ;;  %v897_v23 = vld [vmem:[%s3506_s14 + $0x1e8] sm:$0xff]  ;;  %v899_v25 = vld [vmem:[%s3506_s14 + $0x1f8] sm:$0xff] }
 0x11d   : > { %v1953_v27 = vpack.c.bf16 %v890_v21, %v886_v19  ;;  %v1891_v28 = vpack.c.bf16 %v897_v23, %v893_v22  ;;  %v892_v29 = vld [vmem:[%s3506_s14 + $0x1c0] sm:$0xff]  ;;  %v894_v31 = vld [vmem:[%s3506_s14 + $0x1d0] sm:$0xff]  ;;  %v1955_v32 = vpack.c.bf16 %v899_v25, %v895_v24  ;;  %v901_v34 = vld [vmem:[%s3506_s14 + $0x208] sm:$0xff] }
 0x11e   : > { %1882 = vmatpush1.bf16.msra.mxu0 %v1881_v2  ;;  %v896_v30 = vld [vmem:[%s3506_s14 + $0x1e0] sm:$0xff]  ;;  %v898_v33 = vld [vmem:[%s3506_s14 + $0x1f0] sm:$0xff]  ;;  %v905_v35 = vld [vmem:[%s3506_s14 + $0x228] sm:$0xff] }
 0x11f   : > { %1946 = vmatpush1.bf16.msra.mxu1 %v1945_v3  ;;  %1884 = vmatprep.subr.bf16.mxu0 %v1883_v4  ;;  %v903_v36 = vld [vmem:[%s3506_s14 + $0x218] sm:$0xff]  ;;  %v1893_v38 = vpack.c.bf16 %v896_v30, %v892_v29  ;;  %v1957_v39 = vpack.c.bf16 %v898_v33, %v894_v31  ;;  %v1895_v40 = vpack.c.bf16 %v905_v35, %v901_v34  ;;  %v900_v41 = vld [vmem:[%s3506_s14 + $0x200] sm:$0xff]  ;;  %v902_v43 = vld [vmem:[%s3506_s14 + $0x210] sm:$0xff] }
 0x120   : > { %1948 = vmatprep.subr.bf16.mxu1 %v1947_v8  ;;  %v907_v37 = vld [vmem:[%s3506_s14 + $0x238] sm:$0xff]  ;;  %v904_v42 = vld [vmem:[%s3506_s14 + $0x220] sm:$0xff]  ;;  %v906_v45 = vld [vmem:[%s3506_s14 + $0x230] sm:$0xff] }
 0x121   : > { %v1959_v44 = vpack.c.bf16 %v907_v37, %v903_v36  ;;  %v909_v46 = vld [vmem:[%s3506_s14 + $0x248] sm:$0xff]  ;;  %v911_v48 = vld [vmem:[%s3506_s14 + $0x258] sm:$0xff]  ;;  %v1897_v50 = vpack.c.bf16 %v904_v42, %v900_v41  ;;  %v1961_v51 = vpack.c.bf16 %v906_v45, %v902_v43  ;;  %v908_v53 = vld [vmem:[%s3506_s14 + $0x240] sm:$0xff] }
 0x122   : > { %1886 = vmatpush1.bf16.msra.mxu0 %v1885_v14  ;;  %v913_v47 = vld [vmem:[%s3506_s14 + $0x268] sm:$0xff]  ;;  %v915_v49 = vld [vmem:[%s3506_s14 + $0x278] sm:$0xff]  ;;  %v912_v54 = vld [vmem:[%s3506_s14 + $0x260] sm:$0xff] }
 0x123   : > { %1950 = vmatpush1.bf16.msra.mxu1 %v1949_v15  ;;  %1888 = vmatprep.subr.bf16.mxu0 %v1887_v16  ;;  %v1899_v52 = vpack.c.bf16 %v913_v47, %v909_v46  ;;  %v910_v55 = vld [vmem:[%s3506_s14 + $0x250] sm:$0xff]  ;;  %v1963_v56 = vpack.c.bf16 %v915_v49, %v911_v48  ;;  %v917_v58 = vld [vmem:[%s3506_s14 + $0x288] sm:$0xff]  ;;  %v919_v60 = vld [vmem:[%s3506_s14 + $0x298] sm:$0xff]  ;;  %v1901_v62 = vpack.c.bf16 %v912_v54, %v908_v53 }
 0x124   : > { %1952 = vmatprep.subr.bf16.mxu1 %v1951_v20  ;;  %v914_v57 = vld [vmem:[%s3506_s14 + $0x270] sm:$0xff]  ;;  %v921_v59 = vld [vmem:[%s3506_s14 + $0x2a8] sm:$0xff]  ;;  %v923_v61 = vld [vmem:[%s3506_s14 + $0x2b8] sm:$0xff] }
 0x125   : > { %v1965_v63 = vpack.c.bf16 %v914_v57, %v910_v55  ;;  %v1903_v0 = vpack.c.bf16 %v921_v59, %v917_v58  ;;  %v916_v1 = vld [vmem:[%s3506_s14 + $0x280] sm:$0xff]  ;;  %v918_v3 = vld [vmem:[%s3506_s14 + $0x290] sm:$0xff]  ;;  %v1967_v4 = vpack.c.bf16 %v923_v61, %v919_v60  ;;  %v925_v6 = vld [vmem:[%s3506_s14 + $0x2c8] sm:$0xff] }
 0x126   : > { %1890 = vmatpush1.bf16.msra.mxu0 %v1889_v26  ;;  %v920_v2 = vld [vmem:[%s3506_s14 + $0x2a0] sm:$0xff]  ;;  %v922_v5 = vld [vmem:[%s3506_s14 + $0x2b0] sm:$0xff]  ;;  %v929_v7 = vld [vmem:[%s3506_s14 + $0x2e8] sm:$0xff] }
 0x127   : > { %1954 = vmatpush1.bf16.msra.mxu1 %v1953_v27  ;;  %1892 = vmatprep.subr.bf16.mxu0 %v1891_v28  ;;  %v927_v8 = vld [vmem:[%s3506_s14 + $0x2d8] sm:$0xff]  ;;  %v1905_v10 = vpack.c.bf16 %v920_v2, %v916_v1  ;;  %v1969_v11 = vpack.c.bf16 %v922_v5, %v918_v3  ;;  %v1907_v12 = vpack.c.bf16 %v929_v7, %v925_v6  ;;  %v924_v13 = vld [vmem:[%s3506_s14 + $0x2c0] sm:$0xff]  ;;  %v926_v15 = vld [vmem:[%s3506_s14 + $0x2d0] sm:$0xff] }
 0x128   : > { %1956 = vmatprep.subr.bf16.mxu1 %v1955_v32  ;;  %v931_v9 = vld [vmem:[%s3506_s14 + $0x2f8] sm:$0xff]  ;;  %v928_v14 = vld [vmem:[%s3506_s14 + $0x2e0] sm:$0xff]  ;;  %v930_v17 = vld [vmem:[%s3506_s14 + $0x2f0] sm:$0xff] }
 0x129   : > { %v1971_v16 = vpack.c.bf16 %v931_v9, %v927_v8  ;;  %v933_v18 = vld [vmem:[%s3506_s14 + $0x308] sm:$0xff]  ;;  %v935_v20 = vld [vmem:[%s3506_s14 + $0x318] sm:$0xff]  ;;  %v1909_v22 = vpack.c.bf16 %v928_v14, %v924_v13  ;;  %v1973_v23 = vpack.c.bf16 %v930_v17, %v926_v15  ;;  %v932_v25 = vld [vmem:[%s3506_s14 + $0x300] sm:$0xff] }
 0x12a   : > { %1894 = vmatpush1.bf16.msra.mxu0 %v1893_v38  ;;  %v937_v19 = vld [vmem:[%s3506_s14 + $0x328] sm:$0xff]  ;;  %v939_v21 = vld [vmem:[%s3506_s14 + $0x338] sm:$0xff]  ;;  %v936_v26 = vld [vmem:[%s3506_s14 + $0x320] sm:$0xff] }
 0x12b   : > { %1958 = vmatpush1.bf16.msra.mxu1 %v1957_v39  ;;  %1896 = vmatprep.subr.bf16.mxu0 %v1895_v40  ;;  %v1911_v24 = vpack.c.bf16 %v937_v19, %v933_v18  ;;  %v934_v27 = vld [vmem:[%s3506_s14 + $0x310] sm:$0xff]  ;;  %v1975_v28 = vpack.c.bf16 %v939_v21, %v935_v20  ;;  %v941_v30 = vld [vmem:[%s3506_s14 + $0x348] sm:$0xff]  ;;  %v943_v32 = vld [vmem:[%s3506_s14 + $0x358] sm:$0xff]  ;;  %v1913_v34 = vpack.c.bf16 %v936_v26, %v932_v25 }
 0x12c   : > { %1960 = vmatprep.subr.bf16.mxu1 %v1959_v44  ;;  %v938_v29 = vld [vmem:[%s3506_s14 + $0x330] sm:$0xff]  ;;  %v945_v31 = vld [vmem:[%s3506_s14 + $0x368] sm:$0xff]  ;;  %v947_v33 = vld [vmem:[%s3506_s14 + $0x378] sm:$0xff] }
 0x12d   : > { %v1977_v35 = vpack.c.bf16 %v938_v29, %v934_v27  ;;  %v1915_v36 = vpack.c.bf16 %v945_v31, %v941_v30  ;;  %v940_v37 = vld [vmem:[%s3506_s14 + $0x340] sm:$0xff]  ;;  %v942_v39 = vld [vmem:[%s3506_s14 + $0x350] sm:$0xff]  ;;  %v1979_v40 = vpack.c.bf16 %v947_v33, %v943_v32  ;;  %v949_v42 = vld [vmem:[%s3506_s14 + $0x388] sm:$0xff] }
 0x12e   : > { %1898 = vmatpush1.bf16.msra.mxu0 %v1897_v50  ;;  %v944_v38 = vld [vmem:[%s3506_s14 + $0x360] sm:$0xff]  ;;  %v946_v41 = vld [vmem:[%s3506_s14 + $0x370] sm:$0xff]  ;;  %v953_v43 = vld [vmem:[%s3506_s14 + $0x3a8] sm:$0xff] }
 0x12f   : > { %1962 = vmatpush1.bf16.msra.mxu1 %v1961_v51  ;;  %1900 = vmatprep.subr.bf16.mxu0 %v1899_v52  ;;  %v951_v44 = vld [vmem:[%s3506_s14 + $0x398] sm:$0xff]  ;;  %v1917_v46 = vpack.c.bf16 %v944_v38, %v940_v37  ;;  %v1981_v47 = vpack.c.bf16 %v946_v41, %v942_v39  ;;  %v1919_v48 = vpack.c.bf16 %v953_v43, %v949_v42  ;;  %v948_v49 = vld [vmem:[%s3506_s14 + $0x380] sm:$0xff]  ;;  %v950_v51 = vld [vmem:[%s3506_s14 + $0x390] sm:$0xff] }
 0x130   : > { %1964 = vmatprep.subr.bf16.mxu1 %v1963_v56  ;;  %v955_v45 = vld [vmem:[%s3506_s14 + $0x3b8] sm:$0xff]  ;;  %v952_v50 = vld [vmem:[%s3506_s14 + $0x3a0] sm:$0xff]  ;;  %v954_v53 = vld [vmem:[%s3506_s14 + $0x3b0] sm:$0xff] }
 0x131   : > { %v1983_v52 = vpack.c.bf16 %v955_v45, %v951_v44  ;;  %v957_v54 = vld [vmem:[%s3506_s14 + $0x3c8] sm:$0xff]  ;;  %v959_v56 = vld [vmem:[%s3506_s14 + $0x3d8] sm:$0xff]  ;;  %v1921_v58 = vpack.c.bf16 %v952_v50, %v948_v49  ;;  %v1985_v59 = vpack.c.bf16 %v954_v53, %v950_v51  ;;  %v956_v61 = vld [vmem:[%s3506_s14 + $0x3c0] sm:$0xff] }
 0x132   : > { %1902 = vmatpush1.bf16.msra.mxu0 %v1901_v62  ;;  %v961_v55 = vld [vmem:[%s3506_s14 + $0x3e8] sm:$0xff]  ;;  %v963_v57 = vld [vmem:[%s3506_s14 + $0x3f8] sm:$0xff]  ;;  %v960_v62 = vld [vmem:[%s3506_s14 + $0x3e0] sm:$0xff] }
 0x133   : > { %1966 = vmatpush1.bf16.msra.mxu1 %v1965_v63  ;;  %1904 = vmatprep.subr.bf16.mxu0 %v1903_v0  ;;  %v1923_v60 = vpack.c.bf16 %v961_v55, %v957_v54  ;;  %v1987_v63 = vpack.c.bf16 %v963_v57, %v959_v56  ;;  %v958_v0 = vld [vmem:[%s3506_s14 + $0x3d0] sm:$0xff]  ;;  %v1925_v2 = vpack.c.bf16 %v960_v62, %v956_v61  ;;  %v835_v5 = vld [vmem:[%s3978_s0 + $0x18] sm:$0xff] }
 0x134   : > { %1968 = vmatprep.subr.bf16.mxu1 %v1967_v4  ;;  %v962_v1 = vld [vmem:[%s3506_s14 + $0x3f0] sm:$0xff]  ;;  %v832_v4 = vld [vmem:[%s3978_s0] sm:$0xff] }
 0x135   : > { %v1989_v3 = vpack.c.bf16 %v962_v1, %v958_v0  ;;  %v834_v6 = vld [vmem:[%s3978_s0 + $0x10] sm:$0xff] }
 0x136   : > { %1906 = vmatpush1.bf16.msra.mxu0 %v1905_v10 }
 0x137   : > { %1970 = vmatpush1.bf16.msra.mxu1 %v1969_v11  ;;  %1908 = vmatprep.subr.bf16.mxu0 %v1907_v12 }
 0x138   : > { %1972 = vmatprep.subr.bf16.mxu1 %v1971_v16 }
 0x13a   : > { %1910 = vmatpush1.bf16.msra.mxu0 %v1909_v22 }
 0x13b   : > { %1974 = vmatpush1.bf16.msra.mxu1 %v1973_v23  ;;  %1912 = vmatprep.subr.bf16.mxu0 %v1911_v24 }
 0x13c   : > { %1976 = vmatprep.subr.bf16.mxu1 %v1975_v28 }
 0x13e   : > { %1914 = vmatpush1.bf16.msra.mxu0 %v1913_v34 }
 0x13f   : > { %1978 = vmatpush1.bf16.msra.mxu1 %v1977_v35  ;;  %1916 = vmatprep.subr.bf16.mxu0 %v1915_v36 }
 0x140   : > { %1980 = vmatprep.subr.bf16.mxu1 %v1979_v40 }
 0x142   : > { %1918 = vmatpush1.bf16.msra.mxu0 %v1917_v46 }
 0x143   : > { %1982 = vmatpush1.bf16.msra.mxu1 %v1981_v47  ;;  %1920 = vmatprep.subr.bf16.mxu0 %v1919_v48 }
 0x144   : > { %1984 = vmatprep.subr.bf16.mxu1 %v1983_v52 }
 0x146   : > { %1922 = vmatpush1.bf16.msra.mxu0 %v1921_v58 }
 0x147   : > { %1986 = vmatpush1.bf16.msra.mxu1 %v1985_v59  ;;  %1924 = vmatprep.subr.bf16.mxu0 %v1923_v60 }
 0x148   : > { %1988 = vmatprep.subr.bf16.mxu1 %v1987_v63 }
 0x14a   : > { %1926 = vmatpush1.bf16.msra.mxu0 %v1925_v2 }
 0x14b   : > { %1990 = vmatpush1.bf16.msra.mxu1 %v1989_v3 }
 0x14d   : > { %1041 = vmatmul.mubr.f32.vlgmr.msra.gmra.mrb[0].mxu0 %v832_v4 }
 0x14e   : > { %1118 = vmatmul.mubr.f32.vlgmr.msra.gmra.mrb[0].mxu1 %v832_v4  ;;  %1046 = vmatprep.mubr.f32.mxu0 %v835_v5 }
 0x14f   : > { %1123 = vmatprep.mubr.f32.mxu1 %v835_v5 }
 0x151   : > { %1047 = vmatmul.mubr.f32.gmra.mrb[2].mxu0 %v834_v6 }
 0x152   : > { %1124 = vmatmul.mubr.f32.gmra.mrb[2].mxu1 %v834_v6 }
 0x188   : > { %v969_v7 = vpop.permute.xlu0 %968 }
 0x18d   : > { %v974_v18 = vpop.permute.xlu0 %973 }
 0x220   : > { %v1042_v8 = vpop.f32.mrb[0].mxu0 }
 0x221   : > { %v1043_v9 = vadd.f32 %v1042_v8, %v969_v7  ;;  %v1119_v10 = vpop.f32.mrb[0].mxu1  ;;  %v1044_v11 = vpop.f32.mrb[1].mxu0 }
 0x222   : > { %v1120_v12 = vadd.f32 %v1119_v10, %v969_v7  ;;  %v1045_v13 = vadd.f32 %v1044_v11, %v969_v7  ;;  %v1121_v14 = vpop.f32.mrb[1].mxu1 }
 0x223   : > { %v1130_v15 = vmax.f32 %v1043_v9, 0.0  ;;  %v1122_v16 = vadd.f32 %v1121_v14, %v969_v7 }
 0x224   : > { %v1132_v17 = vmax.f32 %v1120_v12, 0.0  ;;  %v1131_v19 = vmax.f32 %v1045_v13, 0.0  ;;  %v1048_v20 = vpop.f32.mrb[2].mxu0 }
 0x225   : > { %1138 = vst [vmem:[%s3650_s10] sm:$0xff] %v1130_v15  ;;  %v1133_v21 = vmax.f32 %v1122_v16, 0.0  ;;  %v1049_v22 = vadd.f32 %v1048_v20, %v974_v18  ;;  %v1125_v23 = vpop.f32.mrb[2].mxu1  ;;  %v1050_v24 = vpop.f32.mrb[3].mxu0  ;;  %1152 = sbr.rel (!%p2613_p5) target bundleno = 698 (0x2ba), region = 102 }
 0x226   : > { %1140 = vst [vmem:[%s3650_s10 + $0x10] sm:$0xff] %v1132_v17  ;;  %1139 = vst [vmem:[%s3650_s10 + $0x8] sm:$0xff] %v1131_v19  ;;  %v1126_v25 = vadd.f32 %v1125_v23, %v974_v18  ;;  %v1051_v26 = vadd.f32 %v1050_v24, %v974_v18  ;;  %v1127_v27 = vpop.f32.mrb[3].mxu1 }
 0x227   : > { %1141 = vst [vmem:[%s3650_s10 + $0x18] sm:$0xff] %v1133_v21  ;;  %v1134_v28 = vmax.f32 %v1049_v22, 0.0  ;;  %v1128_v29 = vadd.f32 %v1127_v27, %v974_v18 }
 0x228   : > { %v1136_v30 = vmax.f32 %v1126_v25, 0.0  ;;  %v1135_v31 = vmax.f32 %v1051_v26, 0.0 }
 0x229   : > { %1142 = vst [vmem:[%s3650_s10 + $0x20] sm:$0xff] %v1134_v28  ;;  %v1137_v32 = vmax.f32 %v1128_v29, 0.0 }
 0x22a   : > { %1144 = vst [vmem:[%s3650_s10 + $0x30] sm:$0xff] %v1136_v30  ;;  %1143 = vst [vmem:[%s3650_s10 + $0x28] sm:$0xff] %v1135_v31 }
 0x22b   : > { %1145 = vst [vmem:[%s3650_s10 + $0x38] sm:$0xff] %v1137_v32 }
 0x22c   : > { %s4027_s11 = smov (!%p1155_p1, %s1154_s11), 4 }
 0x22d   : > { %s1826_s24 = sshll.u32 %s4027_s11, 8  ;;  %s3669_s7 = sshll.u32 %s4027_s11, 3 }
 0x22e   : > { %p1830_p2 = scmp.eq.s32.totalorder %s1826_s24, 0 }
 0x22f   : > { %p1165_p3 = scmp.lt.u32.totalorder (!%p1830_p2), %s3669_s7, 8 }
 0x230   : > { %1164 = sbr.rel (%p1830_p2) target bundleno = 698 (0x2ba), region = 106 }
 0x237   : > { %1168 = sbr.rel (%p1165_p3) target bundleno = 689 (0x2b1), region = 110  ;;  %s3673_s20 = sand.u32 (!%p1165_p3), 7, %s3669_s7  }
 0x238   : > { %p1186_p5 = scmp.eq.s32.totalorder (!%p1165_p3), %s3673_s20, 0  ;;  %p1831_p4 = scmp.ne.s32.totalorder (!%p1165_p3), %s3673_s20, 0 }
 0x23e   : > { %1189 = sbr.rel (%p1831_p4) target bundleno = 629 (0x275), region = 125  ;;  %s1190_s15 = sshrl.u32 (!%p1831_p4), %s3669_s7, 3 }
 0x23f   : > { %s3680_s28 = sshrl.u32 (!%p1831_p4), %s1190_s15, 5 }
 0x240   : > { %p1832_p6 = scmp.le.s32.totalorder (!%p1831_p4), %s3680_s28, 0 }
 0x245   : > { %1719 = sbr.rel (%p1832_p6) target bundleno = 609 (0x261), region = 273  ;;  %s4003_s4 = smov (!%p1832_p6), %s3667_s30 }
 0x246   : > { %s4004_s17 = smov (!%p1832_p6), %s3650_s10  ;;  %s3689_s14 = smov (!%p1832_p6), 0  }
 0x247   : > { %s3691_s18 = smov (!%p1832_p6), 0  }
 0x24c LB: >> { %v1203_v33 = vld [vmem:[%s2499_s17] sm:$0xff]  ;;  %v1205_v34 = vld [vmem:[%s2499_s17 + $0x8] sm:$0xff]  ;;  %v1207_v35 = vld [vmem:[%s2499_s17 + $0x10] sm:$0xff]  ;;  %s1331_s9 = sadd.s32 1, %s2503_s14  ;;  %s1197_s18 = sadd.s32 1, %s2507_s18   ;;  %s2507_s18 = sphi %s3691_s18, %s1197_s18   ;;  %s2503_s14 = sphi %s3689_s14, %s4007_s14   ;;  %s2499_s17 = sphi %s4004_s17, %s4006_s17   ;;  %s2495_s4 = sphi %s4003_s4, %s4005_s4  }
 0x24d   : >> { %1204 = vst [vmem:[%s2495_s4] sm:$0xff] %v1203_v33  ;;  %1206 = vst [vmem:[%s2495_s4 + $0x8] sm:$0xff] %v1205_v34  ;;  %v1209_v36 = vld [vmem:[%s2499_s17 + $0x18] sm:$0xff]  ;;  %v1211_v37 = vld [vmem:[%s2499_s17 + $0x20] sm:$0xff]  ;;  %p1332_p7 = scmp.ge.s32.totalorder %s1331_s9, %s3680_s28  ;;  %p1196_p8 = scmp.ge.s32.totalorder %s1197_s18, %s3680_s28 }
 0x24e   : >> { %1208 = vst [vmem:[%s2495_s4 + $0x10] sm:$0xff] %v1207_v35  ;;  %v1213_v38 = vld [vmem:[%s2499_s17 + $0x28] sm:$0xff]  ;;  %1210 = vst [vmem:[%s2495_s4 + $0x18] sm:$0xff] %v1209_v36  ;;  %v1215_v39 = vld [vmem:[%s2499_s17 + $0x30] sm:$0xff] }
 0x24f   : >> { %1212 = vst [vmem:[%s2495_s4 + $0x20] sm:$0xff] %v1211_v37  ;;  %1214 = vst [vmem:[%s2495_s4 + $0x28] sm:$0xff] %v1213_v38  ;;  %v1273_v40 = vld [vmem:[%s2499_s17 + $0x38] sm:$0xff]  ;;  %v1275_v41 = vld [vmem:[%s2499_s17 + $0x40] sm:$0xff]  ;;  %s4029_s9 = smov (%p1332_p7, %s1331_s9), 0 }
 0x250   : >> { %1268 = vst [vmem:[%s2495_s4 + $0x38] sm:$0xff] %v1211_v37  ;;  %1270 = vst [vmem:[%s2495_s4 + $0x40] sm:$0xff] %v1213_v38  ;;  %v1277_v42 = vld [vmem:[%s2499_s17 + $0x48] sm:$0xff]  ;;  %v1279_v43 = vld [vmem:[%s2499_s17 + $0x50] sm:$0xff]  ;;  %s1833_s23 = sshll.u32 %s4029_s9, 8  ;;  %s4007_s14 = smov %s4029_s9 }
 0x251   : >> { %1216 = vst [vmem:[%s2495_s4 + $0x30] sm:$0xff] %v1215_v39  ;;  %1272 = vst [vmem:[%s2495_s4 + $0x48] sm:$0xff] %v1215_v39  ;;  %v1281_v44 = vld [vmem:[%s2499_s17 + $0x58] sm:$0xff]  ;;  %v1283_v45 = vld [vmem:[%s2499_s17 + $0x60] sm:$0xff]  ;;  %s1336_s26 = scalar_lea.vmem %s3650_s10, %s1833_s23 [#allocation3]   ;;  %s1337_s27 = scalar_lea.vmem %s3667_s30, %s1833_s23  }
 0x252   : >> { %1274 = vst [vmem:[%s2495_s4 + $0x50] sm:$0xff] %v1273_v40  ;;  %1276 = vst [vmem:[%s2495_s4 + $0x58] sm:$0xff] %v1275_v41  ;;  %v1285_v46 = vld [vmem:[%s2499_s17 + $0x68] sm:$0xff]  ;;  %v1287_v47 = vld [vmem:[%s2499_s17 + $0x70] sm:$0xff] }
 0x253   : >> { %1278 = vst [vmem:[%s2495_s4 + $0x60] sm:$0xff] %v1277_v42  ;;  %1280 = vst [vmem:[%s2495_s4 + $0x68] sm:$0xff] %v1279_v43  ;;  %v1289_v48 = vld [vmem:[%s2499_s17 + $0x78] sm:$0xff]  ;;  %v1291_v49 = vld [vmem:[%s2499_s17 + $0x80] sm:$0xff] }
 0x254   : >> { %1282 = vst [vmem:[%s2495_s4 + $0x70] sm:$0xff] %v1281_v44  ;;  %1284 = vst [vmem:[%s2495_s4 + $0x78] sm:$0xff] %v1283_v45  ;;  %v1293_v50 = vld [vmem:[%s2499_s17 + $0x88] sm:$0xff]  ;;  %v1295_v51 = vld [vmem:[%s2499_s17 + $0x90] sm:$0xff] }
 0x255   : >> { %1286 = vst [vmem:[%s2495_s4 + $0x80] sm:$0xff] %v1285_v46  ;;  %1288 = vst [vmem:[%s2495_s4 + $0x88] sm:$0xff] %v1287_v47  ;;  %v1297_v52 = vld [vmem:[%s2499_s17 + $0x98] sm:$0xff]  ;;  %v1299_v53 = vld [vmem:[%s2499_s17 + $0xa0] sm:$0xff] }
 0x256   : >> { %1290 = vst [vmem:[%s2495_s4 + $0x90] sm:$0xff] %v1289_v48  ;;  %1292 = vst [vmem:[%s2495_s4 + $0x98] sm:$0xff] %v1291_v49  ;;  %v1301_v54 = vld [vmem:[%s2499_s17 + $0xa8] sm:$0xff]  ;;  %v1303_v55 = vld [vmem:[%s2499_s17 + $0xb0] sm:$0xff] }
 0x257   : >> { %1294 = vst [vmem:[%s2495_s4 + $0xa0] sm:$0xff] %v1293_v50  ;;  %1296 = vst [vmem:[%s2495_s4 + $0xa8] sm:$0xff] %v1295_v51  ;;  %v1305_v56 = vld [vmem:[%s2499_s17 + $0xb8] sm:$0xff]  ;;  %v1307_v57 = vld [vmem:[%s2499_s17 + $0xc0] sm:$0xff] }
 0x258   : >> { %1298 = vst [vmem:[%s2495_s4 + $0xb0] sm:$0xff] %v1297_v52  ;;  %1300 = vst [vmem:[%s2495_s4 + $0xb8] sm:$0xff] %v1299_v53  ;;  %v1309_v58 = vld [vmem:[%s2499_s17 + $0xc8] sm:$0xff]  ;;  %v1311_v59 = vld [vmem:[%s2499_s17 + $0xd0] sm:$0xff] }
 0x259   : >> { %1302 = vst [vmem:[%s2495_s4 + $0xc0] sm:$0xff] %v1301_v54  ;;  %1304 = vst [vmem:[%s2495_s4 + $0xc8] sm:$0xff] %v1303_v55  ;;  %v1313_v60 = vld [vmem:[%s2499_s17 + $0xd8] sm:$0xff]  ;;  %v1315_v61 = vld [vmem:[%s2499_s17 + $0xe0] sm:$0xff] }
 0x25a   : >> { %1306 = vst [vmem:[%s2495_s4 + $0xd0] sm:$0xff] %v1305_v56  ;;  %1308 = vst [vmem:[%s2495_s4 + $0xd8] sm:$0xff] %v1307_v57  ;;  %v1317_v62 = vld [vmem:[%s2499_s17 + $0xe8] sm:$0xff]  ;;  %v1319_v63 = vld [vmem:[%s2499_s17 + $0xf0] sm:$0xff]  ;;  %1199 = sbr.rel (!%p1196_p8) target bundleno = 588 (0x24c), region = 279 }
 0x25b   : >> { %1310 = vst [vmem:[%s2495_s4 + $0xe0] sm:$0xff] %v1309_v58  ;;  %1312 = vst [vmem:[%s2495_s4 + $0xe8] sm:$0xff] %v1311_v59  ;;  %v1321_v0 = vld [vmem:[%s2499_s17 + $0xf8] sm:$0xff]  ;;  %v1323_v1 = vld [vmem:[%s2499_s17 + $0x100] sm:$0xff] }
 0x25c   : >> { %1314 = vst [vmem:[%s2495_s4 + $0xf0] sm:$0xff] %v1313_v60  ;;  %1316 = vst [vmem:[%s2495_s4 + $0xf8] sm:$0xff] %v1315_v61  ;;  %v1325_v2 = vld [vmem:[%s2499_s17 + $0x108] sm:$0xff]  ;;  %v1327_v3 = vld [vmem:[%s2499_s17 + $0x110] sm:$0xff] }
 0x25d   : >> { %1318 = vst [vmem:[%s2495_s4 + $0x100] sm:$0xff] %v1317_v62  ;;  %1320 = vst [vmem:[%s2495_s4 + $0x108] sm:$0xff] %v1319_v63  ;;  %v1329_v4 = vld [vmem:[%s2499_s17 + $0x118] sm:$0xff]  ;;  %s4006_s17 = smov %s1336_s26 }
 0x25e   : >> { %1322 = vst [vmem:[%s2495_s4 + $0x110] sm:$0xff] %v1321_v0  ;;  %1324 = vst [vmem:[%s2495_s4 + $0x118] sm:$0xff] %v1323_v1 }
 0x25f   : >> { %1326 = vst [vmem:[%s2495_s4 + $0x120] sm:$0xff] %v1325_v2  ;;  %1328 = vst [vmem:[%s2495_s4 + $0x128] sm:$0xff] %v1327_v3 }
 0x260   : >> { %1330 = vst [vmem:[%s2495_s4 + $0x130] sm:$0xff] %v1329_v4  ;;  %s4005_s4 = smov %s1337_s27 }
 0x261 PF: > { %s3800_s29 = sand.u32 31, %s1190_s15   ;;  %s1859_s21 = sshll.u32 %s3680_s28, 12 }
 0x262   : > { %s1342_s25 = sshra.s32 %s1859_s21, 4  ;;  %p1838_p9 = scmp.le.s32.totalorder %s3800_s29, 0 }
 0x263   : > { %s3804_s8 = scalar_lea.vmem %s3650_s10, %s1342_s25 [#allocation3]   ;;  %s1346_s12 = scalar_lea.vmem %s3667_s30, %s1342_s25  }
 0x264   : > { %1733 = sbr.rel (%p1838_p9) target bundleno = 629 (0x275), region = 284  ;;  %s2509_s6 = smov (!%p1838_p9), %s1346_s12  }
 0x265   : > { %s2513_s11 = smov (!%p1838_p9), %s3804_s8   ;;  %s2517_s5 = smov (!%p1838_p9), 0  }
 0x266   : > { %s2521_s22 = smov (!%p1838_p9), 0  }
 0x26b LB: >> { %v1358_v5 = vld [vmem:[%s2515_s11] sm:$0xff]  ;;  %s1362_s24 = sadd.s32 1, %s2519_s5  ;;  %s1352_s22 = sadd.s32 1, %s2523_s22   ;;  %s2523_s22 = sphi %s2521_s22, %s1352_s22   ;;  %s2519_s5 = sphi %s2517_s5, %s2518_s5   ;;  %s2515_s11 = sphi %s2513_s11, %s1367_s11   ;;  %s2511_s6 = sphi %s2509_s6, %s1368_s6  }
 0x26c   : >> { %v1360_v6 = vld [vmem:[%s2515_s11 + $0x20] sm:$0xff]  ;;  %1359 = vst [vmem:[%s2511_s6] sm:$0xff] %v1358_v5  ;;  %p1363_p10 = scmp.ge.s32.totalorder %s1362_s24, %s3800_s29  ;;  %p1351_p11 = scmp.ge.s32.totalorder %s1352_s22, %s3800_s29 }
 0x26d   : >> { %1361 = vst [vmem:[%s2511_s6 + $0x38] sm:$0xff] %v1360_v6 }
 0x26e   : >> { %s4031_s24 = smov (%p1363_p10, %s1362_s24), 0  ;;  %1354 = sbr.rel (!%p1351_p11) target bundleno = 619 (0x26b), region = 290 }
 0x26f   : >> { %s1839_s15 = sshll.u32 %s4031_s24, 3  ;;  %s2518_s5 = smov %s4031_s24  }
 0x270   : >> { %s1367_s11 = scalar_lea.vmem %s3804_s8, %s1839_s15 [#allocation3]   ;;  %s1368_s6 = scalar_lea.vmem %s1346_s12, %s1839_s15  }
 0x275 PF: > { %1371 = sbr.rel (%p1186_p5) target bundleno = 689 (0x2b1), region = 143  ;;  %s1373_s28 = ssub.s32 (!%p1186_p5), %s3669_s7, %s3673_s20 }
 0x276   : > { %s1377_s4 = sshrl.u32 (!%p1186_p5), %s3669_s7, 3  ;;  %s3818_s17 = scalar_lea.vmem (!%p1186_p5), %s3650_s10, %s1373_s28 [#allocation3] }
 0x277   : > { %s3821_s14 = scalar_lea.vmem (!%p1186_p5), %s3667_s30, %s1373_s28  ;;  %s3825_s18 = sshrl.u32 (!%p1186_p5), %s1377_s4, 5 }
 0x278   : > { %p1841_p12 = scmp.le.s32.totalorder (!%p1186_p5), %s3825_s18, 0 }
 0x27c   : > { %1747 = sbr.rel (%p1841_p12) target bundleno = 664 (0x298), region = 295  ;;  %s4008_s9 = smov (!%p1841_p12), %s3667_s30 }
 0x27d   : > { %s4009_s23 = smov (!%p1841_p12), %s3650_s10  ;;  %s3834_s26 = smov (!%p1841_p12), 0  }
 0x27e   : > { %s3836_s27 = smov (!%p1841_p12), 0  }
 0x283 LB: >> { %v1390_v7 = vld [vmem:[%s2531_s23] sm:$0xff]  ;;  %v1392_v8 = vld [vmem:[%s2531_s23 + $0x8] sm:$0xff]  ;;  %v1394_v9 = vld [vmem:[%s2531_s23 + $0x10] sm:$0xff]  ;;  %s1518_s29 = sadd.s32 1, %s2535_s26  ;;  %s1384_s27 = sadd.s32 1, %s2539_s27   ;;  %s2539_s27 = sphi %s3836_s27, %s1384_s27   ;;  %s2535_s26 = sphi %s3834_s26, %s4012_s26   ;;  %s2531_s23 = sphi %s4009_s23, %s4011_s23   ;;  %s2527_s9 = sphi %s4008_s9, %s4010_s9  }
 0x284   : >> { %1391 = vst [vmem:[%s2527_s9] sm:$0xff] %v1390_v7  ;;  %1393 = vst [vmem:[%s2527_s9 + $0x8] sm:$0xff] %v1392_v8  ;;  %v1396_v10 = vld [vmem:[%s2531_s23 + $0x18] sm:$0xff]  ;;  %v1398_v11 = vld [vmem:[%s2531_s23 + $0x20] sm:$0xff]  ;;  %p1519_p13 = scmp.ge.s32.totalorder %s1518_s29, %s3825_s18  ;;  %p1383_p0 = scmp.ge.s32.totalorder %s1384_s27, %s3825_s18 }
 0x285   : >> { %1395 = vst [vmem:[%s2527_s9 + $0x10] sm:$0xff] %v1394_v9  ;;  %v1400_v12 = vld [vmem:[%s2531_s23 + $0x28] sm:$0xff]  ;;  %1397 = vst [vmem:[%s2527_s9 + $0x18] sm:$0xff] %v1396_v10  ;;  %v1402_v13 = vld [vmem:[%s2531_s23 + $0x30] sm:$0xff] }
 0x286   : >> { %1399 = vst [vmem:[%s2527_s9 + $0x20] sm:$0xff] %v1398_v11  ;;  %1401 = vst [vmem:[%s2527_s9 + $0x28] sm:$0xff] %v1400_v12  ;;  %v1460_v14 = vld [vmem:[%s2531_s23 + $0x38] sm:$0xff]  ;;  %v1462_v15 = vld [vmem:[%s2531_s23 + $0x40] sm:$0xff]  ;;  %s4033_s29 = smov (%p1519_p13, %s1518_s29), 0 }
 0x287   : >> { %1455 = vst [vmem:[%s2527_s9 + $0x38] sm:$0xff] %v1398_v11  ;;  %1457 = vst [vmem:[%s2527_s9 + $0x40] sm:$0xff] %v1400_v12  ;;  %v1464_v16 = vld [vmem:[%s2531_s23 + $0x48] sm:$0xff]  ;;  %v1466_v17 = vld [vmem:[%s2531_s23 + $0x50] sm:$0xff]  ;;  %s1842_s21 = sshll.u32 %s4033_s29, 8  ;;  %s4012_s26 = smov %s4033_s29 }
 0x288   : >> { %1403 = vst [vmem:[%s2527_s9 + $0x30] sm:$0xff] %v1402_v13  ;;  %1459 = vst [vmem:[%s2527_s9 + $0x48] sm:$0xff] %v1402_v13  ;;  %v1468_v18 = vld [vmem:[%s2531_s23 + $0x58] sm:$0xff]  ;;  %v1470_v19 = vld [vmem:[%s2531_s23 + $0x60] sm:$0xff]  ;;  %s1523_s25 = scalar_lea.vmem %s3650_s10, %s1842_s21 [#allocation3]   ;;  %s1524_s8 = scalar_lea.vmem %s3667_s30, %s1842_s21  }
 0x289   : >> { %1461 = vst [vmem:[%s2527_s9 + $0x50] sm:$0xff] %v1460_v14  ;;  %1463 = vst [vmem:[%s2527_s9 + $0x58] sm:$0xff] %v1462_v15  ;;  %v1472_v20 = vld [vmem:[%s2531_s23 + $0x68] sm:$0xff]  ;;  %v1474_v21 = vld [vmem:[%s2531_s23 + $0x70] sm:$0xff] }
 0x28a   : >> { %1465 = vst [vmem:[%s2527_s9 + $0x60] sm:$0xff] %v1464_v16  ;;  %1467 = vst [vmem:[%s2527_s9 + $0x68] sm:$0xff] %v1466_v17  ;;  %v1476_v22 = vld [vmem:[%s2531_s23 + $0x78] sm:$0xff]  ;;  %v1478_v23 = vld [vmem:[%s2531_s23 + $0x80] sm:$0xff] }
 0x28b   : >> { %1469 = vst [vmem:[%s2527_s9 + $0x70] sm:$0xff] %v1468_v18  ;;  %1471 = vst [vmem:[%s2527_s9 + $0x78] sm:$0xff] %v1470_v19  ;;  %v1480_v24 = vld [vmem:[%s2531_s23 + $0x88] sm:$0xff]  ;;  %v1482_v25 = vld [vmem:[%s2531_s23 + $0x90] sm:$0xff] }
 0x28c   : >> { %1473 = vst [vmem:[%s2527_s9 + $0x80] sm:$0xff] %v1472_v20  ;;  %1475 = vst [vmem:[%s2527_s9 + $0x88] sm:$0xff] %v1474_v21  ;;  %v1484_v26 = vld [vmem:[%s2531_s23 + $0x98] sm:$0xff]  ;;  %v1486_v27 = vld [vmem:[%s2531_s23 + $0xa0] sm:$0xff] }
 0x28d   : >> { %1477 = vst [vmem:[%s2527_s9 + $0x90] sm:$0xff] %v1476_v22  ;;  %1479 = vst [vmem:[%s2527_s9 + $0x98] sm:$0xff] %v1478_v23  ;;  %v1488_v28 = vld [vmem:[%s2531_s23 + $0xa8] sm:$0xff]  ;;  %v1490_v29 = vld [vmem:[%s2531_s23 + $0xb0] sm:$0xff] }
 0x28e   : >> { %1481 = vst [vmem:[%s2527_s9 + $0xa0] sm:$0xff] %v1480_v24  ;;  %1483 = vst [vmem:[%s2527_s9 + $0xa8] sm:$0xff] %v1482_v25  ;;  %v1492_v30 = vld [vmem:[%s2531_s23 + $0xb8] sm:$0xff]  ;;  %v1494_v31 = vld [vmem:[%s2531_s23 + $0xc0] sm:$0xff] }
 0x28f   : >> { %1485 = vst [vmem:[%s2527_s9 + $0xb0] sm:$0xff] %v1484_v26  ;;  %1487 = vst [vmem:[%s2527_s9 + $0xb8] sm:$0xff] %v1486_v27  ;;  %v1496_v32 = vld [vmem:[%s2531_s23 + $0xc8] sm:$0xff]  ;;  %v1498_v33 = vld [vmem:[%s2531_s23 + $0xd0] sm:$0xff] }
 0x290   : >> { %1489 = vst [vmem:[%s2527_s9 + $0xc0] sm:$0xff] %v1488_v28  ;;  %1491 = vst [vmem:[%s2527_s9 + $0xc8] sm:$0xff] %v1490_v29  ;;  %v1500_v34 = vld [vmem:[%s2531_s23 + $0xd8] sm:$0xff]  ;;  %v1502_v35 = vld [vmem:[%s2531_s23 + $0xe0] sm:$0xff] }
 0x291   : >> { %1493 = vst [vmem:[%s2527_s9 + $0xd0] sm:$0xff] %v1492_v30  ;;  %1495 = vst [vmem:[%s2527_s9 + $0xd8] sm:$0xff] %v1494_v31  ;;  %v1504_v36 = vld [vmem:[%s2531_s23 + $0xe8] sm:$0xff]  ;;  %v1506_v37 = vld [vmem:[%s2531_s23 + $0xf0] sm:$0xff]  ;;  %1386 = sbr.rel (!%p1383_p0) target bundleno = 643 (0x283), region = 301 }
 0x292   : >> { %1497 = vst [vmem:[%s2527_s9 + $0xe0] sm:$0xff] %v1496_v32  ;;  %1499 = vst [vmem:[%s2527_s9 + $0xe8] sm:$0xff] %v1498_v33  ;;  %v1508_v38 = vld [vmem:[%s2531_s23 + $0xf8] sm:$0xff]  ;;  %v1510_v39 = vld [vmem:[%s2531_s23 + $0x100] sm:$0xff] }
 0x293   : >> { %1501 = vst [vmem:[%s2527_s9 + $0xf0] sm:$0xff] %v1500_v34  ;;  %1503 = vst [vmem:[%s2527_s9 + $0xf8] sm:$0xff] %v1502_v35  ;;  %v1512_v40 = vld [vmem:[%s2531_s23 + $0x108] sm:$0xff]  ;;  %v1514_v41 = vld [vmem:[%s2531_s23 + $0x110] sm:$0xff] }
 0x294   : >> { %1505 = vst [vmem:[%s2527_s9 + $0x100] sm:$0xff] %v1504_v36  ;;  %1507 = vst [vmem:[%s2527_s9 + $0x108] sm:$0xff] %v1506_v37  ;;  %v1516_v42 = vld [vmem:[%s2531_s23 + $0x118] sm:$0xff]  ;;  %s4011_s23 = smov %s1523_s25 }
 0x295   : >> { %1509 = vst [vmem:[%s2527_s9 + $0x110] sm:$0xff] %v1508_v38  ;;  %1511 = vst [vmem:[%s2527_s9 + $0x118] sm:$0xff] %v1510_v39 }
 0x296   : >> { %1513 = vst [vmem:[%s2527_s9 + $0x120] sm:$0xff] %v1512_v40  ;;  %1515 = vst [vmem:[%s2527_s9 + $0x128] sm:$0xff] %v1514_v41 }
 0x297   : >> { %1517 = vst [vmem:[%s2527_s9 + $0x130] sm:$0xff] %v1516_v42  ;;  %s4010_s9 = smov %s1524_s8 }
 0x298 PF: > { %s3945_s12 = sand.u32 31, %s1377_s4   ;;  %s1861_s6 = sshll.u32 %s3825_s18, 12 }
 0x299   : > { %s1529_s11 = sshra.s32 %s1861_s6, 4  ;;  %p1847_p1 = scmp.le.s32.totalorder %s3945_s12, 0 }
 0x29a   : > { %s3949_s5 = scalar_lea.vmem %s3650_s10, %s1529_s11 [#allocation3]   ;;  %s1533_s22 = scalar_lea.vmem %s3667_s30, %s1529_s11  }
 0x29b   : > { %1761 = sbr.rel (%p1847_p1) target bundleno = 684 (0x2ac), region = 306  ;;  %s2541_s24 = smov (!%p1847_p1), %s1533_s22  }
 0x29c   : > { %s2545_s15 = smov (!%p1847_p1), %s3949_s5   ;;  %s2549_s28 = smov (!%p1847_p1), 0  }
 0x29d   : > { %s2553_s9 = smov (!%p1847_p1), 0  }
 0x2a2 LB: >> { %v1545_v43 = vld [vmem:[%s2547_s15] sm:$0xff]  ;;  %s1549_s4 = sadd.s32 1, %s2551_s28  ;;  %s1539_s9 = sadd.s32 1, %s2555_s9   ;;  %s2555_s9 = sphi %s2553_s9, %s1539_s9   ;;  %s2551_s28 = sphi %s2549_s28, %s2550_s28   ;;  %s2547_s15 = sphi %s2545_s15, %s1554_s15   ;;  %s2543_s24 = sphi %s2541_s24, %s1555_s24  }
 0x2a3   : >> { %v1547_v44 = vld [vmem:[%s2547_s15 + $0x20] sm:$0xff]  ;;  %1546 = vst [vmem:[%s2543_s24] sm:$0xff] %v1545_v43  ;;  %p1550_p2 = scmp.ge.s32.totalorder %s1549_s4, %s3945_s12  ;;  %p1538_p3 = scmp.ge.s32.totalorder %s1539_s9, %s3945_s12 }
 0x2a4   : >> { %1548 = vst [vmem:[%s2543_s24 + $0x38] sm:$0xff] %v1547_v44 }
 0x2a5   : >> { %s4035_s4 = smov (%p1550_p2, %s1549_s4), 0  ;;  %1541 = sbr.rel (!%p1538_p3) target bundleno = 674 (0x2a2), region = 312 }
 0x2a6   : >> { %s1848_s18 = sshll.u32 %s4035_s4, 3  ;;  %s2550_s28 = smov %s4035_s4  }
 0x2a7   : >> { %s1554_s15 = scalar_lea.vmem %s3949_s5, %s1848_s18 [#allocation3]   ;;  %s1555_s24 = scalar_lea.vmem %s1533_s22, %s1848_s18  }
 0x2ac PF: > { %s2560_s23 = smov 0  }
 0x2ad   : > { %s1556_s26 = sshllo.u32 %s2560_s23, %s3673_s20 }
 0x2ae   : > { %v1565_v45 = vld [vmem:[%s3818_s17] sm:%s1556_s26] }
 0x2af   : > { %v1567_v46 = vld [vmem:[%s3818_s17 + $0x20] sm:%s1556_s26]  ;;  %1566 = vst [vmem:[%s3821_s14] sm:%s1556_s26] %v1565_v45 }
 0x2b0   : > { %1568 = vst [vmem:[%s3821_s14 + $0x38] sm:%s1556_s26] %v1567_v46 }
 0x2b1 PF: > { %p1850_p5 = scmp.ge.u32.totalorder %s3669_s7, 8 }
 0x2b2   : > { %s2561_s27 = smov (!%p1850_p5), 0  }
 0x2b3   : > { %1171 = sbr.rel (%p1850_p5) target bundleno = 698 (0x2ba), region = 114  ;;  %s1172_s29 = sshllo.u32 (!%p1850_p5), %s2561_s27, %s3669_s7 }
 0x2b4   : > { %v1181_v47 = vld [vmem:[%s3650_s10] sm:%s1172_s29] (!%p1850_p5) }
 0x2b5   : > { %v1183_v48 = vld [vmem:[%s3650_s10 + $0x20] sm:%s1172_s29] (!%p1850_p5)  ;;  %1182 = vst [vmem:[%s3667_s30] sm:%s1172_s29] (!%p1850_p5), %v1181_v47 }
 0x2b6   : > { %1184 = vst [vmem:[%s3667_s30 + $0x38] sm:%s1172_s29] (!%p1850_p5), %v1183_v48 }
 0x2ba PF: > { %p10_p4 = scmp.ge.s32.totalorder %s2601_s16, 4   ;;  %s4013_s12 = smov %s2423_s13 }
 0x2bb   : > { %s4014_s13 = smov %s2611_s19  ;;  %s4015_s14 = smov %s2601_s16 }
 0x2bc   :  { %12 = sbr.rel (!%p10_p4) target bundleno = 2 (0x2), region = 323 }

// kernel: cnn_forward.4
= control target key start
LH: loop header
LB: loop body
LE: loop exit
PB: predicated region body
PF: predicated region fallthrough
CT: control target
= control target key end

     0   :  { %s766_s12 = smov 0   ;;  %s768_s13 = smov 0   ;;  %s968_s0 = inlined_call_operand.vmem [shape: f32[32,256], index: 0, kind: input, shape index: {}]   ;;  %s969_s1 = inlined_call_operand.vmem [shape: f32[256,162], index: 1, kind: input, shape index: {}]   ;;  %s970_s2 = inlined_call_operand.vmem [shape: f32[32,1], index: 2, kind: input, shape index: {}]   ;;  %s971_s3 = inlined_call_operand.vmem [shape: f32[32,162], index: 3, kind: output, shape index: {}]  }
   0x1   :  { %s770_s14 = smov 0  }
   0x2 LB: > { %s589_s15 = sadd.s32 4294967295, %s743_s14   ;;  %s783_s16 = sadd.s32 1, %s743_s14   ;;  %s743_s14 = sphi %s770_s14, %s975_s14   ;;  %s739_s13 = sphi %s768_s13, %s974_s13   ;;  %s735_s12 = sphi %s766_s12, %s973_s12  }
   0x3   : > { %s38_s17 = ssub.s32 %s743_s14, %s783_s16  ;;  %s41_s18 = sadd.s32 1, %s739_s13 }
   0x4   : > { %p39_p0 = scmp.eq.s32.totalorder %s38_s17, 0  ;;  %p48_p1 = scmp.ne.s32.totalorder %s739_s13, %s735_s12 }
   0x5   : > { %p49_p2 = scmp.eq.s32.totalorder %s743_s14, 0  ;;  %p99_p3 = scmp.eq.s32.totalorder %s589_s15, 1 }
   0x6   : > { %s794_s19 = scalar_select %p39_p0, %s739_s13, %s41_s18  }
   0x7   : > { %p50_p4 = por %p49_p2, %p48_p1  ;;  %p796_p5 = por %p99_p3, %p48_p1 }
   0x8   : > { %p592_p6 = scmp.ge.s32.totalorder %s743_s14, 2 }
   0xa   : > { %127 = sbr.rel (%p592_p6) target bundleno = 37 (0x25), region = 24 }
  0x11   : > { %130 = sbr.rel (!%p50_p4) target bundleno = 37 (0x25), region = 28  ;;  %s132_s21 = sand.u32 (%p50_p4), 1, %s739_s13  }
  0x12   : > { %s594_s22 = sshll.u32 (%p50_p4), %s743_s14, 3  ;;  %s593_s23 = sshll.u32 (%p50_p4), %s132_s21, 8 }
  0x13   : > { %s806_s26 = scalar_lea.vmem (%p50_p4), %s969_s1, %s594_s22  ;;  %s811_s27 = scalar_lea.vmem (%p50_p4), [#allocation2], %s593_s23 }
  0x14   : > { %v226_v0 = vld [vmem:[%s806_s26] sm:$0xff] (%p50_p4)  ;;  %v228_v1 = vld [vmem:[%s806_s26 + $0x10] sm:$0xff] (%p50_p4) }
  0x15   : > { %v230_v2 = vld [vmem:[%s806_s26 + $0x20] sm:$0xff] (%p50_p4)  ;;  %227 = vst [vmem:[%s811_s27] sm:$0xff] (%p50_p4), %v226_v0  ;;  %229 = vst [vmem:[%s811_s27 + $0x8] sm:$0xff] (%p50_p4), %v228_v1  ;;  %v232_v3 = vld [vmem:[%s806_s26 + $0x30] sm:$0xff] (%p50_p4) }
  0x16   : > { %231 = vst [vmem:[%s811_s27 + $0x10] sm:$0xff] (%p50_p4), %v230_v2  ;;  %v234_v4 = vld [vmem:[%s806_s26 + $0x40] sm:$0xff] (%p50_p4)  ;;  %v236_v5 = vld [vmem:[%s806_s26 + $0x50] sm:$0xff] (%p50_p4)  ;;  %233 = vst [vmem:[%s811_s27 + $0x18] sm:$0xff] (%p50_p4), %v232_v3 }
  0x17   : > { %235 = vst [vmem:[%s811_s27 + $0x20] sm:$0xff] (%p50_p4), %v234_v4  ;;  %237 = vst [vmem:[%s811_s27 + $0x28] sm:$0xff] (%p50_p4), %v236_v5  ;;  %v238_v6 = vld [vmem:[%s806_s26 + $0x60] sm:$0xff] (%p50_p4)  ;;  %v240_v7 = vld [vmem:[%s806_s26 + $0x70] sm:$0xff] (%p50_p4) }
  0x18   : > { %v242_v8 = vld [vmem:[%s806_s26 + $0x80] sm:$0xff]  ;;  %239 = vst [vmem:[%s811_s27 + $0x30] sm:$0xff] %v238_v6  ;;  %241 = vst [vmem:[%s811_s27 + $0x38] sm:$0xff] %v240_v7  ;;  %v244_v9 = vld [vmem:[%s806_s26 + $0x90] sm:$0xff] }
  0x19   : > { %243 = vst [vmem:[%s811_s27 + $0x40] sm:$0xff] %v242_v8  ;;  %v246_v10 = vld [vmem:[%s806_s26 + $0xa0] sm:$0xff]  ;;  %v248_v11 = vld [vmem:[%s806_s26 + $0xb0] sm:$0xff]  ;;  %245 = vst [vmem:[%s811_s27 + $0x48] sm:$0xff] %v244_v9 }
  0x1a   : > { %247 = vst [vmem:[%s811_s27 + $0x50] sm:$0xff] %v246_v10  ;;  %249 = vst [vmem:[%s811_s27 + $0x58] sm:$0xff] %v248_v11  ;;  %v250_v12 = vld [vmem:[%s806_s26 + $0xc0] sm:$0xff]  ;;  %v252_v13 = vld [vmem:[%s806_s26 + $0xd0] sm:$0xff] }
  0x1b   : > { %v254_v14 = vld [vmem:[%s806_s26 + $0xe0] sm:$0xff]  ;;  %251 = vst [vmem:[%s811_s27 + $0x60] sm:$0xff] %v250_v12  ;;  %253 = vst [vmem:[%s811_s27 + $0x68] sm:$0xff] %v252_v13  ;;  %v256_v15 = vld [vmem:[%s806_s26 + $0xf0] sm:$0xff] }
  0x1c   : > { %255 = vst [vmem:[%s811_s27 + $0x70] sm:$0xff] %v254_v14  ;;  %v258_v16 = vld [vmem:[%s806_s26 + $0x100] sm:$0xff]  ;;  %v260_v17 = vld [vmem:[%s806_s26 + $0x110] sm:$0xff]  ;;  %257 = vst [vmem:[%s811_s27 + $0x78] sm:$0xff] %v256_v15 }
  0x1d   : > { %259 = vst [vmem:[%s811_s27 + $0x80] sm:$0xff] %v258_v16  ;;  %261 = vst [vmem:[%s811_s27 + $0x88] sm:$0xff] %v260_v17  ;;  %v262_v18 = vld [vmem:[%s806_s26 + $0x120] sm:$0xff]  ;;  %v264_v19 = vld [vmem:[%s806_s26 + $0x130] sm:$0xff] }
  0x1e   : > { %v266_v20 = vld [vmem:[%s806_s26 + $0x140] sm:$0xff]  ;;  %263 = vst [vmem:[%s811_s27 + $0x90] sm:$0xff] %v262_v18  ;;  %265 = vst [vmem:[%s811_s27 + $0x98] sm:$0xff] %v264_v19  ;;  %v268_v21 = vld [vmem:[%s806_s26 + $0x150] sm:$0xff] }
  0x1f   : > { %267 = vst [vmem:[%s811_s27 + $0xa0] sm:$0xff] %v266_v20  ;;  %v270_v22 = vld [vmem:[%s806_s26 + $0x160] sm:$0xff]  ;;  %v272_v23 = vld [vmem:[%s806_s26 + $0x170] sm:$0xff]  ;;  %269 = vst [vmem:[%s811_s27 + $0xa8] sm:$0xff] %v268_v21 }
  0x20   : > { %271 = vst [vmem:[%s811_s27 + $0xb0] sm:$0xff] %v270_v22  ;;  %273 = vst [vmem:[%s811_s27 + $0xb8] sm:$0xff] %v272_v23  ;;  %v274_v24 = vld [vmem:[%s806_s26 + $0x180] sm:$0xff]  ;;  %v276_v25 = vld [vmem:[%s806_s26 + $0x190] sm:$0xff] }
  0x21   : > { %v278_v26 = vld [vmem:[%s806_s26 + $0x1a0] sm:$0xff]  ;;  %275 = vst [vmem:[%s811_s27 + $0xc0] sm:$0xff] %v274_v24  ;;  %277 = vst [vmem:[%s811_s27 + $0xc8] sm:$0xff] %v276_v25  ;;  %v280_v27 = vld [vmem:[%s806_s26 + $0x1b0] sm:$0xff] }
  0x22   : > { %279 = vst [vmem:[%s811_s27 + $0xd0] sm:$0xff] %v278_v26  ;;  %v282_v28 = vld [vmem:[%s806_s26 + $0x1c0] sm:$0xff]  ;;  %v284_v29 = vld [vmem:[%s806_s26 + $0x1d0] sm:$0xff]  ;;  %281 = vst [vmem:[%s811_s27 + $0xd8] sm:$0xff] %v280_v27 }
  0x23   : > { %283 = vst [vmem:[%s811_s27 + $0xe0] sm:$0xff] %v282_v28  ;;  %285 = vst [vmem:[%s811_s27 + $0xe8] sm:$0xff] %v284_v29  ;;  %v286_v30 = vld [vmem:[%s806_s26 + $0x1e0] sm:$0xff]  ;;  %v288_v31 = vld [vmem:[%s806_s26 + $0x1f0] sm:$0xff] }
  0x24   : > { %287 = vst [vmem:[%s811_s27 + $0xf0] sm:$0xff] %v286_v30  ;;  %289 = vst [vmem:[%s811_s27 + $0xf8] sm:$0xff] %v288_v31 }
  0x25 PF: > { %p595_p7 = scmp.ge.s32.totalorder %s743_s14, 1  ;;  %p294_p8 = scmp.lt.s32.totalorder %s743_s14, 3 }
  0x27   : > { %p295_p9 = pnand %p595_p7, %p294_p8 }
  0x28   : > { %s301_s28 = sand.u32 (!%p295_p9), 1, %s735_s12   ;;  %v324_v32 = vld [vmem:[%s968_s0 + $0x8] sm:$0xff] (!%p295_p9)  ;;  %v745_v34 = vmov (!%p295_p9), 0   ;;  %v365_v35 = vld [vmem:[%s970_s2 + $0x10] sm:$0xff] (!%p295_p9)  ;;  %v363_v61 = vld [vmem:[%s970_s2] sm:$0xff] (!%p295_p9) }
  0x29   : > { %298 = sbr.rel (%p295_p9) target bundleno = 310 (0x136), region = 66  ;;  %v328_v33 = vld [vmem:[%s968_s0 + $0x28] sm:$0xff] (!%p295_p9)  ;;  %s596_s6 = sshll.u32 (!%p295_p9), %s301_s28, 8  ;;  %451 = vmatprep.mubr.f32.mxu0 (!%p295_p9), %v324_v32  ;;  %720 = vset.pattern.permute.xlu1 (!%p295_p9), %v745_v34  ;;  %v366_v62 = vld [vmem:[%s970_s2 + $0x18] sm:$0xff] (!%p295_p9)  ;;  %v323_v23 = vld [vmem:[%s968_s0] sm:$0xff] (!%p295_p9) }
  0x2a   : > { %461 = vmatprep.mubr.f32.mxu1 (!%p295_p9), %v328_v33  ;;  %719 = vset.pattern.permute.xlu0 (!%p295_p9), %v745_v34  ;;  %s888_s9 = scalar_lea.vmem (!%p295_p9), [#allocation2], %s596_s6  ;;  %v364_v0 = vld [vmem:[%s970_s2 + $0x8] sm:$0xff] (!%p295_p9)  ;;  %v327_v24 = vld [vmem:[%s968_s0 + $0x20] sm:$0xff] (!%p295_p9)  ;;  %v326_v25 = vld [vmem:[%s968_s0 + $0x18] sm:$0xff] (!%p295_p9) }
  0x2b   : > { %v347_v36 = vld [vmem:[%s888_s9 + $0x80] sm:$0xff] (!%p295_p9)  ;;  %v348_v37 = vld [vmem:[%s888_s9 + $0x88] sm:$0xff] (!%p295_p9)  ;;  %379 = vperm.xlu1 (!%p295_p9), %720, %v365_v35   ;;  %v349_v41 = vld [vmem:[%s888_s9 + $0x90] sm:$0xff] (!%p295_p9)  ;;  %369 = vperm.xlu0 (!%p295_p9), %719, %v363_v61  }
  0x2c   : > { %v331_v38 = vld [vmem:[%s888_s9] sm:$0xff] (!%p295_p9)  ;;  %v646_v39 = vpack.c.bf16 (!%p295_p9), %v348_v37, %v347_v36  ;;  %v332_v40 = vld [vmem:[%s888_s9 + $0x8] sm:$0xff] (!%p295_p9)  ;;  %v350_v42 = vld [vmem:[%s888_s9 + $0x98] sm:$0xff] (!%p295_p9) }
  0x2d   : > { %v648_v43 = vpack.c.bf16 (!%p295_p9), %v332_v40, %v331_v38  ;;  %v650_v44 = vpack.c.bf16 (!%p295_p9), %v350_v42, %v349_v41  ;;  %v333_v45 = vld [vmem:[%s888_s9 + $0x10] sm:$0xff] (!%p295_p9)  ;;  %v334_v46 = vld [vmem:[%s888_s9 + $0x18] sm:$0xff] (!%p295_p9)  ;;  %v351_v47 = vld [vmem:[%s888_s9 + $0xa0] sm:$0xff] (!%p295_p9) }
  0x2e   : > { %647 = vmatprep.subr.bf16.mxu0 (!%p295_p9), %v646_v39  ;;  %678 = vmatprep.subr.bf16.mxu1 (!%p295_p9), %v646_v39  ;;  %v352_v48 = vld [vmem:[%s888_s9 + $0xa8] sm:$0xff] (!%p295_p9)  ;;  %v652_v49 = vpack.c.bf16 (!%p295_p9), %v334_v46, %v333_v45  ;;  %v335_v51 = vld [vmem:[%s888_s9 + $0x20] sm:$0xff] (!%p295_p9)  ;;  %v353_v53 = vld [vmem:[%s888_s9 + $0xb0] sm:$0xff] (!%p295_p9) }
  0x2f   : > { %649 = vmatpush3.bf16.msra.mxu0 (!%p295_p9), %v648_v43  ;;  %686 = vmatpush3.bf16.msra.mxu1 (!%p295_p9), %v648_v43  ;;  %v654_v50 = vpack.c.bf16 (!%p295_p9), %v352_v48, %v351_v47  ;;  %v336_v52 = vld [vmem:[%s888_s9 + $0x28] sm:$0xff] (!%p295_p9)  ;;  %v354_v54 = vld [vmem:[%s888_s9 + $0xb8] sm:$0xff] (!%p295_p9)  ;;  %v337_v57 = vld [vmem:[%s888_s9 + $0x30] sm:$0xff] (!%p295_p9) }
  0x30   : > { %651 = vmatprep.subr.bf16.mxu0 %v650_v44  ;;  %679 = vmatprep.subr.bf16.mxu1 %v650_v44  ;;  %v656_v55 = vpack.c.bf16 %v336_v52, %v335_v51  ;;  %v658_v56 = vpack.c.bf16 %v354_v54, %v353_v53  ;;  %v338_v58 = vld [vmem:[%s888_s9 + $0x38] sm:$0xff]  ;;  %v355_v59 = vld [vmem:[%s888_s9 + $0xc0] sm:$0xff]  ;;  %v356_v60 = vld [vmem:[%s888_s9 + $0xc8] sm:$0xff]  ;;  %s599_s12 = sshll.u32 (%p796_p5), %s589_s15, 3 }
  0x31   : > { %v660_v63 = vpack.c.bf16 %v338_v58, %v337_v57  ;;  %v662_v1 = vpack.c.bf16 %v356_v60, %v355_v59  ;;  %v339_v2 = vld [vmem:[%s888_s9 + $0x40] sm:$0xff]  ;;  %v340_v3 = vld [vmem:[%s888_s9 + $0x48] sm:$0xff]  ;;  %v357_v4 = vld [vmem:[%s888_s9 + $0xd0] sm:$0xff]  ;;  %384 = vperm.xlu1 %720, %v366_v62   ;;  %374 = vperm.xlu0 %719, %v364_v0   ;;  %s488_s17 = scalar_lea.vmem (%p796_p5), %s971_s3, %s599_s12 }
  0x32   : > { %v358_v5 = vld [vmem:[%s888_s9 + $0xd8] sm:$0xff]  ;;  %v664_v6 = vpack.c.bf16 %v340_v3, %v339_v2  ;;  %v341_v8 = vld [vmem:[%s888_s9 + $0x50] sm:$0xff]  ;;  %v359_v10 = vld [vmem:[%s888_s9 + $0xe0] sm:$0xff] }
  0x33   : > { %653 = vmatpush3.bf16.msra.mxu0 %v652_v49  ;;  %687 = vmatpush3.bf16.msra.mxu1 %v652_v49  ;;  %v666_v7 = vpack.c.bf16 %v358_v5, %v357_v4  ;;  %v342_v9 = vld [vmem:[%s888_s9 + $0x58] sm:$0xff]  ;;  %v360_v11 = vld [vmem:[%s888_s9 + $0xe8] sm:$0xff]  ;;  %v343_v14 = vld [vmem:[%s888_s9 + $0x60] sm:$0xff] }
  0x34   : > { %655 = vmatprep.subr.bf16.mxu0 %v654_v50  ;;  %680 = vmatprep.subr.bf16.mxu1 %v654_v50  ;;  %v668_v12 = vpack.c.bf16 %v342_v9, %v341_v8  ;;  %v670_v13 = vpack.c.bf16 %v360_v11, %v359_v10  ;;  %v344_v15 = vld [vmem:[%s888_s9 + $0x68] sm:$0xff]  ;;  %v361_v16 = vld [vmem:[%s888_s9 + $0xf0] sm:$0xff]  ;;  %v362_v17 = vld [vmem:[%s888_s9 + $0xf8] sm:$0xff] }
  0x35   : > { %v672_v18 = vpack.c.bf16 %v344_v15, %v343_v14  ;;  %v674_v19 = vpack.c.bf16 %v362_v17, %v361_v16  ;;  %v345_v20 = vld [vmem:[%s888_s9 + $0x70] sm:$0xff]  ;;  %v346_v21 = vld [vmem:[%s888_s9 + $0x78] sm:$0xff]  ;;  %s597_s9 = sshll.u32 %s301_s28, 5 }
  0x36   : > { %v676_v22 = vpack.c.bf16 %v346_v21, %v345_v20  ;;  %v330_v26 = vld [vmem:[%s968_s0 + $0x38] sm:$0xff]  ;;  %v325_v27 = vld [vmem:[%s968_s0 + $0x10] sm:$0xff]  ;;  %s322_s10 = scalar_lea.vmem [#allocation3], %s597_s9 }
  0x37   : > { %657 = vmatpush3.bf16.msra.mxu0 %v656_v55  ;;  %688 = vmatpush3.bf16.msra.mxu1 %v656_v55  ;;  %v329_v28 = vld [vmem:[%s968_s0 + $0x30] sm:$0xff] }
  0x38   : > { %659 = vmatprep.subr.bf16.mxu0 %v658_v56  ;;  %681 = vmatprep.subr.bf16.mxu1 %v658_v56 }
  0x3b   : > { %661 = vmatpush3.bf16.msra.mxu0 %v660_v63  ;;  %689 = vmatpush3.bf16.msra.mxu1 %v660_v63 }
  0x3c   : > { %663 = vmatprep.subr.bf16.mxu0 %v662_v1  ;;  %682 = vmatprep.subr.bf16.mxu1 %v662_v1 }
  0x3f   : > { %665 = vmatpush3.bf16.msra.mxu0 %v664_v6  ;;  %690 = vmatpush3.bf16.msra.mxu1 %v664_v6 }
  0x40   : > { %667 = vmatprep.subr.bf16.mxu0 %v666_v7  ;;  %683 = vmatprep.subr.bf16.mxu1 %v666_v7 }
  0x43   : > { %669 = vmatpush3.bf16.msra.mxu0 %v668_v12  ;;  %691 = vmatpush3.bf16.msra.mxu1 %v668_v12 }
  0x44   : > { %671 = vmatprep.subr.bf16.mxu0 %v670_v13  ;;  %684 = vmatprep.subr.bf16.mxu1 %v670_v13 }
  0x47   : > { %673 = vmatpush3.bf16.msra.mxu0 %v672_v18  ;;  %692 = vmatpush3.bf16.msra.mxu1 %v672_v18 }
  0x48   : > { %675 = vmatprep.subr.bf16.mxu0 %v674_v19  ;;  %685 = vmatprep.subr.bf16.mxu1 %v674_v19 }
  0x4b   : > { %677 = vmatpush3.bf16.msra.mxu0 %v676_v22  ;;  %693 = vmatpush3.bf16.msra.mxu1 %v676_v22 }
  0x4e   : > { %452 = vmatmul.mubr.f32.vlgmr.msra.gmra.mrb[0].mxu0 %v323_v23  ;;  %462 = vmatmul.mubr.f32.vlgmr.msra.gmra.mrb[0].mxu1 %v327_v24 }
  0x4f   : > { %456 = vmatprep.mubr.f32.mxu0 %v326_v25  ;;  %466 = vmatprep.mubr.f32.mxu1 %v330_v26 }
  0x52   : > { %457 = vmatmul.mubr.f32.gmra.mrb[2].mxu0 %v325_v27  ;;  %467 = vmatmul.mubr.f32.gmra.mrb[2].mxu1 %v329_v28 }
  0xaa   : > { %v380_v29 = vpop.permute.xlu1 %379  ;;  %v370_v30 = vpop.permute.xlu0 %369 }
  0xb0   : > { %v385_v47 = vpop.permute.xlu1 %384  ;;  %v375_v48 = vpop.permute.xlu0 %374 }
 0x121   : > { %v634_v31 = vpop.f32.mrb[0].mxu0  ;;  %v640_v32 = vpop.f32.mrb[0].mxu1 }
 0x122   : > { %v635_v33 = vpop.f32.mrb[1].mxu0  ;;  %v641_v34 = vpop.f32.mrb[1].mxu1 }
 0x123   : > { %v636_v35 = vadd.f32 %v635_v33, %v634_v31  ;;  %v642_v36 = vadd.f32 %v641_v34, %v640_v32 }
 0x125   : > { %v454_v37 = vadd.f32 %v636_v35, %v370_v30  ;;  %v464_v38 = vadd.f32 %v642_v36, %v380_v29  ;;  %v637_v39 = vpop.f32.mrb[2].mxu0  ;;  %v643_v40 = vpop.f32.mrb[2].mxu1 }
 0x126   : > { %v638_v41 = vpop.f32.mrb[3].mxu0  ;;  %v644_v42 = vpop.f32.mrb[3].mxu1 }
 0x127   : > { %v472_v43 = vmax.f32 %v454_v37, 0.0  ;;  %v474_v44 = vmax.f32 %v464_v38, 0.0  ;;  %v639_v45 = vadd.f32 %v638_v41, %v637_v39  ;;  %v645_v46 = vadd.f32 %v644_v42, %v643_v40  ;;  %486 = sbr.rel (!%p796_p5) target bundleno = 310 (0x136), region = 74 }
 0x129   : > { %476 = vst [vmem:[%s322_s10] sm:$0xff] %v472_v43  ;;  %478 = vst [vmem:[%s322_s10 + $0x10] sm:$0xff] %v474_v44  ;;  %v459_v49 = vadd.f32 %v639_v45, %v375_v48  ;;  %v469_v50 = vadd.f32 %v645_v46, %v385_v47 }
 0x12b   : > { %v473_v51 = vmax.f32 %v459_v49, 0.0  ;;  %v475_v52 = vmax.f32 %v469_v50, 0.0 }
 0x12d   : > { %477 = vst [vmem:[%s322_s10 + $0x8] sm:$0xff] %v473_v51  ;;  %479 = vst [vmem:[%s322_s10 + $0x18] sm:$0xff] %v475_v52 }
 0x130   : > { %v522_v53 = vld [vmem:[%s322_s10] sm:$0xff]  ;;  %v526_v55 = vld [vmem:[%s322_s10 + $0x10] sm:$0xff] }
 0x131   : > { %523 = vst [vmem:[%s488_s17] sm:$0xff] %v522_v53  ;;  %527 = vst [vmem:[%s488_s17 + $0x20] sm:$0xff] %v526_v55 }
 0x134   : > { %v524_v54 = vld [vmem:[%s322_s10 + $0x8] sm:$0xff]  ;;  %v528_v56 = vld [vmem:[%s322_s10 + $0x18] sm:$0xff] }
 0x135   : > { %525 = vst [vmem:[%s488_s17 + $0x10] sm:$0xff] %v524_v54  ;;  %529 = vst [vmem:[%s488_s17 + $0x30] sm:$0xff] %v528_v56 }
 0x136 PF: > { %p10_p10 = scmp.ge.s32.totalorder %s783_s16, 4   ;;  %s973_s12 = smov %s739_s13 }
 0x137   : > { %s974_s13 = smov %s794_s19  ;;  %s975_s14 = smov %s783_s16 }
 0x138   :  { %12 = sbr.rel (!%p10_p10) target bundleno = 2 (0x2), region = 143 }

// kernel: cnn_forward.5
= control target key start
LH: loop header
LB: loop body
LE: loop exit
PB: predicated region body
PF: predicated region fallthrough
CT: control target
= control target key end

     0   :  { %vm701_vm0 = vcmask 261120   ;;  %s4485_s1 = inlined_call_operand.vmem [shape: f32[2592,256], index: 1, kind: input, shape index: {}]   ;;  %s4486_s0 = inlined_call_operand.vmem [shape: f32[8,2592], index: 0, kind: input, shape index: {}]   ;;  %s4487_s3 = inlined_call_operand.vmem [shape: f32[256,128], index: 3, kind: input, shape index: {}]   ;;  %s4488_s2 = inlined_call_operand.vmem [shape: f32[1,256], index: 2, kind: input, shape index: {}]   ;;  %s4489_s4 = inlined_call_operand.vmem [shape: f32[1,128], index: 4, kind: input, shape index: {}]   ;;  %s4490_s5 = inlined_call_operand.vmem [shape: f32[8,128], index: 5, kind: output, shape index: {}]  }
   0x1   :  { %v42_v0 = vld [vmem:[%s4485_s1 + $0x8] sm:$0xff]  ;;  %v44_v1 = vld [vmem:[%s4485_s1 + $0x18] sm:$0xff]  ;;  %v41_v5 = vld [vmem:[%s4485_s1] sm:$0xff] }
   0x2   :  { %v362_v2 = vld [vmem:[%s4485_s1 + $0xa08] sm:$0xff]  ;;  %v1639_v3 = vpack.c.bf16 %v44_v1, %v42_v0  ;;  %v364_v4 = vld [vmem:[%s4485_s1 + $0xa18] sm:$0xff]  ;;  %v43_v6 = vld [vmem:[%s4485_s1 + $0x10] sm:$0xff] }
   0x3   :  { %v1959_v7 = vpack.c.bf16 %v364_v4, %v362_v2  ;;  %v1641_v8 = vpack.c.bf16 %v43_v6, %v41_v5  ;;  %v361_v9 = vld [vmem:[%s4485_s1 + $0xa00] sm:$0xff]  ;;  %v363_v10 = vld [vmem:[%s4485_s1 + $0xa10] sm:$0xff]  ;;  %v46_v11 = vld [vmem:[%s4485_s1 + $0x28] sm:$0xff] }
   0x4   :  { %1640 = vmatprep.subr.bf16.mxu1 %v1639_v3  ;;  %v1961_v12 = vpack.c.bf16 %v363_v10, %v361_v9  ;;  %v48_v13 = vld [vmem:[%s4485_s1 + $0x38] sm:$0xff]  ;;  %v366_v14 = vld [vmem:[%s4485_s1 + $0xa28] sm:$0xff]  ;;  %v45_v18 = vld [vmem:[%s4485_s1 + $0x20] sm:$0xff] }
   0x5   :  { %v368_v15 = vld [vmem:[%s4485_s1 + $0xa38] sm:$0xff]  ;;  %1960 = vmatprep.subr.bf16.mxu0 %v1959_v7  ;;  %1642 = vmatpush1.bf16.msra.mxu1 %v1641_v8  ;;  %v1643_v16 = vpack.c.bf16 %v48_v13, %v46_v11  ;;  %v47_v19 = vld [vmem:[%s4485_s1 + $0x30] sm:$0xff]  ;;  %v365_v20 = vld [vmem:[%s4485_s1 + $0xa20] sm:$0xff] }
   0x6   :  { %v1963_v17 = vpack.c.bf16 %v368_v15, %v366_v14  ;;  %1962 = vmatpush1.bf16.msra.mxu0 %v1961_v12  ;;  %v1645_v21 = vpack.c.bf16 %v47_v19, %v45_v18  ;;  %v367_v22 = vld [vmem:[%s4485_s1 + $0xa30] sm:$0xff]  ;;  %v50_v23 = vld [vmem:[%s4485_s1 + $0x48] sm:$0xff]  ;;  %v52_v24 = vld [vmem:[%s4485_s1 + $0x58] sm:$0xff] }
   0x7   :  { %1644 = vmatprep.subr.bf16.mxu1 %v1643_v16  ;;  %v1965_v25 = vpack.c.bf16 %v367_v22, %v365_v20  ;;  %v1647_v26 = vpack.c.bf16 %v52_v24, %v50_v23  ;;  %v370_v27 = vld [vmem:[%s4485_s1 + $0xa48] sm:$0xff]  ;;  %v372_v28 = vld [vmem:[%s4485_s1 + $0xa58] sm:$0xff]  ;;  %v49_v29 = vld [vmem:[%s4485_s1 + $0x40] sm:$0xff] }
   0x8   :  { %1964 = vmatprep.subr.bf16.mxu0 %v1963_v17  ;;  %v1967_v30 = vpack.c.bf16 %v372_v28, %v370_v27  ;;  %v51_v31 = vld [vmem:[%s4485_s1 + $0x50] sm:$0xff]  ;;  %v369_v32 = vld [vmem:[%s4485_s1 + $0xa40] sm:$0xff]  ;;  %v54_v35 = vld [vmem:[%s4485_s1 + $0x68] sm:$0xff] }
   0x9   :  { %v371_v33 = vld [vmem:[%s4485_s1 + $0xa50] sm:$0xff]  ;;  %1646 = vmatpush1.bf16.msra.mxu1 %v1645_v21  ;;  %v1649_v34 = vpack.c.bf16 %v51_v31, %v49_v29  ;;  %v56_v36 = vld [vmem:[%s4485_s1 + $0x78] sm:$0xff]  ;;  %v374_v37 = vld [vmem:[%s4485_s1 + $0xa68] sm:$0xff] }
   0xa   :  { %1966 = vmatpush1.bf16.msra.mxu0 %v1965_v25  ;;  %1648 = vmatprep.subr.bf16.mxu1 %v1647_v26  ;;  %v1969_v38 = vpack.c.bf16 %v371_v33, %v369_v32  ;;  %v1651_v39 = vpack.c.bf16 %v56_v36, %v54_v35  ;;  %v376_v40 = vld [vmem:[%s4485_s1 + $0xa78] sm:$0xff]  ;;  %v53_v41 = vld [vmem:[%s4485_s1 + $0x60] sm:$0xff]  ;;  %v55_v42 = vld [vmem:[%s4485_s1 + $0x70] sm:$0xff] }
   0xb   :  { %1968 = vmatprep.subr.bf16.mxu0 %v1967_v30  ;;  %v1971_v43 = vpack.c.bf16 %v376_v40, %v374_v37  ;;  %v373_v44 = vld [vmem:[%s4485_s1 + $0xa60] sm:$0xff]  ;;  %v375_v45 = vld [vmem:[%s4485_s1 + $0xa70] sm:$0xff]  ;;  %v58_v46 = vld [vmem:[%s4485_s1 + $0x88] sm:$0xff]  ;;  %v1653_v50 = vpack.c.bf16 %v55_v42, %v53_v41 }
   0xc   :  { %v60_v47 = vld [vmem:[%s4485_s1 + $0x98] sm:$0xff]  ;;  %v378_v48 = vld [vmem:[%s4485_s1 + $0xa88] sm:$0xff]  ;;  %v1973_v51 = vpack.c.bf16 %v375_v45, %v373_v44  ;;  %v57_v53 = vld [vmem:[%s4485_s1 + $0x80] sm:$0xff] }
   0xd   :  { %v380_v49 = vld [vmem:[%s4485_s1 + $0xa98] sm:$0xff]  ;;  %1650 = vmatpush1.bf16.msra.mxu1 %v1649_v34  ;;  %v1655_v52 = vpack.c.bf16 %v60_v47, %v58_v46  ;;  %v59_v54 = vld [vmem:[%s4485_s1 + $0x90] sm:$0xff]  ;;  %v377_v55 = vld [vmem:[%s4485_s1 + $0xa80] sm:$0xff] }
   0xe   :  { %1970 = vmatpush1.bf16.msra.mxu0 %v1969_v38  ;;  %1652 = vmatprep.subr.bf16.mxu1 %v1651_v39  ;;  %v1975_v56 = vpack.c.bf16 %v380_v49, %v378_v48  ;;  %v379_v57 = vld [vmem:[%s4485_s1 + $0xa90] sm:$0xff]  ;;  %v62_v58 = vld [vmem:[%s4485_s1 + $0xa8] sm:$0xff]  ;;  %v64_v59 = vld [vmem:[%s4485_s1 + $0xb8] sm:$0xff]  ;;  %v1657_v62 = vpack.c.bf16 %v59_v54, %v57_v53 }
   0xf   :  { %1972 = vmatprep.subr.bf16.mxu0 %v1971_v43  ;;  %v382_v60 = vld [vmem:[%s4485_s1 + $0xaa8] sm:$0xff]  ;;  %v384_v61 = vld [vmem:[%s4485_s1 + $0xab8] sm:$0xff]  ;;  %v1977_v63 = vpack.c.bf16 %v379_v57, %v377_v55  ;;  %v1659_v0 = vpack.c.bf16 %v64_v59, %v62_v58  ;;  %v61_v1 = vld [vmem:[%s4485_s1 + $0xa0] sm:$0xff] }
  0x10   :  { %v63_v2 = vld [vmem:[%s4485_s1 + $0xb0] sm:$0xff]  ;;  %v381_v3 = vld [vmem:[%s4485_s1 + $0xaa0] sm:$0xff]  ;;  %v1979_v4 = vpack.c.bf16 %v384_v61, %v382_v60  ;;  %v66_v6 = vld [vmem:[%s4485_s1 + $0xc8] sm:$0xff] }
  0x11   :  { %1654 = vmatpush1.bf16.msra.mxu1 %v1653_v50  ;;  %v383_v5 = vld [vmem:[%s4485_s1 + $0xab0] sm:$0xff]  ;;  %v68_v7 = vld [vmem:[%s4485_s1 + $0xd8] sm:$0xff]  ;;  %v386_v8 = vld [vmem:[%s4485_s1 + $0xac8] sm:$0xff]  ;;  %v1661_v10 = vpack.c.bf16 %v63_v2, %v61_v1 }
  0x12   :  { %1974 = vmatpush1.bf16.msra.mxu0 %v1973_v51  ;;  %1656 = vmatprep.subr.bf16.mxu1 %v1655_v52  ;;  %v388_v9 = vld [vmem:[%s4485_s1 + $0xad8] sm:$0xff]  ;;  %v1981_v11 = vpack.c.bf16 %v383_v5, %v381_v3  ;;  %v1663_v12 = vpack.c.bf16 %v68_v7, %v66_v6  ;;  %v65_v13 = vld [vmem:[%s4485_s1 + $0xc0] sm:$0xff]  ;;  %v67_v14 = vld [vmem:[%s4485_s1 + $0xd0] sm:$0xff] }
  0x13   :  { %1976 = vmatprep.subr.bf16.mxu0 %v1975_v56  ;;  %v385_v15 = vld [vmem:[%s4485_s1 + $0xac0] sm:$0xff]  ;;  %v1983_v16 = vpack.c.bf16 %v388_v9, %v386_v8  ;;  %v387_v17 = vld [vmem:[%s4485_s1 + $0xad0] sm:$0xff]  ;;  %v70_v18 = vld [vmem:[%s4485_s1 + $0xe8] sm:$0xff]  ;;  %v1665_v22 = vpack.c.bf16 %v67_v14, %v65_v13 }
  0x14   :  { %v72_v19 = vld [vmem:[%s4485_s1 + $0xf8] sm:$0xff]  ;;  %v390_v20 = vld [vmem:[%s4485_s1 + $0xae8] sm:$0xff]  ;;  %v1985_v23 = vpack.c.bf16 %v387_v17, %v385_v15  ;;  %v69_v25 = vld [vmem:[%s4485_s1 + $0xe0] sm:$0xff] }
  0x15   :  { %1658 = vmatpush1.bf16.msra.mxu1 %v1657_v62  ;;  %v392_v21 = vld [vmem:[%s4485_s1 + $0xaf8] sm:$0xff]  ;;  %v1667_v24 = vpack.c.bf16 %v72_v19, %v70_v18  ;;  %v71_v26 = vld [vmem:[%s4485_s1 + $0xf0] sm:$0xff]  ;;  %v389_v27 = vld [vmem:[%s4485_s1 + $0xae0] sm:$0xff] }
  0x16   :  { %1978 = vmatpush1.bf16.msra.mxu0 %v1977_v63  ;;  %1660 = vmatprep.subr.bf16.mxu1 %v1659_v0  ;;  %v1987_v28 = vpack.c.bf16 %v392_v21, %v390_v20  ;;  %v391_v29 = vld [vmem:[%s4485_s1 + $0xaf0] sm:$0xff]  ;;  %v74_v30 = vld [vmem:[%s4485_s1 + $0x108] sm:$0xff]  ;;  %v76_v31 = vld [vmem:[%s4485_s1 + $0x118] sm:$0xff]  ;;  %v1669_v34 = vpack.c.bf16 %v71_v26, %v69_v25 }
  0x17   :  { %1980 = vmatprep.subr.bf16.mxu0 %v1979_v4  ;;  %v394_v32 = vld [vmem:[%s4485_s1 + $0xb08] sm:$0xff]  ;;  %v396_v33 = vld [vmem:[%s4485_s1 + $0xb18] sm:$0xff]  ;;  %v1989_v35 = vpack.c.bf16 %v391_v29, %v389_v27  ;;  %v1671_v36 = vpack.c.bf16 %v76_v31, %v74_v30  ;;  %v73_v37 = vld [vmem:[%s4485_s1 + $0x100] sm:$0xff] }
  0x18   :  { %v75_v38 = vld [vmem:[%s4485_s1 + $0x110] sm:$0xff]  ;;  %v393_v39 = vld [vmem:[%s4485_s1 + $0xb00] sm:$0xff]  ;;  %v1991_v40 = vpack.c.bf16 %v396_v33, %v394_v32  ;;  %v78_v42 = vld [vmem:[%s4485_s1 + $0x128] sm:$0xff] }
  0x19   :  { %1662 = vmatpush1.bf16.msra.mxu1 %v1661_v10  ;;  %v395_v41 = vld [vmem:[%s4485_s1 + $0xb10] sm:$0xff]  ;;  %v80_v43 = vld [vmem:[%s4485_s1 + $0x138] sm:$0xff]  ;;  %v398_v44 = vld [vmem:[%s4485_s1 + $0xb28] sm:$0xff]  ;;  %v1673_v46 = vpack.c.bf16 %v75_v38, %v73_v37 }
  0x1a   :  { %1982 = vmatpush1.bf16.msra.mxu0 %v1981_v11  ;;  %1664 = vmatprep.subr.bf16.mxu1 %v1663_v12  ;;  %v400_v45 = vld [vmem:[%s4485_s1 + $0xb38] sm:$0xff]  ;;  %v1993_v47 = vpack.c.bf16 %v395_v41, %v393_v39  ;;  %v1675_v48 = vpack.c.bf16 %v80_v43, %v78_v42  ;;  %v77_v49 = vld [vmem:[%s4485_s1 + $0x120] sm:$0xff]  ;;  %v79_v50 = vld [vmem:[%s4485_s1 + $0x130] sm:$0xff] }
  0x1b   :  { %1984 = vmatprep.subr.bf16.mxu0 %v1983_v16  ;;  %v397_v51 = vld [vmem:[%s4485_s1 + $0xb20] sm:$0xff]  ;;  %v1995_v52 = vpack.c.bf16 %v400_v45, %v398_v44  ;;  %v399_v53 = vld [vmem:[%s4485_s1 + $0xb30] sm:$0xff]  ;;  %v82_v54 = vld [vmem:[%s4485_s1 + $0x148] sm:$0xff]  ;;  %v1677_v58 = vpack.c.bf16 %v79_v50, %v77_v49 }
  0x1c   :  { %v84_v55 = vld [vmem:[%s4485_s1 + $0x158] sm:$0xff]  ;;  %v402_v56 = vld [vmem:[%s4485_s1 + $0xb48] sm:$0xff]  ;;  %v1997_v59 = vpack.c.bf16 %v399_v53, %v397_v51  ;;  %v81_v61 = vld [vmem:[%s4485_s1 + $0x140] sm:$0xff] }
  0x1d   :  { %1666 = vmatpush1.bf16.msra.mxu1 %v1665_v22  ;;  %v404_v57 = vld [vmem:[%s4485_s1 + $0xb58] sm:$0xff]  ;;  %v1679_v60 = vpack.c.bf16 %v84_v55, %v82_v54  ;;  %v83_v62 = vld [vmem:[%s4485_s1 + $0x150] sm:$0xff]  ;;  %v401_v63 = vld [vmem:[%s4485_s1 + $0xb40] sm:$0xff] }
  0x1e   :  { %1986 = vmatpush1.bf16.msra.mxu0 %v1985_v23  ;;  %1668 = vmatprep.subr.bf16.mxu1 %v1667_v24  ;;  %v1999_v0 = vpack.c.bf16 %v404_v57, %v402_v56  ;;  %v403_v1 = vld [vmem:[%s4485_s1 + $0xb50] sm:$0xff]  ;;  %v86_v2 = vld [vmem:[%s4485_s1 + $0x168] sm:$0xff]  ;;  %v88_v3 = vld [vmem:[%s4485_s1 + $0x178] sm:$0xff]  ;;  %v1681_v6 = vpack.c.bf16 %v83_v62, %v81_v61 }
  0x1f   :  { %1988 = vmatprep.subr.bf16.mxu0 %v1987_v28  ;;  %v406_v4 = vld [vmem:[%s4485_s1 + $0xb68] sm:$0xff]  ;;  %v408_v5 = vld [vmem:[%s4485_s1 + $0xb78] sm:$0xff]  ;;  %v85_v7 = vld [vmem:[%s4485_s1 + $0x160] sm:$0xff]  ;;  %v2001_v8 = vpack.c.bf16 %v403_v1, %v401_v63  ;;  %v1683_v9 = vpack.c.bf16 %v88_v3, %v86_v2 }
  0x20   :  { %v87_v10 = vld [vmem:[%s4485_s1 + $0x170] sm:$0xff]  ;;  %v405_v11 = vld [vmem:[%s4485_s1 + $0xb60] sm:$0xff]  ;;  %v2003_v13 = vpack.c.bf16 %v408_v5, %v406_v4  ;;  %v90_v14 = vld [vmem:[%s4485_s1 + $0x188] sm:$0xff] }
  0x21   :  { %1670 = vmatpush1.bf16.msra.mxu1 %v1669_v34  ;;  %v407_v12 = vld [vmem:[%s4485_s1 + $0xb70] sm:$0xff]  ;;  %v92_v15 = vld [vmem:[%s4485_s1 + $0x198] sm:$0xff]  ;;  %v21_v16 = vld [vmem:[%s4486_s0 + $0x8] sm:$0xff]  ;;  %v1685_v20 = vpack.c.bf16 %v87_v10, %v85_v7 }
  0x22   :  { %1990 = vmatpush1.bf16.msra.mxu0 %v1989_v35  ;;  %1672 = vmatprep.subr.bf16.mxu1 %v1671_v36  ;;  %v410_v17 = vld [vmem:[%s4485_s1 + $0xb88] sm:$0xff]  ;;  %v412_v18 = vld [vmem:[%s4485_s1 + $0xb98] sm:$0xff]  ;;  %v2005_v21 = vpack.c.bf16 %v407_v12, %v405_v11  ;;  %v1687_v22 = vpack.c.bf16 %v92_v15, %v90_v14  ;;  %v89_v23 = vld [vmem:[%s4485_s1 + $0x180] sm:$0xff] }
  0x23   :  { %1992 = vmatprep.subr.bf16.mxu0 %v1991_v40  ;;  %769 = vmatprep.mubr.f32.mxu1 %v21_v16  ;;  %v31_v19 = vld [vmem:[%s4486_s0 + $0x58] sm:$0xff]  ;;  %v91_v24 = vld [vmem:[%s4485_s1 + $0x190] sm:$0xff]  ;;  %v409_v25 = vld [vmem:[%s4485_s1 + $0xb80] sm:$0xff]  ;;  %v2007_v26 = vpack.c.bf16 %v412_v18, %v410_v17 }
  0x24   :  { %1124 = vmatprep.mubr.f32.mxu0 %v31_v19  ;;  %v411_v27 = vld [vmem:[%s4485_s1 + $0xb90] sm:$0xff]  ;;  %v94_v28 = vld [vmem:[%s4485_s1 + $0x1a8] sm:$0xff]  ;;  %v96_v29 = vld [vmem:[%s4485_s1 + $0x1b8] sm:$0xff]  ;;  %v1689_v32 = vpack.c.bf16 %v91_v24, %v89_v23 }
  0x25   :  { %1674 = vmatpush1.bf16.msra.mxu1 %v1673_v46  ;;  %v414_v30 = vld [vmem:[%s4485_s1 + $0xba8] sm:$0xff]  ;;  %v416_v31 = vld [vmem:[%s4485_s1 + $0xbb8] sm:$0xff]  ;;  %v2009_v33 = vpack.c.bf16 %v411_v27, %v409_v25  ;;  %v1691_v34 = vpack.c.bf16 %v96_v29, %v94_v28  ;;  %v93_v35 = vld [vmem:[%s4485_s1 + $0x1a0] sm:$0xff] }
  0x26   :  { %1994 = vmatpush1.bf16.msra.mxu0 %v1993_v47  ;;  %1676 = vmatprep.subr.bf16.mxu1 %v1675_v48  ;;  %v95_v36 = vld [vmem:[%s4485_s1 + $0x1b0] sm:$0xff]  ;;  %v413_v37 = vld [vmem:[%s4485_s1 + $0xba0] sm:$0xff]  ;;  %v2011_v38 = vpack.c.bf16 %v416_v31, %v414_v30  ;;  %v98_v40 = vld [vmem:[%s4485_s1 + $0x1c8] sm:$0xff] }
  0x27   :  { %1996 = vmatprep.subr.bf16.mxu0 %v1995_v52  ;;  %v415_v39 = vld [vmem:[%s4485_s1 + $0xbb0] sm:$0xff]  ;;  %v100_v41 = vld [vmem:[%s4485_s1 + $0x1d8] sm:$0xff]  ;;  %v418_v42 = vld [vmem:[%s4485_s1 + $0xbc8] sm:$0xff]  ;;  %v1693_v44 = vpack.c.bf16 %v95_v36, %v93_v35 }
  0x28   :  { %v420_v43 = vld [vmem:[%s4485_s1 + $0xbd8] sm:$0xff]  ;;  %v2013_v45 = vpack.c.bf16 %v415_v39, %v413_v37  ;;  %v1695_v46 = vpack.c.bf16 %v100_v41, %v98_v40  ;;  %v97_v47 = vld [vmem:[%s4485_s1 + $0x1c0] sm:$0xff]  ;;  %v99_v48 = vld [vmem:[%s4485_s1 + $0x1d0] sm:$0xff] }
  0x29   :  { %1678 = vmatpush1.bf16.msra.mxu1 %v1677_v58  ;;  %v417_v49 = vld [vmem:[%s4485_s1 + $0xbc0] sm:$0xff]  ;;  %v2015_v50 = vpack.c.bf16 %v420_v43, %v418_v42  ;;  %v419_v51 = vld [vmem:[%s4485_s1 + $0xbd0] sm:$0xff]  ;;  %v102_v52 = vld [vmem:[%s4485_s1 + $0x1e8] sm:$0xff]  ;;  %v1697_v56 = vpack.c.bf16 %v99_v48, %v97_v47 }
  0x2a   :  { %1998 = vmatpush1.bf16.msra.mxu0 %v1997_v59  ;;  %1680 = vmatprep.subr.bf16.mxu1 %v1679_v60  ;;  %v104_v53 = vld [vmem:[%s4485_s1 + $0x1f8] sm:$0xff]  ;;  %v422_v54 = vld [vmem:[%s4485_s1 + $0xbe8] sm:$0xff]  ;;  %v2017_v57 = vpack.c.bf16 %v419_v51, %v417_v49  ;;  %v101_v59 = vld [vmem:[%s4485_s1 + $0x1e0] sm:$0xff] }
  0x2b   :  { %2000 = vmatprep.subr.bf16.mxu0 %v1999_v0  ;;  %v424_v55 = vld [vmem:[%s4485_s1 + $0xbf8] sm:$0xff]  ;;  %v1699_v58 = vpack.c.bf16 %v104_v53, %v102_v52  ;;  %v103_v60 = vld [vmem:[%s4485_s1 + $0x1f0] sm:$0xff]  ;;  %v421_v61 = vld [vmem:[%s4485_s1 + $0xbe0] sm:$0xff] }
  0x2c   :  { %v2019_v62 = vpack.c.bf16 %v424_v55, %v422_v54  ;;  %v423_v63 = vld [vmem:[%s4485_s1 + $0xbf0] sm:$0xff]  ;;  %v106_v0 = vld [vmem:[%s4485_s1 + $0x208] sm:$0xff]  ;;  %v108_v1 = vld [vmem:[%s4485_s1 + $0x218] sm:$0xff]  ;;  %v1701_v4 = vpack.c.bf16 %v103_v60, %v101_v59 }
  0x2d   :  { %1682 = vmatpush1.bf16.msra.mxu1 %v1681_v6  ;;  %v426_v2 = vld [vmem:[%s4485_s1 + $0xc08] sm:$0xff]  ;;  %v428_v3 = vld [vmem:[%s4485_s1 + $0xc18] sm:$0xff]  ;;  %v2021_v5 = vpack.c.bf16 %v423_v63, %v421_v61  ;;  %v1703_v6 = vpack.c.bf16 %v108_v1, %v106_v0  ;;  %v105_v7 = vld [vmem:[%s4485_s1 + $0x200] sm:$0xff] }
  0x2e   :  { %2002 = vmatpush1.bf16.msra.mxu0 %v2001_v8  ;;  %1684 = vmatprep.subr.bf16.mxu1 %v1683_v9  ;;  %v107_v8 = vld [vmem:[%s4485_s1 + $0x210] sm:$0xff]  ;;  %v425_v9 = vld [vmem:[%s4485_s1 + $0xc00] sm:$0xff]  ;;  %v2023_v10 = vpack.c.bf16 %v428_v3, %v426_v2  ;;  %v110_v12 = vld [vmem:[%s4485_s1 + $0x228] sm:$0xff] }
  0x2f   :  { %2004 = vmatprep.subr.bf16.mxu0 %v2003_v13  ;;  %v427_v11 = vld [vmem:[%s4485_s1 + $0xc10] sm:$0xff]  ;;  %v112_v13 = vld [vmem:[%s4485_s1 + $0x238] sm:$0xff]  ;;  %v430_v14 = vld [vmem:[%s4485_s1 + $0xc28] sm:$0xff]  ;;  %v1705_v17 = vpack.c.bf16 %v107_v8, %v105_v7 }
  0x30   :  { %v432_v15 = vld [vmem:[%s4485_s1 + $0xc38] sm:$0xff]  ;;  %v20_v16 = vld [vmem:[%s4486_s0] sm:$0xff]  ;;  %v30_v18 = vld [vmem:[%s4486_s0 + $0x50] sm:$0xff]  ;;  %v2025_v19 = vpack.c.bf16 %v427_v11, %v425_v9 }
  0x31   :  { %1686 = vmatpush1.bf16.msra.mxu1 %v1685_v20  ;;  %v1707_v20 = vpack.c.bf16 %v112_v13, %v110_v12  ;;  %v429_v23 = vld [vmem:[%s4485_s1 + $0xc20] sm:$0xff]  ;;  %v2027_v24 = vpack.c.bf16 %v432_v15, %v430_v14  ;;  %v431_v25 = vld [vmem:[%s4485_s1 + $0xc30] sm:$0xff]  ;;  %v116_v27 = vld [vmem:[%s4485_s1 + $0x258] sm:$0xff] }
  0x32   :  { %2006 = vmatpush1.bf16.msra.mxu0 %v2005_v21  ;;  %1688 = vmatprep.subr.bf16.mxu1 %v1687_v22  ;;  %v109_v21 = vld [vmem:[%s4485_s1 + $0x220] sm:$0xff]  ;;  %v111_v22 = vld [vmem:[%s4485_s1 + $0x230] sm:$0xff]  ;;  %v434_v28 = vld [vmem:[%s4485_s1 + $0xc48] sm:$0xff]  ;;  %v2029_v31 = vpack.c.bf16 %v431_v25, %v429_v23 }
  0x33   :  { %2008 = vmatprep.subr.bf16.mxu0 %v2007_v26  ;;  %v114_v26 = vld [vmem:[%s4485_s1 + $0x248] sm:$0xff]  ;;  %v436_v29 = vld [vmem:[%s4485_s1 + $0xc58] sm:$0xff]  ;;  %v1709_v30 = vpack.c.bf16 %v111_v22, %v109_v21  ;;  %v433_v35 = vld [vmem:[%s4485_s1 + $0xc40] sm:$0xff] }
  0x34   :  { %v2031_v36 = vpack.c.bf16 %v436_v29, %v434_v28  ;;  %v435_v37 = vld [vmem:[%s4485_s1 + $0xc50] sm:$0xff]  ;;  %v120_v39 = vld [vmem:[%s4485_s1 + $0x278] sm:$0xff]  ;;  %v438_v40 = vld [vmem:[%s4485_s1 + $0xc68] sm:$0xff] }
  0x35   :  { %1690 = vmatpush1.bf16.msra.mxu1 %v1689_v32  ;;  %v1711_v32 = vpack.c.bf16 %v116_v27, %v114_v26  ;;  %v440_v41 = vld [vmem:[%s4485_s1 + $0xc78] sm:$0xff]  ;;  %v2033_v43 = vpack.c.bf16 %v435_v37, %v433_v35  ;;  %v437_v47 = vld [vmem:[%s4485_s1 + $0xc60] sm:$0xff]  ;;  %v439_v49 = vld [vmem:[%s4485_s1 + $0xc70] sm:$0xff] }
  0x36   :  { %2010 = vmatpush1.bf16.msra.mxu0 %v2009_v33  ;;  %1692 = vmatprep.subr.bf16.mxu1 %v1691_v34  ;;  %v113_v33 = vld [vmem:[%s4485_s1 + $0x240] sm:$0xff]  ;;  %v115_v34 = vld [vmem:[%s4485_s1 + $0x250] sm:$0xff]  ;;  %v2035_v48 = vpack.c.bf16 %v440_v41, %v438_v40  ;;  %v124_v51 = vld [vmem:[%s4485_s1 + $0x298] sm:$0xff]  ;;  %v2037_v55 = vpack.c.bf16 %v439_v49, %v437_v47 }
  0x37   :  { %2012 = vmatprep.subr.bf16.mxu0 %v2011_v38  ;;  %v118_v38 = vld [vmem:[%s4485_s1 + $0x268] sm:$0xff]  ;;  %v1713_v42 = vpack.c.bf16 %v115_v34, %v113_v33  ;;  %v444_v53 = vld [vmem:[%s4485_s1 + $0xc98] sm:$0xff]  ;;  %v441_v59 = vld [vmem:[%s4485_s1 + $0xc80] sm:$0xff] }
  0x38   :  { %v442_v52 = vld [vmem:[%s4485_s1 + $0xc88] sm:$0xff]  ;;  %v443_v61 = vld [vmem:[%s4485_s1 + $0xc90] sm:$0xff]  ;;  %v128_v63 = vld [vmem:[%s4485_s1 + $0x2b8] sm:$0xff] }
  0x39   :  { %1694 = vmatpush1.bf16.msra.mxu1 %v1693_v44  ;;  %v1715_v44 = vpack.c.bf16 %v120_v39, %v118_v38  ;;  %v2039_v60 = vpack.c.bf16 %v444_v53, %v442_v52  ;;  %v446_v0 = vld [vmem:[%s4485_s1 + $0xca8] sm:$0xff]  ;;  %v448_v1 = vld [vmem:[%s4485_s1 + $0xcb8] sm:$0xff]  ;;  %v2041_v3 = vpack.c.bf16 %v443_v61, %v441_v59  ;;  %v445_v7 = vld [vmem:[%s4485_s1 + $0xca0] sm:$0xff] }
  0x3a   :  { %2014 = vmatpush1.bf16.msra.mxu0 %v2013_v45  ;;  %1696 = vmatprep.subr.bf16.mxu1 %v1695_v46  ;;  %v117_v45 = vld [vmem:[%s4485_s1 + $0x260] sm:$0xff]  ;;  %v119_v46 = vld [vmem:[%s4485_s1 + $0x270] sm:$0xff]  ;;  %v2043_v8 = vpack.c.bf16 %v448_v1, %v446_v0  ;;  %v132_v11 = vld [vmem:[%s4485_s1 + $0x2d8] sm:$0xff] }
  0x3b   :  { %2016 = vmatprep.subr.bf16.mxu0 %v2015_v50  ;;  %v122_v50 = vld [vmem:[%s4485_s1 + $0x288] sm:$0xff]  ;;  %v1717_v54 = vpack.c.bf16 %v119_v46, %v117_v45  ;;  %v447_v9 = vld [vmem:[%s4485_s1 + $0xcb0] sm:$0xff]  ;;  %v452_v13 = vld [vmem:[%s4485_s1 + $0xcd8] sm:$0xff] }
  0x3c   :  { %v450_v12 = vld [vmem:[%s4485_s1 + $0xcc8] sm:$0xff]  ;;  %v129_v15 = vld [vmem:[%s4485_s1 + $0x2c0] sm:$0xff]  ;;  %v136_v23 = vld [vmem:[%s4485_s1 + $0x2f8] sm:$0xff] }
  0x3d   :  { %1698 = vmatpush1.bf16.msra.mxu1 %v1697_v56  ;;  %v1719_v56 = vpack.c.bf16 %v124_v51, %v122_v50  ;;  %v2047_v21 = vpack.c.bf16 %v452_v13, %v450_v12  ;;  %v134_v22 = vld [vmem:[%s4485_s1 + $0x2e8] sm:$0xff]  ;;  %v456_v26 = vld [vmem:[%s4485_s1 + $0xcf8] sm:$0xff]  ;;  %v453_v33 = vld [vmem:[%s4485_s1 + $0xce0] sm:$0xff] }
  0x3e   :  { %2018 = vmatpush1.bf16.msra.mxu0 %v2017_v57  ;;  %1700 = vmatprep.subr.bf16.mxu1 %v1699_v58  ;;  %v121_v57 = vld [vmem:[%s4485_s1 + $0x280] sm:$0xff]  ;;  %v123_v58 = vld [vmem:[%s4485_s1 + $0x290] sm:$0xff]  ;;  %v454_v25 = vld [vmem:[%s4485_s1 + $0xce8] sm:$0xff] }
  0x3f   :  { %2020 = vmatprep.subr.bf16.mxu0 %v2019_v62  ;;  %v126_v62 = vld [vmem:[%s4485_s1 + $0x2a8] sm:$0xff]  ;;  %v1721_v2 = vpack.c.bf16 %v123_v58, %v121_v57  ;;  %v2051_v34 = vpack.c.bf16 %v456_v26, %v454_v25  ;;  %v455_v35 = vld [vmem:[%s4485_s1 + $0xcf0] sm:$0xff]  ;;  %v140_v37 = vld [vmem:[%s4485_s1 + $0x318] sm:$0xff] }
  0x40   :  { %v33_v27 = vld [vmem:[%s4486_s0 + $0x68] sm:$0xff]  ;;  %v460_v39 = vld [vmem:[%s4485_s1 + $0xd18] sm:$0xff]  ;;  %v2053_v41 = vpack.c.bf16 %v455_v35, %v453_v33  ;;  %v457_v45 = vld [vmem:[%s4485_s1 + $0xd00] sm:$0xff] }
  0x41   :  { %1702 = vmatpush1.bf16.msra.mxu1 %v1701_v4  ;;  %v1723_v4 = vpack.c.bf16 %v128_v63, %v126_v62  ;;  %v458_v38 = vld [vmem:[%s4485_s1 + $0xd08] sm:$0xff]  ;;  %v459_v47 = vld [vmem:[%s4485_s1 + $0xd10] sm:$0xff]  ;;  %v144_v49 = vld [vmem:[%s4485_s1 + $0x338] sm:$0xff] }
  0x42   :  { %2022 = vmatpush1.bf16.msra.mxu0 %v2021_v5  ;;  %1704 = vmatprep.subr.bf16.mxu1 %v1703_v6  ;;  %v125_v5 = vld [vmem:[%s4485_s1 + $0x2a0] sm:$0xff]  ;;  %v127_v6 = vld [vmem:[%s4485_s1 + $0x2b0] sm:$0xff]  ;;  %v2055_v46 = vpack.c.bf16 %v460_v39, %v458_v38  ;;  %v462_v50 = vld [vmem:[%s4485_s1 + $0xd28] sm:$0xff]  ;;  %v2057_v53 = vpack.c.bf16 %v459_v47, %v457_v45 }
  0x43   :  { %2024 = vmatprep.subr.bf16.mxu0 %v2023_v10  ;;  %v130_v10 = vld [vmem:[%s4485_s1 + $0x2c8] sm:$0xff]  ;;  %v1725_v14 = vpack.c.bf16 %v127_v6, %v125_v5  ;;  %v464_v51 = vld [vmem:[%s4485_s1 + $0xd38] sm:$0xff]  ;;  %v461_v57 = vld [vmem:[%s4485_s1 + $0xd20] sm:$0xff] }
  0x44   :  { %770 = vmatmul.mubr.f32.vlgmr.msra.gmra.mrb[0].mxu1 %v20_v16  ;;  %v2045_v16 = vpack.c.bf16 %v447_v9, %v445_v7  ;;  %v2059_v58 = vpack.c.bf16 %v464_v51, %v462_v50  ;;  %v463_v59 = vld [vmem:[%s4485_s1 + $0xd30] sm:$0xff]  ;;  %v148_v61 = vld [vmem:[%s4485_s1 + $0x358] sm:$0xff]  ;;  %v466_v62 = vld [vmem:[%s4485_s1 + $0xd48] sm:$0xff] }
  0x45   :  { %1706 = vmatpush1.bf16.msra.mxu1 %v1705_v17  ;;  %1125 = vmatmul.mubr.f32.vlgmr.msra.gmra.mrb[0].mxu0 %v30_v18  ;;  %v1727_v17 = vpack.c.bf16 %v132_v11, %v130_v10  ;;  %v131_v18 = vld [vmem:[%s4485_s1 + $0x2d0] sm:$0xff]  ;;  %v468_v63 = vld [vmem:[%s4485_s1 + $0xd58] sm:$0xff]  ;;  %v2061_v1 = vpack.c.bf16 %v463_v59, %v461_v57  ;;  %v465_v5 = vld [vmem:[%s4485_s1 + $0xd40] sm:$0xff] }
  0x46   :  { %2026 = vmatpush1.bf16.msra.mxu0 %v2025_v19  ;;  %1708 = vmatprep.subr.bf16.mxu1 %v1707_v20  ;;  %v449_v19 = vld [vmem:[%s4485_s1 + $0xcc0] sm:$0xff]  ;;  %v451_v20 = vld [vmem:[%s4485_s1 + $0xcd0] sm:$0xff]  ;;  %v1729_v28 = vpack.c.bf16 %v131_v18, %v129_v15  ;;  %v2063_v6 = vpack.c.bf16 %v468_v63, %v466_v62  ;;  %v152_v9 = vld [vmem:[%s4485_s1 + $0x378] sm:$0xff] }
  0x47   :  { %2028 = vmatprep.subr.bf16.mxu0 %v2027_v24  ;;  %v23_v24 = vld [vmem:[%s4486_s0 + $0x18] sm:$0xff]  ;;  %1195 = vmatprep.mubr.f32.mxu0 %v33_v27  ;;  %v2049_v29 = vpack.c.bf16 %v451_v20, %v449_v19  ;;  %v467_v7 = vld [vmem:[%s4485_s1 + $0xd50] sm:$0xff]  ;;  %v470_v10 = vld [vmem:[%s4485_s1 + $0xd68] sm:$0xff] }
  0x48   :  { %840 = vmatprep.mubr.f32.mxu1 %v23_v24  ;;  %v472_v11 = vld [vmem:[%s4485_s1 + $0xd78] sm:$0xff]  ;;  %v2065_v13 = vpack.c.bf16 %v467_v7, %v465_v5  ;;  %v149_v15 = vld [vmem:[%s4485_s1 + $0x360] sm:$0xff]  ;;  %v471_v19 = vld [vmem:[%s4485_s1 + $0xd70] sm:$0xff] }
  0x49   :  { %1710 = vmatpush1.bf16.msra.mxu1 %v1709_v30  ;;  %v1731_v30 = vpack.c.bf16 %v136_v23, %v134_v22  ;;  %v2067_v18 = vpack.c.bf16 %v472_v11, %v470_v10  ;;  %v154_v20 = vld [vmem:[%s4485_s1 + $0x388] sm:$0xff]  ;;  %v476_v23 = vld [vmem:[%s4485_s1 + $0xd98] sm:$0xff]  ;;  %v153_v27 = vld [vmem:[%s4485_s1 + $0x380] sm:$0xff] }
  0x4a   :  { %2030 = vmatpush1.bf16.msra.mxu0 %v2029_v31  ;;  %1712 = vmatprep.subr.bf16.mxu1 %v1711_v32  ;;  %v133_v31 = vld [vmem:[%s4485_s1 + $0x2e0] sm:$0xff]  ;;  %v135_v32 = vld [vmem:[%s4485_s1 + $0x2f0] sm:$0xff]  ;;  %v474_v22 = vld [vmem:[%s4485_s1 + $0xd88] sm:$0xff] }
  0x4b   :  { %2032 = vmatprep.subr.bf16.mxu0 %v2031_v36  ;;  %v138_v36 = vld [vmem:[%s4485_s1 + $0x308] sm:$0xff]  ;;  %v1733_v40 = vpack.c.bf16 %v135_v32, %v133_v31  ;;  %v475_v31 = vld [vmem:[%s4485_s1 + $0xd90] sm:$0xff]  ;;  %v160_v33 = vld [vmem:[%s4485_s1 + $0x3b8] sm:$0xff] }
  0x4c   :  { %v158_v32 = vld [vmem:[%s4485_s1 + $0x3a8] sm:$0xff]  ;;  %v480_v35 = vld [vmem:[%s4485_s1 + $0xdb8] sm:$0xff]  ;;  %v157_v39 = vld [vmem:[%s4485_s1 + $0x3a0] sm:$0xff] }
  0x4d   :  { %1714 = vmatpush1.bf16.msra.mxu1 %v1713_v42  ;;  %v1735_v42 = vpack.c.bf16 %v140_v37, %v138_v36  ;;  %v1755_v38 = vpack.c.bf16 %v160_v33, %v158_v32  ;;  %v164_v45 = vld [vmem:[%s4485_s1 + $0x3d8] sm:$0xff]  ;;  %v161_v51 = vld [vmem:[%s4485_s1 + $0x3c0] sm:$0xff]  ;;  %v498_v32 = vld [vmem:[%s4485_s1 + $0xe48] sm:$0xff] }
  0x4e   :  { %2034 = vmatpush1.bf16.msra.mxu0 %v2033_v43  ;;  %1716 = vmatprep.subr.bf16.mxu1 %v1715_v44  ;;  %v137_v43 = vld [vmem:[%s4485_s1 + $0x300] sm:$0xff]  ;;  %v139_v44 = vld [vmem:[%s4485_s1 + $0x310] sm:$0xff]  ;;  %v484_v47 = vld [vmem:[%s4485_s1 + $0xdd8] sm:$0xff] }
  0x4f   :  { %2036 = vmatprep.subr.bf16.mxu0 %v2035_v48  ;;  %v142_v48 = vld [vmem:[%s4485_s1 + $0x328] sm:$0xff]  ;;  %v1737_v52 = vpack.c.bf16 %v139_v44, %v137_v43  ;;  %v479_v43 = vld [vmem:[%s4485_s1 + $0xdb0] sm:$0xff]  ;;  %v168_v57 = vld [vmem:[%s4485_s1 + $0x3f8] sm:$0xff] }
  0x50   :  { %v162_v44 = vld [vmem:[%s4485_s1 + $0x3c8] sm:$0xff]  ;;  %v488_v59 = vld [vmem:[%s4485_s1 + $0xdf8] sm:$0xff]  ;;  %v165_v63 = vld [vmem:[%s4485_s1 + $0x3e0] sm:$0xff] }
  0x51   :  { %1718 = vmatpush1.bf16.msra.mxu1 %v1717_v54  ;;  %v1739_v54 = vpack.c.bf16 %v144_v49, %v142_v48  ;;  %v1759_v50 = vpack.c.bf16 %v164_v45, %v162_v44  ;;  %v172_v5 = vld [vmem:[%s4485_s1 + $0x418] sm:$0xff]  ;;  %v169_v11 = vld [vmem:[%s4485_s1 + $0x400] sm:$0xff]  ;;  %v182_v44 = vld [vmem:[%s4485_s1 + $0x468] sm:$0xff] }
  0x52   :  { %2038 = vmatpush1.bf16.msra.mxu0 %v2037_v55  ;;  %1720 = vmatprep.subr.bf16.mxu1 %v1719_v56  ;;  %v141_v55 = vld [vmem:[%s4485_s1 + $0x320] sm:$0xff]  ;;  %v143_v56 = vld [vmem:[%s4485_s1 + $0x330] sm:$0xff]  ;;  %v492_v7 = vld [vmem:[%s4485_s1 + $0xe18] sm:$0xff] }
  0x53   :  { %2040 = vmatprep.subr.bf16.mxu0 %v2039_v60  ;;  %v146_v60 = vld [vmem:[%s4485_s1 + $0x348] sm:$0xff]  ;;  %v1741_v0 = vpack.c.bf16 %v143_v56, %v141_v55  ;;  %v483_v55 = vld [vmem:[%s4485_s1 + $0xdd0] sm:$0xff]  ;;  %v500_v33 = vld [vmem:[%s4485_s1 + $0xe58] sm:$0xff] }
  0x54   :  { %v166_v56 = vld [vmem:[%s4485_s1 + $0x3e8] sm:$0xff]  ;;  %v184_v45 = vld [vmem:[%s4485_s1 + $0x478] sm:$0xff] }
  0x55   :  { %1722 = vmatpush1.bf16.msra.mxu1 %v1721_v2  ;;  %v1743_v2 = vpack.c.bf16 %v148_v61, %v146_v60  ;;  %v1763_v62 = vpack.c.bf16 %v168_v57, %v166_v56  ;;  %v186_v56 = vld [vmem:[%s4485_s1 + $0x488] sm:$0xff]  ;;  %v188_v57 = vld [vmem:[%s4485_s1 + $0x498] sm:$0xff] }
  0x56   :  { %2042 = vmatpush1.bf16.msra.mxu0 %v2041_v3  ;;  %1724 = vmatprep.subr.bf16.mxu1 %v1723_v4  ;;  %v145_v3 = vld [vmem:[%s4485_s1 + $0x340] sm:$0xff]  ;;  %v147_v4 = vld [vmem:[%s4485_s1 + $0x350] sm:$0xff] }
  0x57   :  { %2044 = vmatprep.subr.bf16.mxu0 %v2043_v8  ;;  %v150_v8 = vld [vmem:[%s4485_s1 + $0x368] sm:$0xff]  ;;  %v1745_v12 = vpack.c.bf16 %v147_v4, %v145_v3  ;;  %v487_v3 = vld [vmem:[%s4485_s1 + $0xdf0] sm:$0xff] }
  0x58   :  { %v170_v4 = vld [vmem:[%s4485_s1 + $0x408] sm:$0xff] }
  0x59   :  { %1726 = vmatpush1.bf16.msra.mxu1 %v1725_v14  ;;  %v1747_v14 = vpack.c.bf16 %v152_v9, %v150_v8  ;;  %v1767_v10 = vpack.c.bf16 %v172_v5, %v170_v4  ;;  %v190_v4 = vld [vmem:[%s4485_s1 + $0x4a8] sm:$0xff]  ;;  %v192_v5 = vld [vmem:[%s4485_s1 + $0x4b8] sm:$0xff] }
  0x5a   :  { %2046 = vmatpush1.bf16.msra.mxu0 %v2045_v16  ;;  %1728 = vmatprep.subr.bf16.mxu1 %v1727_v17  ;;  %v151_v16 = vld [vmem:[%s4485_s1 + $0x370] sm:$0xff]  ;;  %v469_v17 = vld [vmem:[%s4485_s1 + $0xd60] sm:$0xff] }
  0x5b   :  { %2048 = vmatprep.subr.bf16.mxu0 %v2047_v21  ;;  %v156_v21 = vld [vmem:[%s4485_s1 + $0x398] sm:$0xff]  ;;  %v1749_v24 = vpack.c.bf16 %v151_v16, %v149_v15  ;;  %v2069_v25 = vpack.c.bf16 %v471_v19, %v469_v17  ;;  %v491_v15 = vld [vmem:[%s4485_s1 + $0xe10] sm:$0xff]  ;;  %v174_v16 = vld [vmem:[%s4485_s1 + $0x428] sm:$0xff] }
  0x5c   :  { %v1751_v26 = vpack.c.bf16 %v156_v21, %v154_v20  ;;  %v176_v17 = vld [vmem:[%s4485_s1 + $0x438] sm:$0xff]  ;;  %v22_v20 = vld [vmem:[%s4486_s0 + $0x10] sm:$0xff] }
  0x5d   :  { %1730 = vmatpush1.bf16.msra.mxu1 %v1729_v28  ;;  %v155_v28 = vld [vmem:[%s4485_s1 + $0x390] sm:$0xff]  ;;  %v496_v19 = vld [vmem:[%s4485_s1 + $0xe38] sm:$0xff] }
  0x5e   :  { %2050 = vmatpush1.bf16.msra.mxu0 %v2049_v29  ;;  %1732 = vmatprep.subr.bf16.mxu1 %v1731_v30  ;;  %v473_v29 = vld [vmem:[%s4485_s1 + $0xd80] sm:$0xff]  ;;  %v2071_v30 = vpack.c.bf16 %v476_v23, %v474_v22  ;;  %v1753_v36 = vpack.c.bf16 %v155_v28, %v153_v27 }
  0x5f   :  { %2052 = vmatprep.subr.bf16.mxu0 %v2051_v34  ;;  %v478_v34 = vld [vmem:[%s4485_s1 + $0xda8] sm:$0xff]  ;;  %v2073_v37 = vpack.c.bf16 %v475_v31, %v473_v29  ;;  %v32_v22 = vld [vmem:[%s4486_s0 + $0x60] sm:$0xff]  ;;  %v495_v29 = vld [vmem:[%s4485_s1 + $0xe30] sm:$0xff] }
  0x60   :  { %v493_v27 = vld [vmem:[%s4485_s1 + $0xe20] sm:$0xff]  ;;  %v180_v31 = vld [vmem:[%s4485_s1 + $0x458] sm:$0xff] }
  0x61   :  { %1734 = vmatpush1.bf16.msra.mxu1 %v1733_v40  ;;  %v159_v40 = vld [vmem:[%s4485_s1 + $0x3b0] sm:$0xff] }
  0x62   :  { %2054 = vmatpush1.bf16.msra.mxu0 %v2053_v41  ;;  %1736 = vmatprep.subr.bf16.mxu1 %v1735_v42  ;;  %v477_v41 = vld [vmem:[%s4485_s1 + $0xda0] sm:$0xff]  ;;  %v2075_v42 = vpack.c.bf16 %v480_v35, %v478_v34  ;;  %v1757_v48 = vpack.c.bf16 %v159_v40, %v157_v39  ;;  %v25_v34 = vld [vmem:[%s4486_s0 + $0x28] sm:$0xff]  ;;  %v179_v40 = vld [vmem:[%s4485_s1 + $0x450] sm:$0xff] }
  0x63   :  { %2056 = vmatprep.subr.bf16.mxu0 %v2055_v46  ;;  %v482_v46 = vld [vmem:[%s4485_s1 + $0xdc8] sm:$0xff]  ;;  %v2077_v49 = vpack.c.bf16 %v479_v43, %v477_v41  ;;  %v177_v39 = vld [vmem:[%s4485_s1 + $0x440] sm:$0xff]  ;;  %v499_v43 = vld [vmem:[%s4485_s1 + $0xe50] sm:$0xff] }
  0x64   :  { %v497_v41 = vld [vmem:[%s4485_s1 + $0xe40] sm:$0xff] }
  0x65   :  { %1738 = vmatpush1.bf16.msra.mxu1 %v1737_v52  ;;  %v163_v52 = vld [vmem:[%s4485_s1 + $0x3d0] sm:$0xff] }
  0x66   :  { %2058 = vmatpush1.bf16.msra.mxu0 %v2057_v53  ;;  %1740 = vmatprep.subr.bf16.mxu1 %v1739_v54  ;;  %v481_v53 = vld [vmem:[%s4485_s1 + $0xdc0] sm:$0xff]  ;;  %v2079_v54 = vpack.c.bf16 %v484_v47, %v482_v46  ;;  %v1761_v60 = vpack.c.bf16 %v163_v52, %v161_v51  ;;  %v502_v46 = vld [vmem:[%s4485_s1 + $0xe68] sm:$0xff]  ;;  %v504_v47 = vld [vmem:[%s4485_s1 + $0xe78] sm:$0xff] }
  0x67   :  { %2060 = vmatprep.subr.bf16.mxu0 %v2059_v58  ;;  %v486_v58 = vld [vmem:[%s4485_s1 + $0xde8] sm:$0xff]  ;;  %v2081_v61 = vpack.c.bf16 %v483_v55, %v481_v53  ;;  %v181_v51 = vld [vmem:[%s4485_s1 + $0x460] sm:$0xff]  ;;  %v183_v52 = vld [vmem:[%s4485_s1 + $0x470] sm:$0xff] }
  0x68   :  { %v501_v53 = vld [vmem:[%s4485_s1 + $0xe60] sm:$0xff]  ;;  %v503_v55 = vld [vmem:[%s4485_s1 + $0xe70] sm:$0xff] }
  0x69   :  { %1742 = vmatpush1.bf16.msra.mxu1 %v1741_v0  ;;  %v167_v0 = vld [vmem:[%s4485_s1 + $0x3f0] sm:$0xff] }
  0x6a   :  { %2062 = vmatpush1.bf16.msra.mxu0 %v2061_v1  ;;  %1744 = vmatprep.subr.bf16.mxu1 %v1743_v2  ;;  %v485_v1 = vld [vmem:[%s4485_s1 + $0xde0] sm:$0xff]  ;;  %v2083_v2 = vpack.c.bf16 %v488_v59, %v486_v58  ;;  %v1765_v8 = vpack.c.bf16 %v167_v0, %v165_v63  ;;  %v506_v58 = vld [vmem:[%s4485_s1 + $0xe88] sm:$0xff]  ;;  %v508_v59 = vld [vmem:[%s4485_s1 + $0xe98] sm:$0xff] }
  0x6b   :  { %2064 = vmatprep.subr.bf16.mxu0 %v2063_v6  ;;  %v490_v6 = vld [vmem:[%s4485_s1 + $0xe08] sm:$0xff]  ;;  %v2085_v9 = vpack.c.bf16 %v487_v3, %v485_v1  ;;  %v185_v63 = vld [vmem:[%s4485_s1 + $0x480] sm:$0xff]  ;;  %v187_v0 = vld [vmem:[%s4485_s1 + $0x490] sm:$0xff] }
  0x6c   :  { %v505_v1 = vld [vmem:[%s4485_s1 + $0xe80] sm:$0xff]  ;;  %v507_v3 = vld [vmem:[%s4485_s1 + $0xe90] sm:$0xff] }
  0x6d   :  { %1746 = vmatpush1.bf16.msra.mxu1 %v1745_v12  ;;  %v171_v12 = vld [vmem:[%s4485_s1 + $0x410] sm:$0xff] }
  0x6e   :  { %2066 = vmatpush1.bf16.msra.mxu0 %v2065_v13  ;;  %1748 = vmatprep.subr.bf16.mxu1 %v1747_v14  ;;  %v489_v13 = vld [vmem:[%s4485_s1 + $0xe00] sm:$0xff]  ;;  %v2087_v14 = vpack.c.bf16 %v492_v7, %v490_v6  ;;  %v1769_v21 = vpack.c.bf16 %v171_v12, %v169_v11  ;;  %v510_v6 = vld [vmem:[%s4485_s1 + $0xea8] sm:$0xff]  ;;  %v512_v7 = vld [vmem:[%s4485_s1 + $0xeb8] sm:$0xff] }
  0x6f   :  { %2068 = vmatprep.subr.bf16.mxu0 %v2067_v18  ;;  %v494_v18 = vld [vmem:[%s4485_s1 + $0xe28] sm:$0xff]  ;;  %v2089_v23 = vpack.c.bf16 %v491_v15, %v489_v13  ;;  %v189_v11 = vld [vmem:[%s4485_s1 + $0x4a0] sm:$0xff]  ;;  %v191_v12 = vld [vmem:[%s4485_s1 + $0x4b0] sm:$0xff] }
  0x70   :  { %v2091_v28 = vpack.c.bf16 %v496_v19, %v494_v18  ;;  %v509_v13 = vld [vmem:[%s4485_s1 + $0xea0] sm:$0xff]  ;;  %v511_v15 = vld [vmem:[%s4485_s1 + $0xeb0] sm:$0xff]  ;;  %v514_v18 = vld [vmem:[%s4485_s1 + $0xec8] sm:$0xff] }
  0x71   :  { %1750 = vmatpush1.bf16.msra.mxu1 %v1749_v24  ;;  %v1771_v24 = vpack.c.bf16 %v176_v17, %v174_v16  ;;  %v194_v16 = vld [vmem:[%s4485_s1 + $0x4c8] sm:$0xff]  ;;  %v196_v17 = vld [vmem:[%s4485_s1 + $0x4d8] sm:$0xff] }
  0x72   :  { %2070 = vmatpush1.bf16.msra.mxu0 %v2069_v25  ;;  %1752 = vmatprep.subr.bf16.mxu1 %v1751_v26  ;;  %v173_v25 = vld [vmem:[%s4485_s1 + $0x420] sm:$0xff]  ;;  %v175_v26 = vld [vmem:[%s4485_s1 + $0x430] sm:$0xff]  ;;  %v516_v19 = vld [vmem:[%s4485_s1 + $0xed8] sm:$0xff] }
  0x73   :  { %2072 = vmatprep.subr.bf16.mxu0 %v2071_v30  ;;  %v178_v30 = vld [vmem:[%s4485_s1 + $0x448] sm:$0xff]  ;;  %v1773_v35 = vpack.c.bf16 %v175_v26, %v173_v25  ;;  %v513_v25 = vld [vmem:[%s4485_s1 + $0xec0] sm:$0xff]  ;;  %v2111_v26 = vpack.c.bf16 %v516_v19, %v514_v18 }
  0x74   :  { %v213_v19 = vld [vmem:[%s4485_s1 + $0x560] sm:$0xff] }
  0x75   :  { %1754 = vmatpush1.bf16.msra.mxu1 %v1753_v36  ;;  %v35_v36 = vld [vmem:[%s4486_s0 + $0x78] sm:$0xff] }
  0x76   :  { %2074 = vmatpush1.bf16.msra.mxu0 %v2073_v37  ;;  %1756 = vmatprep.subr.bf16.mxu1 %v1755_v38  ;;  %v2093_v37 = vpack.c.bf16 %v495_v29, %v493_v27  ;;  %v1775_v38 = vpack.c.bf16 %v180_v31, %v178_v30  ;;  %v515_v27 = vld [vmem:[%s4485_s1 + $0xed0] sm:$0xff]  ;;  %v200_v29 = vld [vmem:[%s4485_s1 + $0x4f8] sm:$0xff]  ;;  %v518_v30 = vld [vmem:[%s4485_s1 + $0xee8] sm:$0xff] }
  0x77   :  { %2076 = vmatprep.subr.bf16.mxu0 %v2075_v42  ;;  %v2095_v42 = vpack.c.bf16 %v500_v33, %v498_v32  ;;  %v520_v31 = vld [vmem:[%s4485_s1 + $0xef8] sm:$0xff]  ;;  %v2113_v33 = vpack.c.bf16 %v515_v27, %v513_v25 }
  0x78   :  { %v220_v25 = vld [vmem:[%s4485_s1 + $0x598] sm:$0xff] }
  0x79   :  { %1758 = vmatpush1.bf16.msra.mxu1 %v1757_v48  ;;  %v1777_v48 = vpack.c.bf16 %v179_v40, %v177_v39  ;;  %v519_v39 = vld [vmem:[%s4485_s1 + $0xef0] sm:$0xff]  ;;  %v202_v40 = vld [vmem:[%s4485_s1 + $0x508] sm:$0xff]  ;;  %v540_v27 = vld [vmem:[%s4485_s1 + $0xf98] sm:$0xff] }
  0x7a   :  { %2078 = vmatpush1.bf16.msra.mxu0 %v2077_v49  ;;  %1760 = vmatprep.subr.bf16.mxu1 %v1759_v50  ;;  %v2097_v49 = vpack.c.bf16 %v499_v43, %v497_v41  ;;  %v1779_v50 = vpack.c.bf16 %v184_v45, %v182_v44  ;;  %v204_v41 = vld [vmem:[%s4485_s1 + $0x518] sm:$0xff] }
  0x7b   :  { %2080 = vmatprep.subr.bf16.mxu0 %v2079_v54  ;;  %v2099_v54 = vpack.c.bf16 %v504_v47, %v502_v46  ;;  %v524_v43 = vld [vmem:[%s4485_s1 + $0xf18] sm:$0xff]  ;;  %v1799_v46 = vpack.c.bf16 %v204_v41, %v202_v40  ;;  %v201_v47 = vld [vmem:[%s4485_s1 + $0x500] sm:$0xff] }
  0x7d   :  { %1762 = vmatpush1.bf16.msra.mxu1 %v1761_v60  ;;  %v1781_v60 = vpack.c.bf16 %v183_v52, %v181_v51  ;;  %v523_v51 = vld [vmem:[%s4485_s1 + $0xf10] sm:$0xff]  ;;  %v206_v52 = vld [vmem:[%s4485_s1 + $0x528] sm:$0xff] }
  0x7e   :  { %2082 = vmatpush1.bf16.msra.mxu0 %v2081_v61  ;;  %1764 = vmatprep.subr.bf16.mxu1 %v1763_v62  ;;  %v2101_v61 = vpack.c.bf16 %v503_v55, %v501_v53  ;;  %v1783_v62 = vpack.c.bf16 %v188_v57, %v186_v56  ;;  %v208_v53 = vld [vmem:[%s4485_s1 + $0x538] sm:$0xff] }
  0x7f   :  { %2084 = vmatprep.subr.bf16.mxu0 %v2083_v2  ;;  %v2103_v2 = vpack.c.bf16 %v508_v59, %v506_v58  ;;  %v528_v55 = vld [vmem:[%s4485_s1 + $0xf38] sm:$0xff]  ;;  %v1803_v58 = vpack.c.bf16 %v208_v53, %v206_v52  ;;  %v205_v59 = vld [vmem:[%s4485_s1 + $0x520] sm:$0xff] }
  0x81   :  { %1766 = vmatpush1.bf16.msra.mxu1 %v1765_v8  ;;  %v1785_v8 = vpack.c.bf16 %v187_v0, %v185_v63  ;;  %v527_v63 = vld [vmem:[%s4485_s1 + $0xf30] sm:$0xff]  ;;  %v210_v0 = vld [vmem:[%s4485_s1 + $0x548] sm:$0xff] }
  0x82   :  { %2086 = vmatpush1.bf16.msra.mxu0 %v2085_v9  ;;  %1768 = vmatprep.subr.bf16.mxu1 %v1767_v10  ;;  %v2105_v9 = vpack.c.bf16 %v507_v3, %v505_v1  ;;  %v1787_v10 = vpack.c.bf16 %v192_v5, %v190_v4  ;;  %v212_v1 = vld [vmem:[%s4485_s1 + $0x558] sm:$0xff] }
  0x83   :  { %2088 = vmatprep.subr.bf16.mxu0 %v2087_v14  ;;  %v2107_v14 = vpack.c.bf16 %v512_v7, %v510_v6  ;;  %v532_v3 = vld [vmem:[%s4485_s1 + $0xf58] sm:$0xff]  ;;  %v1807_v6 = vpack.c.bf16 %v212_v1, %v210_v0  ;;  %v209_v7 = vld [vmem:[%s4485_s1 + $0x540] sm:$0xff] }
  0x84   :  { %841 = vmatmul.mubr.f32.vlgmr.msra.gmra.mrb[0].mxu1 %v22_v20  ;;  %v1789_v20 = vpack.c.bf16 %v191_v12, %v189_v11  ;;  %v531_v11 = vld [vmem:[%s4485_s1 + $0xf50] sm:$0xff]  ;;  %v214_v12 = vld [vmem:[%s4485_s1 + $0x568] sm:$0xff] }
  0x85   :  { %1770 = vmatpush1.bf16.msra.mxu1 %v1769_v21  ;;  %1196 = vmatmul.mubr.f32.vlgmr.msra.gmra.mrb[0].mxu0 %v32_v22  ;;  %v2109_v21 = vpack.c.bf16 %v511_v15, %v509_v13  ;;  %v1791_v22 = vpack.c.bf16 %v196_v17, %v194_v16  ;;  %v216_v13 = vld [vmem:[%s4485_s1 + $0x578] sm:$0xff] }
  0x86   :  { %2090 = vmatpush1.bf16.msra.mxu0 %v2089_v23  ;;  %1772 = vmatprep.subr.bf16.mxu1 %v1771_v24  ;;  %v193_v23 = vld [vmem:[%s4485_s1 + $0x4c0] sm:$0xff]  ;;  %v195_v24 = vld [vmem:[%s4485_s1 + $0x4d0] sm:$0xff]  ;;  %v536_v15 = vld [vmem:[%s4485_s1 + $0xf78] sm:$0xff]  ;;  %v1811_v18 = vpack.c.bf16 %v216_v13, %v214_v12 }
  0x87   :  { %2092 = vmatprep.subr.bf16.mxu0 %v2091_v28  ;;  %911 = vmatprep.mubr.f32.mxu1 %v25_v34  ;;  %v198_v28 = vld [vmem:[%s4485_s1 + $0x4e8] sm:$0xff]  ;;  %v1793_v32 = vpack.c.bf16 %v195_v24, %v193_v23  ;;  %v535_v23 = vld [vmem:[%s4485_s1 + $0xf70] sm:$0xff] }
  0x88   :  { %1266 = vmatprep.mubr.f32.mxu0 %v35_v36  ;;  %v1795_v34 = vpack.c.bf16 %v200_v29, %v198_v28  ;;  %v199_v36 = vld [vmem:[%s4485_s1 + $0x4f0] sm:$0xff]  ;;  %v218_v24 = vld [vmem:[%s4485_s1 + $0x588] sm:$0xff] }
  0x89   :  { %1774 = vmatpush1.bf16.msra.mxu1 %v1773_v35  ;;  %v197_v35 = vld [vmem:[%s4485_s1 + $0x4e0] sm:$0xff] }
  0x8a   :  { %2094 = vmatpush1.bf16.msra.mxu0 %v2093_v37  ;;  %1776 = vmatprep.subr.bf16.mxu1 %v1775_v38  ;;  %v517_v37 = vld [vmem:[%s4485_s1 + $0xee0] sm:$0xff]  ;;  %v2115_v38 = vpack.c.bf16 %v520_v31, %v518_v30  ;;  %v1797_v44 = vpack.c.bf16 %v199_v36, %v197_v35  ;;  %v1815_v30 = vpack.c.bf16 %v220_v25, %v218_v24  ;;  %v539_v35 = vld [vmem:[%s4485_s1 + $0xf90] sm:$0xff]  ;;  %v222_v36 = vld [vmem:[%s4485_s1 + $0x5a8] sm:$0xff] }
  0x8b   :  { %2096 = vmatprep.subr.bf16.mxu0 %v2095_v42  ;;  %v522_v42 = vld [vmem:[%s4485_s1 + $0xf08] sm:$0xff]  ;;  %v2117_v45 = vpack.c.bf16 %v519_v39, %v517_v37  ;;  %v217_v31 = vld [vmem:[%s4485_s1 + $0x580] sm:$0xff]  ;;  %v224_v37 = vld [vmem:[%s4485_s1 + $0x5b8] sm:$0xff] }
  0x8c   :  { %v544_v39 = vld [vmem:[%s4485_s1 + $0xfb8] sm:$0xff]  ;;  %v24_v24 = vld [vmem:[%s4486_s0 + $0x20] sm:$0xff] }
  0x8d   :  { %1778 = vmatpush1.bf16.msra.mxu1 %v1777_v48  ;;  %v203_v48 = vld [vmem:[%s4485_s1 + $0x510] sm:$0xff] }
  0x8e   :  { %2098 = vmatpush1.bf16.msra.mxu0 %v2097_v49  ;;  %1780 = vmatprep.subr.bf16.mxu1 %v1779_v50  ;;  %v521_v49 = vld [vmem:[%s4485_s1 + $0xf00] sm:$0xff]  ;;  %v2119_v50 = vpack.c.bf16 %v524_v43, %v522_v42  ;;  %v1801_v56 = vpack.c.bf16 %v203_v48, %v201_v47  ;;  %v1819_v42 = vpack.c.bf16 %v224_v37, %v222_v36  ;;  %v543_v47 = vld [vmem:[%s4485_s1 + $0xfb0] sm:$0xff]  ;;  %v226_v48 = vld [vmem:[%s4485_s1 + $0x5c8] sm:$0xff] }
  0x8f   :  { %2100 = vmatprep.subr.bf16.mxu0 %v2099_v54  ;;  %v526_v54 = vld [vmem:[%s4485_s1 + $0xf28] sm:$0xff]  ;;  %v2121_v57 = vpack.c.bf16 %v523_v51, %v521_v49  ;;  %v221_v43 = vld [vmem:[%s4485_s1 + $0x5a0] sm:$0xff]  ;;  %v228_v49 = vld [vmem:[%s4485_s1 + $0x5d8] sm:$0xff] }
  0x90   :  { %v548_v51 = vld [vmem:[%s4485_s1 + $0xfd8] sm:$0xff]  ;;  %v562_v36 = vld [vmem:[%s4485_s1 + $0x1048] sm:$0xff] }
  0x91   :  { %1782 = vmatpush1.bf16.msra.mxu1 %v1781_v60  ;;  %v207_v60 = vld [vmem:[%s4485_s1 + $0x530] sm:$0xff]  ;;  %v564_v37 = vld [vmem:[%s4485_s1 + $0x1058] sm:$0xff] }
  0x92   :  { %2102 = vmatpush1.bf16.msra.mxu0 %v2101_v61  ;;  %1784 = vmatprep.subr.bf16.mxu1 %v1783_v62  ;;  %v525_v61 = vld [vmem:[%s4485_s1 + $0xf20] sm:$0xff]  ;;  %v2123_v62 = vpack.c.bf16 %v528_v55, %v526_v54  ;;  %v1805_v4 = vpack.c.bf16 %v207_v60, %v205_v59  ;;  %v1823_v54 = vpack.c.bf16 %v228_v49, %v226_v48  ;;  %v547_v59 = vld [vmem:[%s4485_s1 + $0xfd0] sm:$0xff]  ;;  %v230_v60 = vld [vmem:[%s4485_s1 + $0x5e8] sm:$0xff] }
  0x93   :  { %2104 = vmatprep.subr.bf16.mxu0 %v2103_v2  ;;  %v530_v2 = vld [vmem:[%s4485_s1 + $0xf48] sm:$0xff]  ;;  %v2125_v5 = vpack.c.bf16 %v527_v63, %v525_v61  ;;  %v225_v55 = vld [vmem:[%s4485_s1 + $0x5c0] sm:$0xff]  ;;  %v232_v61 = vld [vmem:[%s4485_s1 + $0x5f8] sm:$0xff] }
  0x94   :  { %v552_v63 = vld [vmem:[%s4485_s1 + $0xff8] sm:$0xff]  ;;  %v246_v48 = vld [vmem:[%s4485_s1 + $0x668] sm:$0xff] }
  0x95   :  { %1786 = vmatpush1.bf16.msra.mxu1 %v1785_v8  ;;  %v211_v8 = vld [vmem:[%s4485_s1 + $0x550] sm:$0xff]  ;;  %v248_v49 = vld [vmem:[%s4485_s1 + $0x678] sm:$0xff] }
  0x96   :  { %2106 = vmatpush1.bf16.msra.mxu0 %v2105_v9  ;;  %1788 = vmatprep.subr.bf16.mxu1 %v1787_v10  ;;  %v529_v9 = vld [vmem:[%s4485_s1 + $0xf40] sm:$0xff]  ;;  %v2127_v10 = vpack.c.bf16 %v532_v3, %v530_v2  ;;  %v1809_v16 = vpack.c.bf16 %v211_v8, %v209_v7  ;;  %v1827_v2 = vpack.c.bf16 %v232_v61, %v230_v60  ;;  %v551_v7 = vld [vmem:[%s4485_s1 + $0xff0] sm:$0xff]  ;;  %v234_v8 = vld [vmem:[%s4485_s1 + $0x608] sm:$0xff] }
  0x97   :  { %2108 = vmatprep.subr.bf16.mxu0 %v2107_v14  ;;  %v534_v14 = vld [vmem:[%s4485_s1 + $0xf68] sm:$0xff]  ;;  %v2129_v17 = vpack.c.bf16 %v531_v11, %v529_v9  ;;  %v229_v3 = vld [vmem:[%s4485_s1 + $0x5e0] sm:$0xff]  ;;  %v236_v9 = vld [vmem:[%s4485_s1 + $0x618] sm:$0xff] }
  0x98   :  { %v556_v11 = vld [vmem:[%s4485_s1 + $0x1018] sm:$0xff]  ;;  %v250_v60 = vld [vmem:[%s4485_s1 + $0x688] sm:$0xff] }
  0x99   :  { %1790 = vmatpush1.bf16.msra.mxu1 %v1789_v20  ;;  %v215_v20 = vld [vmem:[%s4485_s1 + $0x570] sm:$0xff]  ;;  %v252_v61 = vld [vmem:[%s4485_s1 + $0x698] sm:$0xff] }
  0x9a   :  { %2110 = vmatpush1.bf16.msra.mxu0 %v2109_v21  ;;  %1792 = vmatprep.subr.bf16.mxu1 %v1791_v22  ;;  %v533_v21 = vld [vmem:[%s4485_s1 + $0xf60] sm:$0xff]  ;;  %v2131_v22 = vpack.c.bf16 %v536_v15, %v534_v14  ;;  %v1813_v28 = vpack.c.bf16 %v215_v20, %v213_v19  ;;  %v1831_v14 = vpack.c.bf16 %v236_v9, %v234_v8  ;;  %v555_v19 = vld [vmem:[%s4485_s1 + $0x1010] sm:$0xff]  ;;  %v238_v20 = vld [vmem:[%s4485_s1 + $0x628] sm:$0xff] }
  0x9b   :  { %2112 = vmatprep.subr.bf16.mxu0 %v2111_v26  ;;  %v538_v26 = vld [vmem:[%s4485_s1 + $0xf88] sm:$0xff]  ;;  %v2133_v29 = vpack.c.bf16 %v535_v23, %v533_v21  ;;  %v233_v15 = vld [vmem:[%s4485_s1 + $0x600] sm:$0xff]  ;;  %v240_v21 = vld [vmem:[%s4485_s1 + $0x638] sm:$0xff] }
  0x9c   :  { %v560_v23 = vld [vmem:[%s4485_s1 + $0x1038] sm:$0xff]  ;;  %v254_v8 = vld [vmem:[%s4485_s1 + $0x6a8] sm:$0xff] }
  0x9d   :  { %1794 = vmatpush1.bf16.msra.mxu1 %v1793_v32  ;;  %v219_v32 = vld [vmem:[%s4485_s1 + $0x590] sm:$0xff]  ;;  %v256_v9 = vld [vmem:[%s4485_s1 + $0x6b8] sm:$0xff] }
  0x9e   :  { %2114 = vmatpush1.bf16.msra.mxu0 %v2113_v33  ;;  %1796 = vmatprep.subr.bf16.mxu1 %v1795_v34  ;;  %v537_v33 = vld [vmem:[%s4485_s1 + $0xf80] sm:$0xff]  ;;  %v2135_v34 = vpack.c.bf16 %v540_v27, %v538_v26  ;;  %v1817_v40 = vpack.c.bf16 %v219_v32, %v217_v31  ;;  %v34_v26 = vld [vmem:[%s4486_s0 + $0x70] sm:$0xff] }
  0x9f   :  { %2116 = vmatprep.subr.bf16.mxu0 %v2115_v38  ;;  %v542_v38 = vld [vmem:[%s4485_s1 + $0xfa8] sm:$0xff]  ;;  %v2137_v41 = vpack.c.bf16 %v539_v35, %v537_v33  ;;  %v557_v31 = vld [vmem:[%s4485_s1 + $0x1020] sm:$0xff]  ;;  %v559_v33 = vld [vmem:[%s4485_s1 + $0x1030] sm:$0xff] }
  0xa0   :  { %v244_v35 = vld [vmem:[%s4485_s1 + $0x658] sm:$0xff] }
  0xa1   :  { %1798 = vmatpush1.bf16.msra.mxu1 %v1797_v44  ;;  %v223_v44 = vld [vmem:[%s4485_s1 + $0x5b0] sm:$0xff] }
  0xa2   :  { %2118 = vmatpush1.bf16.msra.mxu0 %v2117_v45  ;;  %1800 = vmatprep.subr.bf16.mxu1 %v1799_v46  ;;  %v541_v45 = vld [vmem:[%s4485_s1 + $0xfa0] sm:$0xff]  ;;  %v2139_v46 = vpack.c.bf16 %v544_v39, %v542_v38  ;;  %v1821_v52 = vpack.c.bf16 %v223_v44, %v221_v43  ;;  %v27_v38 = vld [vmem:[%s4486_s0 + $0x38] sm:$0xff]  ;;  %v243_v44 = vld [vmem:[%s4485_s1 + $0x650] sm:$0xff] }
  0xa3   :  { %2120 = vmatprep.subr.bf16.mxu0 %v2119_v50  ;;  %v546_v50 = vld [vmem:[%s4485_s1 + $0xfc8] sm:$0xff]  ;;  %v2141_v53 = vpack.c.bf16 %v543_v47, %v541_v45  ;;  %v241_v43 = vld [vmem:[%s4485_s1 + $0x640] sm:$0xff]  ;;  %v563_v47 = vld [vmem:[%s4485_s1 + $0x1050] sm:$0xff] }
  0xa4   :  { %v561_v45 = vld [vmem:[%s4485_s1 + $0x1040] sm:$0xff] }
  0xa5   :  { %1802 = vmatpush1.bf16.msra.mxu1 %v1801_v56  ;;  %v227_v56 = vld [vmem:[%s4485_s1 + $0x5d0] sm:$0xff] }
  0xa6   :  { %2122 = vmatpush1.bf16.msra.mxu0 %v2121_v57  ;;  %1804 = vmatprep.subr.bf16.mxu1 %v1803_v58  ;;  %v545_v57 = vld [vmem:[%s4485_s1 + $0xfc0] sm:$0xff]  ;;  %v2143_v58 = vpack.c.bf16 %v548_v51, %v546_v50  ;;  %v1825_v0 = vpack.c.bf16 %v227_v56, %v225_v55  ;;  %v566_v50 = vld [vmem:[%s4485_s1 + $0x1068] sm:$0xff]  ;;  %v568_v51 = vld [vmem:[%s4485_s1 + $0x1078] sm:$0xff] }
  0xa7   :  { %2124 = vmatprep.subr.bf16.mxu0 %v2123_v62  ;;  %v550_v62 = vld [vmem:[%s4485_s1 + $0xfe8] sm:$0xff]  ;;  %v2145_v1 = vpack.c.bf16 %v547_v59, %v545_v57  ;;  %v245_v55 = vld [vmem:[%s4485_s1 + $0x660] sm:$0xff]  ;;  %v247_v56 = vld [vmem:[%s4485_s1 + $0x670] sm:$0xff] }
  0xa8   :  { %v565_v57 = vld [vmem:[%s4485_s1 + $0x1060] sm:$0xff]  ;;  %v567_v59 = vld [vmem:[%s4485_s1 + $0x1070] sm:$0xff] }
  0xa9   :  { %1806 = vmatpush1.bf16.msra.mxu1 %v1805_v4  ;;  %v231_v4 = vld [vmem:[%s4485_s1 + $0x5f0] sm:$0xff] }
  0xaa   :  { %2126 = vmatpush1.bf16.msra.mxu0 %v2125_v5  ;;  %1808 = vmatprep.subr.bf16.mxu1 %v1807_v6  ;;  %v549_v5 = vld [vmem:[%s4485_s1 + $0xfe0] sm:$0xff]  ;;  %v2147_v6 = vpack.c.bf16 %v552_v63, %v550_v62  ;;  %v1829_v12 = vpack.c.bf16 %v231_v4, %v229_v3  ;;  %v570_v62 = vld [vmem:[%s4485_s1 + $0x1088] sm:$0xff]  ;;  %v572_v63 = vld [vmem:[%s4485_s1 + $0x1098] sm:$0xff] }
  0xab   :  { %2128 = vmatprep.subr.bf16.mxu0 %v2127_v10  ;;  %v554_v10 = vld [vmem:[%s4485_s1 + $0x1008] sm:$0xff]  ;;  %v2149_v13 = vpack.c.bf16 %v551_v7, %v549_v5  ;;  %v249_v3 = vld [vmem:[%s4485_s1 + $0x680] sm:$0xff]  ;;  %v251_v4 = vld [vmem:[%s4485_s1 + $0x690] sm:$0xff] }
  0xac   :  { %v569_v5 = vld [vmem:[%s4485_s1 + $0x1080] sm:$0xff]  ;;  %v571_v7 = vld [vmem:[%s4485_s1 + $0x1090] sm:$0xff] }
  0xad   :  { %1810 = vmatpush1.bf16.msra.mxu1 %v1809_v16  ;;  %v235_v16 = vld [vmem:[%s4485_s1 + $0x610] sm:$0xff] }
  0xae   :  { %2130 = vmatpush1.bf16.msra.mxu0 %v2129_v17  ;;  %1812 = vmatprep.subr.bf16.mxu1 %v1811_v18  ;;  %v553_v17 = vld [vmem:[%s4485_s1 + $0x1000] sm:$0xff]  ;;  %v2151_v18 = vpack.c.bf16 %v556_v11, %v554_v10  ;;  %v1833_v25 = vpack.c.bf16 %v235_v16, %v233_v15  ;;  %v574_v10 = vld [vmem:[%s4485_s1 + $0x10a8] sm:$0xff]  ;;  %v576_v11 = vld [vmem:[%s4485_s1 + $0x10b8] sm:$0xff] }
  0xaf   :  { %2132 = vmatprep.subr.bf16.mxu0 %v2131_v22  ;;  %v558_v22 = vld [vmem:[%s4485_s1 + $0x1028] sm:$0xff]  ;;  %v2153_v27 = vpack.c.bf16 %v555_v19, %v553_v17  ;;  %v253_v15 = vld [vmem:[%s4485_s1 + $0x6a0] sm:$0xff]  ;;  %v255_v16 = vld [vmem:[%s4485_s1 + $0x6b0] sm:$0xff] }
  0xb0   :  { %v2155_v32 = vpack.c.bf16 %v560_v23, %v558_v22  ;;  %v573_v17 = vld [vmem:[%s4485_s1 + $0x10a0] sm:$0xff]  ;;  %v575_v19 = vld [vmem:[%s4485_s1 + $0x10b0] sm:$0xff]  ;;  %v578_v22 = vld [vmem:[%s4485_s1 + $0x10c8] sm:$0xff] }
  0xb1   :  { %1814 = vmatpush1.bf16.msra.mxu1 %v1813_v28  ;;  %v1835_v28 = vpack.c.bf16 %v240_v21, %v238_v20  ;;  %v258_v20 = vld [vmem:[%s4485_s1 + $0x6c8] sm:$0xff]  ;;  %v260_v21 = vld [vmem:[%s4485_s1 + $0x6d8] sm:$0xff] }
  0xb2   :  { %2134 = vmatpush1.bf16.msra.mxu0 %v2133_v29  ;;  %1816 = vmatprep.subr.bf16.mxu1 %v1815_v30  ;;  %v237_v29 = vld [vmem:[%s4485_s1 + $0x620] sm:$0xff]  ;;  %v239_v30 = vld [vmem:[%s4485_s1 + $0x630] sm:$0xff]  ;;  %v580_v23 = vld [vmem:[%s4485_s1 + $0x10d8] sm:$0xff] }
  0xb3   :  { %2136 = vmatprep.subr.bf16.mxu0 %v2135_v34  ;;  %v242_v34 = vld [vmem:[%s4485_s1 + $0x648] sm:$0xff]  ;;  %v1837_v39 = vpack.c.bf16 %v239_v30, %v237_v29  ;;  %v577_v29 = vld [vmem:[%s4485_s1 + $0x10c0] sm:$0xff]  ;;  %v2175_v30 = vpack.c.bf16 %v580_v23, %v578_v22 }
  0xb4   :  { %v277_v23 = vld [vmem:[%s4485_s1 + $0x760] sm:$0xff] }
  0xb5   :  { %1818 = vmatpush1.bf16.msra.mxu1 %v1817_v40  ;;  %v37_v40 = vld [vmem:[%s4486_s0 + $0x88] sm:$0xff] }
  0xb6   :  { %2138 = vmatpush1.bf16.msra.mxu0 %v2137_v41  ;;  %1820 = vmatprep.subr.bf16.mxu1 %v1819_v42  ;;  %v2157_v41 = vpack.c.bf16 %v559_v33, %v557_v31  ;;  %v1839_v42 = vpack.c.bf16 %v244_v35, %v242_v34  ;;  %v579_v31 = vld [vmem:[%s4485_s1 + $0x10d0] sm:$0xff]  ;;  %v264_v33 = vld [vmem:[%s4485_s1 + $0x6f8] sm:$0xff]  ;;  %v582_v34 = vld [vmem:[%s4485_s1 + $0x10e8] sm:$0xff] }
  0xb7   :  { %2140 = vmatprep.subr.bf16.mxu0 %v2139_v46  ;;  %v2159_v46 = vpack.c.bf16 %v564_v37, %v562_v36  ;;  %v584_v35 = vld [vmem:[%s4485_s1 + $0x10f8] sm:$0xff]  ;;  %v2177_v37 = vpack.c.bf16 %v579_v31, %v577_v29 }
  0xb8   :  { %v284_v29 = vld [vmem:[%s4485_s1 + $0x798] sm:$0xff] }
  0xb9   :  { %1822 = vmatpush1.bf16.msra.mxu1 %v1821_v52  ;;  %v1841_v52 = vpack.c.bf16 %v243_v44, %v241_v43  ;;  %v583_v43 = vld [vmem:[%s4485_s1 + $0x10f0] sm:$0xff]  ;;  %v266_v44 = vld [vmem:[%s4485_s1 + $0x708] sm:$0xff]  ;;  %v604_v31 = vld [vmem:[%s4485_s1 + $0x1198] sm:$0xff] }
  0xba   :  { %2142 = vmatpush1.bf16.msra.mxu0 %v2141_v53  ;;  %1824 = vmatprep.subr.bf16.mxu1 %v1823_v54  ;;  %v2161_v53 = vpack.c.bf16 %v563_v47, %v561_v45  ;;  %v1843_v54 = vpack.c.bf16 %v248_v49, %v246_v48  ;;  %v268_v45 = vld [vmem:[%s4485_s1 + $0x718] sm:$0xff] }
  0xbb   :  { %2144 = vmatprep.subr.bf16.mxu0 %v2143_v58  ;;  %v2163_v58 = vpack.c.bf16 %v568_v51, %v566_v50  ;;  %v588_v47 = vld [vmem:[%s4485_s1 + $0x1118] sm:$0xff]  ;;  %v1863_v50 = vpack.c.bf16 %v268_v45, %v266_v44  ;;  %v265_v51 = vld [vmem:[%s4485_s1 + $0x700] sm:$0xff] }
  0xbd   :  { %1826 = vmatpush1.bf16.msra.mxu1 %v1825_v0  ;;  %v1845_v0 = vpack.c.bf16 %v247_v56, %v245_v55  ;;  %v587_v55 = vld [vmem:[%s4485_s1 + $0x1110] sm:$0xff]  ;;  %v270_v56 = vld [vmem:[%s4485_s1 + $0x728] sm:$0xff] }
  0xbe   :  { %2146 = vmatpush1.bf16.msra.mxu0 %v2145_v1  ;;  %1828 = vmatprep.subr.bf16.mxu1 %v1827_v2  ;;  %v2165_v1 = vpack.c.bf16 %v567_v59, %v565_v57  ;;  %v1847_v2 = vpack.c.bf16 %v252_v61, %v250_v60  ;;  %v272_v57 = vld [vmem:[%s4485_s1 + $0x738] sm:$0xff] }
  0xbf   :  { %2148 = vmatprep.subr.bf16.mxu0 %v2147_v6  ;;  %v2167_v6 = vpack.c.bf16 %v572_v63, %v570_v62  ;;  %v592_v59 = vld [vmem:[%s4485_s1 + $0x1138] sm:$0xff]  ;;  %v1867_v62 = vpack.c.bf16 %v272_v57, %v270_v56  ;;  %v269_v63 = vld [vmem:[%s4485_s1 + $0x720] sm:$0xff] }
  0xc1   :  { %1830 = vmatpush1.bf16.msra.mxu1 %v1829_v12  ;;  %v1849_v12 = vpack.c.bf16 %v251_v4, %v249_v3  ;;  %v591_v3 = vld [vmem:[%s4485_s1 + $0x1130] sm:$0xff]  ;;  %v274_v4 = vld [vmem:[%s4485_s1 + $0x748] sm:$0xff] }
  0xc2   :  { %2150 = vmatpush1.bf16.msra.mxu0 %v2149_v13  ;;  %1832 = vmatprep.subr.bf16.mxu1 %v1831_v14  ;;  %v2169_v13 = vpack.c.bf16 %v571_v7, %v569_v5  ;;  %v1851_v14 = vpack.c.bf16 %v256_v9, %v254_v8  ;;  %v276_v5 = vld [vmem:[%s4485_s1 + $0x758] sm:$0xff] }
  0xc3   :  { %2152 = vmatprep.subr.bf16.mxu0 %v2151_v18  ;;  %v2171_v18 = vpack.c.bf16 %v576_v11, %v574_v10  ;;  %v596_v7 = vld [vmem:[%s4485_s1 + $0x1158] sm:$0xff]  ;;  %v1871_v10 = vpack.c.bf16 %v276_v5, %v274_v4  ;;  %v273_v11 = vld [vmem:[%s4485_s1 + $0x740] sm:$0xff] }
  0xc4   :  { %912 = vmatmul.mubr.f32.vlgmr.msra.gmra.mrb[0].mxu1 %v24_v24  ;;  %v1853_v24 = vpack.c.bf16 %v255_v16, %v253_v15  ;;  %v595_v15 = vld [vmem:[%s4485_s1 + $0x1150] sm:$0xff]  ;;  %v278_v16 = vld [vmem:[%s4485_s1 + $0x768] sm:$0xff] }
  0xc5   :  { %1834 = vmatpush1.bf16.msra.mxu1 %v1833_v25  ;;  %1267 = vmatmul.mubr.f32.vlgmr.msra.gmra.mrb[0].mxu0 %v34_v26  ;;  %v2173_v25 = vpack.c.bf16 %v575_v19, %v573_v17  ;;  %v1855_v26 = vpack.c.bf16 %v260_v21, %v258_v20  ;;  %v280_v17 = vld [vmem:[%s4485_s1 + $0x778] sm:$0xff] }
  0xc6   :  { %2154 = vmatpush1.bf16.msra.mxu0 %v2153_v27  ;;  %1836 = vmatprep.subr.bf16.mxu1 %v1835_v28  ;;  %v257_v27 = vld [vmem:[%s4485_s1 + $0x6c0] sm:$0xff]  ;;  %v259_v28 = vld [vmem:[%s4485_s1 + $0x6d0] sm:$0xff]  ;;  %v600_v19 = vld [vmem:[%s4485_s1 + $0x1178] sm:$0xff]  ;;  %v1875_v22 = vpack.c.bf16 %v280_v17, %v278_v16 }
  0xc7   :  { %2156 = vmatprep.subr.bf16.mxu0 %v2155_v32  ;;  %982 = vmatprep.mubr.f32.mxu1 %v27_v38  ;;  %v262_v32 = vld [vmem:[%s4485_s1 + $0x6e8] sm:$0xff]  ;;  %v1857_v36 = vpack.c.bf16 %v259_v28, %v257_v27  ;;  %v599_v27 = vld [vmem:[%s4485_s1 + $0x1170] sm:$0xff] }
  0xc8   :  { %1337 = vmatprep.mubr.f32.mxu0 %v37_v40  ;;  %v1859_v38 = vpack.c.bf16 %v264_v33, %v262_v32  ;;  %v263_v40 = vld [vmem:[%s4485_s1 + $0x6f0] sm:$0xff]  ;;  %v282_v28 = vld [vmem:[%s4485_s1 + $0x788] sm:$0xff] }
  0xc9   :  { %1838 = vmatpush1.bf16.msra.mxu1 %v1837_v39  ;;  %v261_v39 = vld [vmem:[%s4485_s1 + $0x6e0] sm:$0xff] }
  0xca   :  { %2158 = vmatpush1.bf16.msra.mxu0 %v2157_v41  ;;  %1840 = vmatprep.subr.bf16.mxu1 %v1839_v42  ;;  %v581_v41 = vld [vmem:[%s4485_s1 + $0x10e0] sm:$0xff]  ;;  %v2179_v42 = vpack.c.bf16 %v584_v35, %v582_v34  ;;  %v1861_v48 = vpack.c.bf16 %v263_v40, %v261_v39  ;;  %v1879_v34 = vpack.c.bf16 %v284_v29, %v282_v28  ;;  %v603_v39 = vld [vmem:[%s4485_s1 + $0x1190] sm:$0xff]  ;;  %v286_v40 = vld [vmem:[%s4485_s1 + $0x7a8] sm:$0xff] }
  0xcb   :  { %2160 = vmatprep.subr.bf16.mxu0 %v2159_v46  ;;  %v586_v46 = vld [vmem:[%s4485_s1 + $0x1108] sm:$0xff]  ;;  %v2181_v49 = vpack.c.bf16 %v583_v43, %v581_v41  ;;  %v281_v35 = vld [vmem:[%s4485_s1 + $0x780] sm:$0xff]  ;;  %v288_v41 = vld [vmem:[%s4485_s1 + $0x7b8] sm:$0xff] }
  0xcc   :  { %v608_v43 = vld [vmem:[%s4485_s1 + $0x11b8] sm:$0xff]  ;;  %v26_v28 = vld [vmem:[%s4486_s0 + $0x30] sm:$0xff] }
  0xcd   :  { %1842 = vmatpush1.bf16.msra.mxu1 %v1841_v52  ;;  %v267_v52 = vld [vmem:[%s4485_s1 + $0x710] sm:$0xff] }
  0xce   :  { %2162 = vmatpush1.bf16.msra.mxu0 %v2161_v53  ;;  %1844 = vmatprep.subr.bf16.mxu1 %v1843_v54  ;;  %v585_v53 = vld [vmem:[%s4485_s1 + $0x1100] sm:$0xff]  ;;  %v2183_v54 = vpack.c.bf16 %v588_v47, %v586_v46  ;;  %v1865_v60 = vpack.c.bf16 %v267_v52, %v265_v51  ;;  %v1883_v46 = vpack.c.bf16 %v288_v41, %v286_v40  ;;  %v607_v51 = vld [vmem:[%s4485_s1 + $0x11b0] sm:$0xff]  ;;  %v290_v52 = vld [vmem:[%s4485_s1 + $0x7c8] sm:$0xff] }
  0xcf   :  { %2164 = vmatprep.subr.bf16.mxu0 %v2163_v58  ;;  %v590_v58 = vld [vmem:[%s4485_s1 + $0x1128] sm:$0xff]  ;;  %v2185_v61 = vpack.c.bf16 %v587_v55, %v585_v53  ;;  %v285_v47 = vld [vmem:[%s4485_s1 + $0x7a0] sm:$0xff]  ;;  %v292_v53 = vld [vmem:[%s4485_s1 + $0x7d8] sm:$0xff] }
  0xd0   :  { %v612_v55 = vld [vmem:[%s4485_s1 + $0x11d8] sm:$0xff]  ;;  %v626_v40 = vld [vmem:[%s4485_s1 + $0x1248] sm:$0xff] }
  0xd1   :  { %1846 = vmatpush1.bf16.msra.mxu1 %v1845_v0  ;;  %v271_v0 = vld [vmem:[%s4485_s1 + $0x730] sm:$0xff]  ;;  %v628_v41 = vld [vmem:[%s4485_s1 + $0x1258] sm:$0xff] }
  0xd2   :  { %2166 = vmatpush1.bf16.msra.mxu0 %v2165_v1  ;;  %1848 = vmatprep.subr.bf16.mxu1 %v1847_v2  ;;  %v589_v1 = vld [vmem:[%s4485_s1 + $0x1120] sm:$0xff]  ;;  %v2187_v2 = vpack.c.bf16 %v592_v59, %v590_v58  ;;  %v1869_v8 = vpack.c.bf16 %v271_v0, %v269_v63  ;;  %v1887_v58 = vpack.c.bf16 %v292_v53, %v290_v52  ;;  %v611_v63 = vld [vmem:[%s4485_s1 + $0x11d0] sm:$0xff]  ;;  %v294_v0 = vld [vmem:[%s4485_s1 + $0x7e8] sm:$0xff] }
  0xd3   :  { %2168 = vmatprep.subr.bf16.mxu0 %v2167_v6  ;;  %v594_v6 = vld [vmem:[%s4485_s1 + $0x1148] sm:$0xff]  ;;  %v2189_v9 = vpack.c.bf16 %v591_v3, %v589_v1  ;;  %v289_v59 = vld [vmem:[%s4485_s1 + $0x7c0] sm:$0xff]  ;;  %v296_v1 = vld [vmem:[%s4485_s1 + $0x7f8] sm:$0xff] }
  0xd4   :  { %v616_v3 = vld [vmem:[%s4485_s1 + $0x11f8] sm:$0xff]  ;;  %v310_v52 = vld [vmem:[%s4485_s1 + $0x868] sm:$0xff] }
  0xd5   :  { %1850 = vmatpush1.bf16.msra.mxu1 %v1849_v12  ;;  %v275_v12 = vld [vmem:[%s4485_s1 + $0x750] sm:$0xff]  ;;  %v312_v53 = vld [vmem:[%s4485_s1 + $0x878] sm:$0xff] }
  0xd6   :  { %2170 = vmatpush1.bf16.msra.mxu0 %v2169_v13  ;;  %1852 = vmatprep.subr.bf16.mxu1 %v1851_v14  ;;  %v593_v13 = vld [vmem:[%s4485_s1 + $0x1140] sm:$0xff]  ;;  %v2191_v14 = vpack.c.bf16 %v596_v7, %v594_v6  ;;  %v1873_v20 = vpack.c.bf16 %v275_v12, %v273_v11  ;;  %v1891_v6 = vpack.c.bf16 %v296_v1, %v294_v0  ;;  %v615_v11 = vld [vmem:[%s4485_s1 + $0x11f0] sm:$0xff]  ;;  %v298_v12 = vld [vmem:[%s4485_s1 + $0x808] sm:$0xff] }
  0xd7   :  { %2172 = vmatprep.subr.bf16.mxu0 %v2171_v18  ;;  %v598_v18 = vld [vmem:[%s4485_s1 + $0x1168] sm:$0xff]  ;;  %v2193_v21 = vpack.c.bf16 %v595_v15, %v593_v13  ;;  %v293_v7 = vld [vmem:[%s4485_s1 + $0x7e0] sm:$0xff]  ;;  %v300_v13 = vld [vmem:[%s4485_s1 + $0x818] sm:$0xff] }
  0xd8   :  { %v620_v15 = vld [vmem:[%s4485_s1 + $0x1218] sm:$0xff]  ;;  %v314_v0 = vld [vmem:[%s4485_s1 + $0x888] sm:$0xff] }
  0xd9   :  { %1854 = vmatpush1.bf16.msra.mxu1 %v1853_v24  ;;  %v279_v24 = vld [vmem:[%s4485_s1 + $0x770] sm:$0xff]  ;;  %v316_v1 = vld [vmem:[%s4485_s1 + $0x898] sm:$0xff] }
  0xda   :  { %2174 = vmatpush1.bf16.msra.mxu0 %v2173_v25  ;;  %1856 = vmatprep.subr.bf16.mxu1 %v1855_v26  ;;  %v597_v25 = vld [vmem:[%s4485_s1 + $0x1160] sm:$0xff]  ;;  %v2195_v26 = vpack.c.bf16 %v600_v19, %v598_v18  ;;  %v1877_v32 = vpack.c.bf16 %v279_v24, %v277_v23  ;;  %v1895_v18 = vpack.c.bf16 %v300_v13, %v298_v12  ;;  %v619_v23 = vld [vmem:[%s4485_s1 + $0x1210] sm:$0xff]  ;;  %v302_v24 = vld [vmem:[%s4485_s1 + $0x828] sm:$0xff] }
  0xdb   :  { %2176 = vmatprep.subr.bf16.mxu0 %v2175_v30  ;;  %v602_v30 = vld [vmem:[%s4485_s1 + $0x1188] sm:$0xff]  ;;  %v2197_v33 = vpack.c.bf16 %v599_v27, %v597_v25  ;;  %v297_v19 = vld [vmem:[%s4485_s1 + $0x800] sm:$0xff]  ;;  %v304_v25 = vld [vmem:[%s4485_s1 + $0x838] sm:$0xff] }
  0xdc   :  { %v624_v27 = vld [vmem:[%s4485_s1 + $0x1238] sm:$0xff]  ;;  %v318_v12 = vld [vmem:[%s4485_s1 + $0x8a8] sm:$0xff] }
  0xdd   :  { %1858 = vmatpush1.bf16.msra.mxu1 %v1857_v36  ;;  %v283_v36 = vld [vmem:[%s4485_s1 + $0x790] sm:$0xff]  ;;  %v320_v13 = vld [vmem:[%s4485_s1 + $0x8b8] sm:$0xff] }
  0xde   :  { %2178 = vmatpush1.bf16.msra.mxu0 %v2177_v37  ;;  %1860 = vmatprep.subr.bf16.mxu1 %v1859_v38  ;;  %v601_v37 = vld [vmem:[%s4485_s1 + $0x1180] sm:$0xff]  ;;  %v2199_v38 = vpack.c.bf16 %v604_v31, %v602_v30  ;;  %v1881_v44 = vpack.c.bf16 %v283_v36, %v281_v35 }
  0xdf   :  { %2180 = vmatprep.subr.bf16.mxu0 %v2179_v42  ;;  %v606_v42 = vld [vmem:[%s4485_s1 + $0x11a8] sm:$0xff]  ;;  %v2201_v45 = vpack.c.bf16 %v603_v39, %v601_v37  ;;  %v36_v30 = vld [vmem:[%s4486_s0 + $0x80] sm:$0xff]  ;;  %v623_v37 = vld [vmem:[%s4485_s1 + $0x1230] sm:$0xff] }
  0xe0   :  { %v621_v35 = vld [vmem:[%s4485_s1 + $0x1220] sm:$0xff]  ;;  %v308_v39 = vld [vmem:[%s4485_s1 + $0x858] sm:$0xff] }
  0xe1   :  { %1862 = vmatpush1.bf16.msra.mxu1 %v1861_v48  ;;  %v287_v48 = vld [vmem:[%s4485_s1 + $0x7b0] sm:$0xff] }
  0xe2   :  { %2182 = vmatpush1.bf16.msra.mxu0 %v2181_v49  ;;  %1864 = vmatprep.subr.bf16.mxu1 %v1863_v50  ;;  %v605_v49 = vld [vmem:[%s4485_s1 + $0x11a0] sm:$0xff]  ;;  %v2203_v50 = vpack.c.bf16 %v608_v43, %v606_v42  ;;  %v1885_v56 = vpack.c.bf16 %v287_v48, %v285_v47  ;;  %v29_v42 = vld [vmem:[%s4486_s0 + $0x48] sm:$0xff]  ;;  %v307_v48 = vld [vmem:[%s4485_s1 + $0x850] sm:$0xff] }
  0xe3   :  { %2184 = vmatprep.subr.bf16.mxu0 %v2183_v54  ;;  %v610_v54 = vld [vmem:[%s4485_s1 + $0x11c8] sm:$0xff]  ;;  %v2205_v57 = vpack.c.bf16 %v607_v51, %v605_v49  ;;  %v305_v47 = vld [vmem:[%s4485_s1 + $0x840] sm:$0xff]  ;;  %v627_v51 = vld [vmem:[%s4485_s1 + $0x1250] sm:$0xff] }
  0xe4   :  { %v625_v49 = vld [vmem:[%s4485_s1 + $0x1240] sm:$0xff] }
  0xe5   :  { %1866 = vmatpush1.bf16.msra.mxu1 %v1865_v60  ;;  %v291_v60 = vld [vmem:[%s4485_s1 + $0x7d0] sm:$0xff] }
  0xe6   :  { %2186 = vmatpush1.bf16.msra.mxu0 %v2185_v61  ;;  %1868 = vmatprep.subr.bf16.mxu1 %v1867_v62  ;;  %v609_v61 = vld [vmem:[%s4485_s1 + $0x11c0] sm:$0xff]  ;;  %v2207_v62 = vpack.c.bf16 %v612_v55, %v610_v54  ;;  %v1889_v4 = vpack.c.bf16 %v291_v60, %v289_v59  ;;  %v630_v54 = vld [vmem:[%s4485_s1 + $0x1268] sm:$0xff]  ;;  %v632_v55 = vld [vmem:[%s4485_s1 + $0x1278] sm:$0xff] }
  0xe7   :  { %2188 = vmatprep.subr.bf16.mxu0 %v2187_v2  ;;  %v614_v2 = vld [vmem:[%s4485_s1 + $0x11e8] sm:$0xff]  ;;  %v2209_v5 = vpack.c.bf16 %v611_v63, %v609_v61  ;;  %v309_v59 = vld [vmem:[%s4485_s1 + $0x860] sm:$0xff]  ;;  %v311_v60 = vld [vmem:[%s4485_s1 + $0x870] sm:$0xff] }
  0xe8   :  { %v629_v61 = vld [vmem:[%s4485_s1 + $0x1260] sm:$0xff]  ;;  %v631_v63 = vld [vmem:[%s4485_s1 + $0x1270] sm:$0xff] }
  0xe9   :  { %1870 = vmatpush1.bf16.msra.mxu1 %v1869_v8  ;;  %v295_v8 = vld [vmem:[%s4485_s1 + $0x7f0] sm:$0xff] }
  0xea   :  { %2190 = vmatpush1.bf16.msra.mxu0 %v2189_v9  ;;  %1872 = vmatprep.subr.bf16.mxu1 %v1871_v10  ;;  %v613_v9 = vld [vmem:[%s4485_s1 + $0x11e0] sm:$0xff]  ;;  %v2211_v10 = vpack.c.bf16 %v616_v3, %v614_v2  ;;  %v1893_v16 = vpack.c.bf16 %v295_v8, %v293_v7  ;;  %v634_v2 = vld [vmem:[%s4485_s1 + $0x1288] sm:$0xff]  ;;  %v636_v3 = vld [vmem:[%s4485_s1 + $0x1298] sm:$0xff] }
  0xeb   :  { %2192 = vmatprep.subr.bf16.mxu0 %v2191_v14  ;;  %v618_v14 = vld [vmem:[%s4485_s1 + $0x1208] sm:$0xff]  ;;  %v2213_v17 = vpack.c.bf16 %v615_v11, %v613_v9  ;;  %v313_v7 = vld [vmem:[%s4485_s1 + $0x880] sm:$0xff]  ;;  %v315_v8 = vld [vmem:[%s4485_s1 + $0x890] sm:$0xff] }
  0xec   :  { %v633_v9 = vld [vmem:[%s4485_s1 + $0x1280] sm:$0xff]  ;;  %v635_v11 = vld [vmem:[%s4485_s1 + $0x1290] sm:$0xff] }
  0xed   :  { %1874 = vmatpush1.bf16.msra.mxu1 %v1873_v20  ;;  %v299_v20 = vld [vmem:[%s4485_s1 + $0x810] sm:$0xff] }
  0xee   :  { %2194 = vmatpush1.bf16.msra.mxu0 %v2193_v21  ;;  %1876 = vmatprep.subr.bf16.mxu1 %v1875_v22  ;;  %v617_v21 = vld [vmem:[%s4485_s1 + $0x1200] sm:$0xff]  ;;  %v2215_v22 = vpack.c.bf16 %v620_v15, %v618_v14  ;;  %v1897_v29 = vpack.c.bf16 %v299_v20, %v297_v19  ;;  %v638_v14 = vld [vmem:[%s4485_s1 + $0x12a8] sm:$0xff]  ;;  %v640_v15 = vld [vmem:[%s4485_s1 + $0x12b8] sm:$0xff] }
  0xef   :  { %2196 = vmatprep.subr.bf16.mxu0 %v2195_v26  ;;  %v622_v26 = vld [vmem:[%s4485_s1 + $0x1228] sm:$0xff]  ;;  %v2217_v31 = vpack.c.bf16 %v619_v23, %v617_v21  ;;  %v317_v19 = vld [vmem:[%s4485_s1 + $0x8a0] sm:$0xff]  ;;  %v319_v20 = vld [vmem:[%s4485_s1 + $0x8b0] sm:$0xff] }
  0xf0   :  { %v2219_v36 = vpack.c.bf16 %v624_v27, %v622_v26  ;;  %v637_v21 = vld [vmem:[%s4485_s1 + $0x12a0] sm:$0xff]  ;;  %v639_v23 = vld [vmem:[%s4485_s1 + $0x12b0] sm:$0xff]  ;;  %v642_v26 = vld [vmem:[%s4485_s1 + $0x12c8] sm:$0xff] }
  0xf1   :  { %1878 = vmatpush1.bf16.msra.mxu1 %v1877_v32  ;;  %v1899_v32 = vpack.c.bf16 %v304_v25, %v302_v24  ;;  %v322_v24 = vld [vmem:[%s4485_s1 + $0x8c8] sm:$0xff]  ;;  %v324_v25 = vld [vmem:[%s4485_s1 + $0x8d8] sm:$0xff] }
  0xf2   :  { %2198 = vmatpush1.bf16.msra.mxu0 %v2197_v33  ;;  %1880 = vmatprep.subr.bf16.mxu1 %v1879_v34  ;;  %v301_v33 = vld [vmem:[%s4485_s1 + $0x820] sm:$0xff]  ;;  %v303_v34 = vld [vmem:[%s4485_s1 + $0x830] sm:$0xff]  ;;  %v644_v27 = vld [vmem:[%s4485_s1 + $0x12d8] sm:$0xff] }
  0xf3   :  { %2200 = vmatprep.subr.bf16.mxu0 %v2199_v38  ;;  %v306_v38 = vld [vmem:[%s4485_s1 + $0x848] sm:$0xff]  ;;  %v1901_v43 = vpack.c.bf16 %v303_v34, %v301_v33  ;;  %v641_v33 = vld [vmem:[%s4485_s1 + $0x12c0] sm:$0xff]  ;;  %v2239_v34 = vpack.c.bf16 %v644_v27, %v642_v26 }
  0xf4   :  { %v341_v27 = vld [vmem:[%s4485_s1 + $0x960] sm:$0xff] }
  0xf5   :  { %1882 = vmatpush1.bf16.msra.mxu1 %v1881_v44  ;;  %v39_v44 = vld [vmem:[%s4486_s0 + $0x98] sm:$0xff] }
  0xf6   :  { %2202 = vmatpush1.bf16.msra.mxu0 %v2201_v45  ;;  %1884 = vmatprep.subr.bf16.mxu1 %v1883_v46  ;;  %v2221_v45 = vpack.c.bf16 %v623_v37, %v621_v35  ;;  %v1903_v46 = vpack.c.bf16 %v308_v39, %v306_v38  ;;  %v643_v35 = vld [vmem:[%s4485_s1 + $0x12d0] sm:$0xff]  ;;  %v328_v37 = vld [vmem:[%s4485_s1 + $0x8f8] sm:$0xff]  ;;  %v646_v38 = vld [vmem:[%s4485_s1 + $0x12e8] sm:$0xff] }
  0xf7   :  { %2204 = vmatprep.subr.bf16.mxu0 %v2203_v50  ;;  %v2223_v50 = vpack.c.bf16 %v628_v41, %v626_v40  ;;  %v648_v39 = vld [vmem:[%s4485_s1 + $0x12f8] sm:$0xff]  ;;  %v2241_v41 = vpack.c.bf16 %v643_v35, %v641_v33 }
  0xf8   :  { %v348_v33 = vld [vmem:[%s4485_s1 + $0x998] sm:$0xff] }
  0xf9   :  { %1886 = vmatpush1.bf16.msra.mxu1 %v1885_v56  ;;  %v1905_v56 = vpack.c.bf16 %v307_v48, %v305_v47  ;;  %v647_v47 = vld [vmem:[%s4485_s1 + $0x12f0] sm:$0xff]  ;;  %v330_v48 = vld [vmem:[%s4485_s1 + $0x908] sm:$0xff]  ;;  %v668_v35 = vld [vmem:[%s4485_s1 + $0x1398] sm:$0xff] }
  0xfa   :  { %2206 = vmatpush1.bf16.msra.mxu0 %v2205_v57  ;;  %1888 = vmatprep.subr.bf16.mxu1 %v1887_v58  ;;  %v2225_v57 = vpack.c.bf16 %v627_v51, %v625_v49  ;;  %v1907_v58 = vpack.c.bf16 %v312_v53, %v310_v52  ;;  %v332_v49 = vld [vmem:[%s4485_s1 + $0x918] sm:$0xff] }
  0xfb   :  { %2208 = vmatprep.subr.bf16.mxu0 %v2207_v62  ;;  %v2227_v62 = vpack.c.bf16 %v632_v55, %v630_v54  ;;  %v652_v51 = vld [vmem:[%s4485_s1 + $0x1318] sm:$0xff]  ;;  %v1927_v54 = vpack.c.bf16 %v332_v49, %v330_v48  ;;  %v329_v55 = vld [vmem:[%s4485_s1 + $0x900] sm:$0xff] }
  0xfd   :  { %1890 = vmatpush1.bf16.msra.mxu1 %v1889_v4  ;;  %v1909_v4 = vpack.c.bf16 %v311_v60, %v309_v59  ;;  %v651_v59 = vld [vmem:[%s4485_s1 + $0x1310] sm:$0xff]  ;;  %v334_v60 = vld [vmem:[%s4485_s1 + $0x928] sm:$0xff] }
  0xfe   :  { %2210 = vmatpush1.bf16.msra.mxu0 %v2209_v5  ;;  %1892 = vmatprep.subr.bf16.mxu1 %v1891_v6  ;;  %v2229_v5 = vpack.c.bf16 %v631_v63, %v629_v61  ;;  %v1911_v6 = vpack.c.bf16 %v316_v1, %v314_v0  ;;  %v336_v61 = vld [vmem:[%s4485_s1 + $0x938] sm:$0xff] }
  0xff   :  { %2212 = vmatprep.subr.bf16.mxu0 %v2211_v10  ;;  %v2231_v10 = vpack.c.bf16 %v636_v3, %v634_v2  ;;  %v656_v63 = vld [vmem:[%s4485_s1 + $0x1338] sm:$0xff]  ;;  %v1931_v2 = vpack.c.bf16 %v336_v61, %v334_v60  ;;  %v333_v3 = vld [vmem:[%s4485_s1 + $0x920] sm:$0xff] }
 0x101   :  { %1894 = vmatpush1.bf16.msra.mxu1 %v1893_v16  ;;  %v1913_v16 = vpack.c.bf16 %v315_v8, %v313_v7  ;;  %v655_v7 = vld [vmem:[%s4485_s1 + $0x1330] sm:$0xff]  ;;  %v338_v8 = vld [vmem:[%s4485_s1 + $0x948] sm:$0xff] }
 0x102   :  { %2214 = vmatpush1.bf16.msra.mxu0 %v2213_v17  ;;  %1896 = vmatprep.subr.bf16.mxu1 %v1895_v18  ;;  %v2233_v17 = vpack.c.bf16 %v635_v11, %v633_v9  ;;  %v1915_v18 = vpack.c.bf16 %v320_v13, %v318_v12  ;;  %v340_v9 = vld [vmem:[%s4485_s1 + $0x958] sm:$0xff] }
 0x103   :  { %2216 = vmatprep.subr.bf16.mxu0 %v2215_v22  ;;  %v2235_v22 = vpack.c.bf16 %v640_v15, %v638_v14  ;;  %v660_v11 = vld [vmem:[%s4485_s1 + $0x1358] sm:$0xff]  ;;  %v1935_v14 = vpack.c.bf16 %v340_v9, %v338_v8  ;;  %v337_v15 = vld [vmem:[%s4485_s1 + $0x940] sm:$0xff] }
 0x104   :  { %983 = vmatmul.mubr.f32.vlgmr.msra.gmra.mrb[0].mxu1 %v26_v28  ;;  %v1917_v28 = vpack.c.bf16 %v319_v20, %v317_v19  ;;  %v659_v19 = vld [vmem:[%s4485_s1 + $0x1350] sm:$0xff]  ;;  %v342_v20 = vld [vmem:[%s4485_s1 + $0x968] sm:$0xff] }
 0x105   :  { %1898 = vmatpush1.bf16.msra.mxu1 %v1897_v29  ;;  %1338 = vmatmul.mubr.f32.vlgmr.msra.gmra.mrb[0].mxu0 %v36_v30  ;;  %v2237_v29 = vpack.c.bf16 %v639_v23, %v637_v21  ;;  %v1919_v30 = vpack.c.bf16 %v324_v25, %v322_v24  ;;  %v344_v21 = vld [vmem:[%s4485_s1 + $0x978] sm:$0xff] }
 0x106   :  { %2218 = vmatpush1.bf16.msra.mxu0 %v2217_v31  ;;  %1900 = vmatprep.subr.bf16.mxu1 %v1899_v32  ;;  %v321_v31 = vld [vmem:[%s4485_s1 + $0x8c0] sm:$0xff]  ;;  %v323_v32 = vld [vmem:[%s4485_s1 + $0x8d0] sm:$0xff]  ;;  %v664_v23 = vld [vmem:[%s4485_s1 + $0x1378] sm:$0xff]  ;;  %v1939_v26 = vpack.c.bf16 %v344_v21, %v342_v20 }
 0x107   :  { %2220 = vmatprep.subr.bf16.mxu0 %v2219_v36  ;;  %1053 = vmatprep.mubr.f32.mxu1 %v29_v42  ;;  %v326_v36 = vld [vmem:[%s4485_s1 + $0x8e8] sm:$0xff]  ;;  %v1921_v40 = vpack.c.bf16 %v323_v32, %v321_v31  ;;  %v663_v31 = vld [vmem:[%s4485_s1 + $0x1370] sm:$0xff] }
 0x108   :  { %1408 = vmatprep.mubr.f32.mxu0 %v39_v44  ;;  %v1923_v42 = vpack.c.bf16 %v328_v37, %v326_v36  ;;  %v327_v44 = vld [vmem:[%s4485_s1 + $0x8f0] sm:$0xff]  ;;  %v346_v32 = vld [vmem:[%s4485_s1 + $0x988] sm:$0xff] }
 0x109   :  { %1902 = vmatpush1.bf16.msra.mxu1 %v1901_v43  ;;  %v325_v43 = vld [vmem:[%s4485_s1 + $0x8e0] sm:$0xff] }
 0x10a   :  { %2222 = vmatpush1.bf16.msra.mxu0 %v2221_v45  ;;  %1904 = vmatprep.subr.bf16.mxu1 %v1903_v46  ;;  %v645_v45 = vld [vmem:[%s4485_s1 + $0x12e0] sm:$0xff]  ;;  %v2243_v46 = vpack.c.bf16 %v648_v39, %v646_v38  ;;  %v1925_v52 = vpack.c.bf16 %v327_v44, %v325_v43  ;;  %v1943_v38 = vpack.c.bf16 %v348_v33, %v346_v32  ;;  %v667_v43 = vld [vmem:[%s4485_s1 + $0x1390] sm:$0xff]  ;;  %v350_v44 = vld [vmem:[%s4485_s1 + $0x9a8] sm:$0xff] }
 0x10b   :  { %2224 = vmatprep.subr.bf16.mxu0 %v2223_v50  ;;  %v650_v50 = vld [vmem:[%s4485_s1 + $0x1308] sm:$0xff]  ;;  %v2245_v53 = vpack.c.bf16 %v647_v47, %v645_v45  ;;  %v345_v39 = vld [vmem:[%s4485_s1 + $0x980] sm:$0xff]  ;;  %v352_v45 = vld [vmem:[%s4485_s1 + $0x9b8] sm:$0xff] }
 0x10c   :  { %v672_v47 = vld [vmem:[%s4485_s1 + $0x13b8] sm:$0xff]  ;;  %v28_v32 = vld [vmem:[%s4486_s0 + $0x40] sm:$0xff]  ;;  %v38_v33 = vld [vmem:[%s4486_s0 + $0x90] sm:$0xff] }
 0x10d   :  { %1906 = vmatpush1.bf16.msra.mxu1 %v1905_v56  ;;  %v331_v56 = vld [vmem:[%s4485_s1 + $0x910] sm:$0xff] }
 0x10e   :  { %2226 = vmatpush1.bf16.msra.mxu0 %v2225_v57  ;;  %1908 = vmatprep.subr.bf16.mxu1 %v1907_v58  ;;  %v649_v57 = vld [vmem:[%s4485_s1 + $0x1300] sm:$0xff]  ;;  %v2247_v58 = vpack.c.bf16 %v652_v51, %v650_v50  ;;  %v1929_v0 = vpack.c.bf16 %v331_v56, %v329_v55  ;;  %v1947_v50 = vpack.c.bf16 %v352_v45, %v350_v44  ;;  %v671_v55 = vld [vmem:[%s4485_s1 + $0x13b0] sm:$0xff]  ;;  %v354_v56 = vld [vmem:[%s4485_s1 + $0x9c8] sm:$0xff] }
 0x10f   :  { %2228 = vmatprep.subr.bf16.mxu0 %v2227_v62  ;;  %v654_v62 = vld [vmem:[%s4485_s1 + $0x1328] sm:$0xff]  ;;  %v2249_v1 = vpack.c.bf16 %v651_v59, %v649_v57  ;;  %v349_v51 = vld [vmem:[%s4485_s1 + $0x9a0] sm:$0xff]  ;;  %v356_v57 = vld [vmem:[%s4485_s1 + $0x9d8] sm:$0xff] }
 0x110   :  { %v676_v59 = vld [vmem:[%s4485_s1 + $0x13d8] sm:$0xff] }
 0x111   :  { %1910 = vmatpush1.bf16.msra.mxu1 %v1909_v4  ;;  %v335_v4 = vld [vmem:[%s4485_s1 + $0x930] sm:$0xff] }
 0x112   :  { %2230 = vmatpush1.bf16.msra.mxu0 %v2229_v5  ;;  %1912 = vmatprep.subr.bf16.mxu1 %v1911_v6  ;;  %v653_v5 = vld [vmem:[%s4485_s1 + $0x1320] sm:$0xff]  ;;  %v2251_v6 = vpack.c.bf16 %v656_v63, %v654_v62  ;;  %v1933_v12 = vpack.c.bf16 %v335_v4, %v333_v3  ;;  %v1951_v62 = vpack.c.bf16 %v356_v57, %v354_v56  ;;  %v675_v3 = vld [vmem:[%s4485_s1 + $0x13d0] sm:$0xff]  ;;  %v358_v4 = vld [vmem:[%s4485_s1 + $0x9e8] sm:$0xff] }
 0x113   :  { %2232 = vmatprep.subr.bf16.mxu0 %v2231_v10  ;;  %v658_v10 = vld [vmem:[%s4485_s1 + $0x1348] sm:$0xff]  ;;  %v2253_v13 = vpack.c.bf16 %v655_v7, %v653_v5  ;;  %v353_v63 = vld [vmem:[%s4485_s1 + $0x9c0] sm:$0xff]  ;;  %v360_v5 = vld [vmem:[%s4485_s1 + $0x9f8] sm:$0xff] }
 0x114   :  { %v680_v7 = vld [vmem:[%s4485_s1 + $0x13f8] sm:$0xff]  ;;  %v1512_v57 = vld [vmem:[%s4487_s3 + $0xc0] sm:$0xff] }
 0x115   :  { %1914 = vmatpush1.bf16.msra.mxu1 %v1913_v16  ;;  %v339_v16 = vld [vmem:[%s4485_s1 + $0x950] sm:$0xff]  ;;  %v1495_v56 = vld [vmem:[%s4487_s3 + $0x38] sm:$0xff] }
 0x116   :  { %2234 = vmatpush1.bf16.msra.mxu0 %v2233_v17  ;;  %1916 = vmatprep.subr.bf16.mxu1 %v1915_v18  ;;  %v657_v17 = vld [vmem:[%s4485_s1 + $0x1340] sm:$0xff]  ;;  %v2255_v18 = vpack.c.bf16 %v660_v11, %v658_v10  ;;  %v1937_v24 = vpack.c.bf16 %v339_v16, %v337_v15  ;;  %v1955_v10 = vpack.c.bf16 %v360_v5, %v358_v4  ;;  %v679_v15 = vld [vmem:[%s4485_s1 + $0x13f0] sm:$0xff]  ;;  %v1499_v4 = vld [vmem:[%s4487_s3 + $0x58] sm:$0xff] }
 0x117   :  { %2236 = vmatprep.subr.bf16.mxu0 %v2235_v22  ;;  %v662_v22 = vld [vmem:[%s4485_s1 + $0x1368] sm:$0xff]  ;;  %v2257_v25 = vpack.c.bf16 %v659_v19, %v657_v17  ;;  %v357_v11 = vld [vmem:[%s4485_s1 + $0x9e0] sm:$0xff]  ;;  %v684_v19 = vld [vmem:[%s4485_s1 + $0x1418] sm:$0xff] }
 0x118   :  { %v1504_v16 = vld [vmem:[%s4487_s3 + $0x80] sm:$0xff]  ;;  %v1505_v17 = vld [vmem:[%s4487_s3 + $0x88] sm:$0xff] }
 0x119   :  { %1918 = vmatpush1.bf16.msra.mxu1 %v1917_v28  ;;  %v343_v28 = vld [vmem:[%s4485_s1 + $0x970] sm:$0xff]  ;;  %v1516_v5 = vld [vmem:[%s4487_s3 + $0xe0] sm:$0xff] }
 0x11a   :  { %2238 = vmatpush1.bf16.msra.mxu0 %v2237_v29  ;;  %1920 = vmatprep.subr.bf16.mxu1 %v1919_v30  ;;  %v661_v29 = vld [vmem:[%s4485_s1 + $0x1360] sm:$0xff]  ;;  %v2259_v30 = vpack.c.bf16 %v664_v23, %v662_v22  ;;  %v1941_v36 = vpack.c.bf16 %v343_v28, %v341_v27  ;;  %v2287_v22 = vpack.c.bf16 %v1505_v17, %v1504_v16  ;;  %v683_v27 = vld [vmem:[%s4485_s1 + $0x1410] sm:$0xff]  ;;  %v686_v28 = vld [vmem:[%s4485_s1 + $0x1428] sm:$0xff] }
 0x11b   :  { %2240 = vmatprep.subr.bf16.mxu0 %v2239_v34  ;;  %v666_v34 = vld [vmem:[%s4485_s1 + $0x1388] sm:$0xff]  ;;  %v2261_v37 = vpack.c.bf16 %v663_v31, %v661_v29  ;;  %v1488_v23 = vld [vmem:[%s4487_s3] sm:$0xff]  ;;  %v688_v29 = vld [vmem:[%s4485_s1 + $0x1438] sm:$0xff] }
 0x11c   :  { %v1507_v31 = vld [vmem:[%s4487_s3 + $0x98] sm:$0xff] }
 0x11d   :  { %1922 = vmatpush1.bf16.msra.mxu1 %v1921_v40  ;;  %v347_v40 = vld [vmem:[%s4485_s1 + $0x990] sm:$0xff]  ;;  %v1503_v16 = vld [vmem:[%s4487_s3 + $0x78] sm:$0xff] }
 0x11e   :  { %2242 = vmatpush1.bf16.msra.mxu0 %v2241_v41  ;;  %1924 = vmatprep.subr.bf16.mxu1 %v1923_v42  ;;  %v665_v41 = vld [vmem:[%s4485_s1 + $0x1380] sm:$0xff]  ;;  %v2263_v42 = vpack.c.bf16 %v668_v35, %v666_v34  ;;  %v1945_v48 = vpack.c.bf16 %v347_v40, %v345_v39  ;;  %v2283_v39 = vpack.c.bf16 %v688_v29, %v686_v28  ;;  %v687_v40 = vld [vmem:[%s4485_s1 + $0x1430] sm:$0xff] }
 0x11f   :  { %2244 = vmatprep.subr.bf16.mxu0 %v2243_v46  ;;  %v670_v46 = vld [vmem:[%s4485_s1 + $0x13a8] sm:$0xff]  ;;  %v2265_v49 = vpack.c.bf16 %v667_v43, %v665_v41 }
 0x120   :  { %v1509_v43 = vld [vmem:[%s4487_s3 + $0xa8] sm:$0xff] }
 0x121   :  { %1926 = vmatpush1.bf16.msra.mxu1 %v1925_v52  ;;  %v351_v52 = vld [vmem:[%s4485_s1 + $0x9b0] sm:$0xff] }
 0x122   :  { %2246 = vmatpush1.bf16.msra.mxu0 %v2245_v53  ;;  %1928 = vmatprep.subr.bf16.mxu1 %v1927_v54  ;;  %v669_v53 = vld [vmem:[%s4485_s1 + $0x13a0] sm:$0xff]  ;;  %v2267_v54 = vpack.c.bf16 %v672_v47, %v670_v46  ;;  %v1949_v60 = vpack.c.bf16 %v351_v52, %v349_v51  ;;  %v2342_v46 = vmov 0.0   ;;  %v1511_v51 = vld [vmem:[%s4487_s3 + $0xb8] sm:$0xff] }
 0x123   :  { %2248 = vmatprep.subr.bf16.mxu0 %v2247_v58  ;;  %v674_v58 = vld [vmem:[%s4485_s1 + $0x13c8] sm:$0xff]  ;;  %v2269_v61 = vpack.c.bf16 %v671_v55, %v669_v53  ;;  %v40_v53 = vld [vmem:[%s4486_s0 + $0xa0] sm:$0xff]  ;;  %v1494_v55 = vld [vmem:[%s4487_s3 + $0x30] sm:$0xff] }
 0x125   :  { %1930 = vmatpush1.bf16.msra.mxu1 %v1929_v0  ;;  %v355_v0 = vld [vmem:[%s4485_s1 + $0x9d0] sm:$0xff] }
 0x126   :  { %2250 = vmatpush1.bf16.msra.mxu0 %v2249_v1  ;;  %1932 = vmatprep.subr.bf16.mxu1 %v1931_v2  ;;  %v673_v1 = vld [vmem:[%s4485_s1 + $0x13c0] sm:$0xff]  ;;  %v2271_v2 = vpack.c.bf16 %v676_v59, %v674_v58  ;;  %v1953_v8 = vpack.c.bf16 %v355_v0, %v353_v63  ;;  %v1513_v58 = vld [vmem:[%s4487_s3 + $0xc8] sm:$0xff]  ;;  %v2301_v59 = vpack.c.bf16 %v1495_v56, %v1494_v55  ;;  %v1514_v0 = vld [vmem:[%s4487_s3 + $0xd0] sm:$0xff] }
 0x127   :  { %2252 = vmatprep.subr.bf16.mxu0 %v2251_v6  ;;  %v678_v6 = vld [vmem:[%s4485_s1 + $0x13e8] sm:$0xff]  ;;  %v2273_v9 = vpack.c.bf16 %v675_v3, %v673_v1  ;;  %v1515_v1 = vld [vmem:[%s4487_s3 + $0xd8] sm:$0xff]  ;;  %v1498_v3 = vld [vmem:[%s4487_s3 + $0x50] sm:$0xff] }
 0x129   :  { %1934 = vmatpush1.bf16.msra.mxu1 %v1933_v12  ;;  %v359_v12 = vld [vmem:[%s4485_s1 + $0x9f0] sm:$0xff] }
 0x12a   :  { %2254 = vmatpush1.bf16.msra.mxu0 %v2253_v13  ;;  %1936 = vmatprep.subr.bf16.mxu1 %v1935_v14  ;;  %v677_v13 = vld [vmem:[%s4485_s1 + $0x13e0] sm:$0xff]  ;;  %v2275_v14 = vpack.c.bf16 %v680_v7, %v678_v6  ;;  %v1957_v20 = vpack.c.bf16 %v359_v12, %v357_v11  ;;  %v2309_v6 = vpack.c.bf16 %v1499_v4, %v1498_v3  ;;  %v1517_v7 = vld [vmem:[%s4487_s3 + $0xe8] sm:$0xff]  ;;  %v1518_v12 = vld [vmem:[%s4487_s3 + $0xf0] sm:$0xff] }
 0x12b   :  { %2256 = vmatprep.subr.bf16.mxu0 %v2255_v18  ;;  %v682_v18 = vld [vmem:[%s4485_s1 + $0x1408] sm:$0xff]  ;;  %v2277_v21 = vpack.c.bf16 %v679_v15, %v677_v13  ;;  %v1519_v13 = vld [vmem:[%s4487_s3 + $0xf8] sm:$0xff]  ;;  %v1502_v15 = vld [vmem:[%s4487_s3 + $0x70] sm:$0xff] }
 0x12c   :  { %v2317_v17 = vpack.c.bf16 %v1503_v16, %v1502_v15 }
 0x12d   :  { %1938 = vmatpush1.bf16.msra.mxu1 %v1937_v24  ;;  %v1489_v24 = vld [vmem:[%s4487_s3 + $0x8] sm:$0xff] }
 0x12e   :  { %2258 = vmatpush1.bf16.msra.mxu0 %v2257_v25  ;;  %1940 = vmatprep.subr.bf16.mxu1 %v1939_v26  ;;  %v2279_v25 = vpack.c.bf16 %v684_v19, %v682_v18  ;;  %v681_v26 = vld [vmem:[%s4485_s1 + $0x1400] sm:$0xff]  ;;  %v2289_v34 = vpack.c.bf16 %v1489_v24, %v1488_v23  ;;  %v691_v18 = vlaneseq }
 0x12f   :  { %2260 = vmatprep.subr.bf16.mxu0 %v2259_v30  ;;  %v1506_v30 = vld [vmem:[%s4487_s3 + $0x90] sm:$0xff]  ;;  %v2281_v35 = vpack.c.bf16 %v683_v27, %v681_v26 }
 0x130   :  { %v2291_v41 = vpack.c.bf16 %v1507_v31, %v1506_v30  ;;  %v692_v19 = vshrl.u32 %v691_v18, 7 }
 0x131   :  { %1942 = vmatpush1.bf16.msra.mxu1 %v1941_v36  ;;  %v685_v36 = vld [vmem:[%s4485_s1 + $0x1420] sm:$0xff] }
 0x132   :  { %2262 = vmatpush1.bf16.msra.mxu0 %v2261_v37  ;;  %1944 = vmatprep.subr.bf16.mxu1 %v1943_v38  ;;  %v1490_v37 = vld [vmem:[%s4487_s3 + $0x10] sm:$0xff]  ;;  %v1491_v38 = vld [vmem:[%s4487_s3 + $0x18] sm:$0xff]  ;;  %v2285_v45 = vpack.c.bf16 %v687_v40, %v685_v36  ;;  %v697_v23 = vsub.s32 1, %v692_v19  ;;  %v1603_v36 = vld [vmem:[%s4489_s4] ss:$0 sm:$0xff] }
 0x133   :  { %2264 = vmatprep.subr.bf16.mxu0 %v2263_v42  ;;  %v1508_v42 = vld [vmem:[%s4487_s3 + $0xa0] sm:$0xff]  ;;  %v2293_v44 = vpack.c.bf16 %v1491_v38, %v1490_v37 }
 0x134   :  { %v2295_v47 = vpack.c.bf16 %v1509_v43, %v1508_v42 }
 0x135   :  { %1946 = vmatpush1.bf16.msra.mxu1 %v1945_v48  ;;  %v1492_v48 = vld [vmem:[%s4487_s3 + $0x20] sm:$0xff] }
 0x136   :  { %2266 = vmatpush1.bf16.msra.mxu0 %v2265_v49  ;;  %1948 = vmatprep.subr.bf16.mxu1 %v1947_v50  ;;  %v1493_v49 = vld [vmem:[%s4487_s3 + $0x28] sm:$0xff]  ;;  %v1510_v50 = vld [vmem:[%s4487_s3 + $0xb0] sm:$0xff] }
 0x137   :  { %2268 = vmatprep.subr.bf16.mxu0 %v2267_v54  ;;  %v2297_v52 = vpack.c.bf16 %v1493_v49, %v1492_v48  ;;  %v2299_v54 = vpack.c.bf16 %v1511_v51, %v1510_v50 }
 0x139   :  { %1950 = vmatpush1.bf16.msra.mxu1 %v1949_v60  ;;  %v2303_v60 = vpack.c.bf16 %v1513_v58, %v1512_v57 }
 0x13a   :  { %2270 = vmatpush1.bf16.msra.mxu0 %v2269_v61  ;;  %1952 = vmatprep.subr.bf16.mxu1 %v1951_v62  ;;  %v1496_v61 = vld [vmem:[%s4487_s3 + $0x40] sm:$0xff]  ;;  %v1497_v62 = vld [vmem:[%s4487_s3 + $0x48] sm:$0xff] }
 0x13b   :  { %2272 = vmatprep.subr.bf16.mxu0 %v2271_v2  ;;  %v2305_v63 = vpack.c.bf16 %v1497_v62, %v1496_v61  ;;  %v2307_v2 = vpack.c.bf16 %v1515_v1, %v1514_v0 }
 0x13d   :  { %1954 = vmatpush1.bf16.msra.mxu1 %v1953_v8  ;;  %v2311_v8 = vpack.c.bf16 %v1517_v7, %v1516_v5 }
 0x13e   :  { %2274 = vmatpush1.bf16.msra.mxu0 %v2273_v9  ;;  %1956 = vmatprep.subr.bf16.mxu1 %v1955_v10  ;;  %v1500_v9 = vld [vmem:[%s4487_s3 + $0x60] sm:$0xff]  ;;  %v1501_v10 = vld [vmem:[%s4487_s3 + $0x68] sm:$0xff] }
 0x13f   :  { %2276 = vmatprep.subr.bf16.mxu0 %v2275_v14  ;;  %v2313_v11 = vpack.c.bf16 %v1501_v10, %v1500_v9  ;;  %v2315_v14 = vpack.c.bf16 %v1519_v13, %v1518_v12 }
 0x141   :  { %1958 = vmatpush1.bf16.msra.mxu1 %v1957_v20  ;;  %v693_v20 = vsub.s32 0, %v692_v19 }
 0x142   :  { %2278 = vmatpush1.bf16.msra.mxu0 %v2277_v21  ;;  %2288 = vmatprep.subr.bf16.mxu1 %v2287_v22  ;;  %v689_v22 = vld [vmem:[%s4488_s2] sm:$0x3] }
 0x143   :  { %2280 = vmatprep.subr.bf16.mxu0 %v2279_v25  ;;  %v694_v25 = vrot.slane %v689_v22, %v693_v20  ;;  %v698_v26 = vrot.slane %v689_v22, %v697_v23 }
 0x144   :  { %1054 = vmatmul.mubr.f32.vlgmr.msra.gmra.mrb[0].mxu1 %v28_v32 }
 0x145   :  { %1409 = vmatmul.mubr.f32.vlgmr.msra.gmra.mrb[0].mxu0 %v38_v33  ;;  %2290 = vmatpush3.bf16.msra.mxu1 %v2289_v34 }
 0x146   :  { %2282 = vmatpush1.bf16.msra.mxu0 %v2281_v35  ;;  %1479 = vmatprep.mubr.f32.mxu0 %v2342_v46 }
 0x147   :  { %2284 = vmatprep.subr.bf16.mxu0 %v2283_v39  ;;  %2292 = vmatprep.subr.bf16.mxu1 %v2291_v41 }
 0x149   :  { %2294 = vmatpush3.bf16.msra.mxu1 %v2293_v44 }
 0x14a   :  { %2286 = vmatpush1.bf16.msra.mxu0 %v2285_v45  ;;  %2296 = vmatprep.subr.bf16.mxu1 %v2295_v47 }
 0x14d   :  { %1602 = vmatmul.mubr.msk.f32.vlgmr.msra.gmra.mrb[0].mxu0 %vm701_vm0, %v40_v53  ;;  %2298 = vmatpush3.bf16.msra.mxu1 %v2297_v52 }
 0x14e   :  { %2300 = vmatprep.subr.bf16.mxu1 %v2299_v54 }
 0x151   :  { %2302 = vmatpush3.bf16.msra.mxu1 %v2301_v59 }
 0x152   :  { %2304 = vmatprep.subr.bf16.mxu1 %v2303_v60 }
 0x155   :  { %2306 = vmatpush3.bf16.msra.mxu1 %v2305_v63 }
 0x156   :  { %2308 = vmatprep.subr.bf16.mxu1 %v2307_v2 }
 0x159   :  { %2310 = vmatpush3.bf16.msra.mxu1 %v2309_v6 }
 0x15a   :  { %2312 = vmatprep.subr.bf16.mxu1 %v2311_v8 }
 0x15d   :  { %2314 = vmatpush3.bf16.msra.mxu1 %v2313_v11 }
 0x15e   :  { %2316 = vmatprep.subr.bf16.mxu1 %v2315_v14 }
 0x161   :  { %2318 = vmatpush3.bf16.msra.mxu1 %v2317_v17 }
 0x217   :  { %v1055_v21 = vpop.f32.mrb[0].mxu1 }
 0x218   :  { %v1057_v24 = vpop.f32.mrb[1].mxu1  ;;  %v2319_v27 = vadd.f32 %v1055_v21, %v694_v25 }
 0x219   :  { %v2321_v28 = vadd.f32 %v1057_v24, %v698_v26 }
 0x220   :  { %v1481_v29 = vpop.f32.mrb[0].mxu0 }
 0x221   :  { %v2320_v30 = vadd.f32 %v2319_v27, %v1481_v29  ;;  %v1483_v31 = vpop.f32.mrb[1].mxu0 }
 0x222   :  { %v2322_v32 = vadd.f32 %v2321_v28, %v1483_v31 }
 0x223   :  { %v1486_v34 = vmax.f32 %v2320_v30, 0.0 }
 0x224   :  { %v1487_v33 = vmax.f32 %v2322_v32, 0.0 }
 0x226   :  { %1591 = vmatprep.mubr.f32.mxu1 %v1487_v33 }
 0x227   :  { %1592 = vmatmul.mubr.f32.vlgmr.msra.gmra.mrb[2].mxu1 %v1486_v34 }
 0x2fa   :  { %v1636_v35 = vpop.f32.mrb[2].mxu1 }
 0x2fb   :  { %v1637_v37 = vpop.f32.mrb[3].mxu1 }
 0x2fc   :  { %v1638_v38 = vadd.f32 %v1637_v37, %v1636_v35 }
 0x2fe   :  { %v1594_v39 = vadd.f32 %v1638_v38, %v1603_v36 }
 0x300   :  { %1597 = vst [vmem:[%s4490_s5] sm:$0xff] %v1594_v39 }

</bundles_post_ra>
